<compile_context>
chip_gen: v7x
topology: tpu7x:2x2x1
jax: 0.10.0
libtpu: 0.0.40
codegen_flags: <defaults>
</compile_context>

<pallas_src>
import functools

import jax
import jax.numpy as jnp
from jax.experimental import pallas as pl
from jax.experimental.pallas import tpu as pltpu  # noqa: F401  (kept for TPU-specific tuning hooks)

# ----------------------------- model hyper-params (small test config) ------
INPUT_SIZE = 16
HIDDEN = 32
OUTPUT_SIZES = (3, 7)          # second head matches num_rmesr_categories=7
NUM_ECON_STATES = 5
ECON_DIM = 8                   # econ_state_embedding_dim
GSMD_DIM = 32                  # gsmd_node_embed_size
GRAPH_HIDDEN = 64              # graph_attention_hidden_dim
BATCH = 2
SEQ = 8
N_NODES = 4


# ----------------------------- single fused forward kernel ------------------
def _fused_forward_kernel(
    # inputs (data)
    x_ref, econ_ref, keys_ref, mask_ref,
    # feature projection first linear + folded (fp_w2 @ wih0_x) weight + econ/bias
    fp_w1_ref, fp_b1_ref, w_fold_ref, wih0e_ref, b0_ref,
    # recurrence weights: stacked [wih1 | whh0] (H, 8H), whh1, layer-1 bias
    w_h0_stack_ref, whh1_ref, b1_ref,
    # graph attention projections
    wq_ref, bq_ref, wk_ref, bk_ref, wv_ref, bv_ref,
    # fused epilogue (task heads + state predictor), first layer split by input part
    w1e_h_ref, w1e_c_ref, w1e_e_ref, b1e_ref, w2e_ref, b2e_ref,
    # outputs
    fused_ref, preds_ref, state_ref, hfin_ref, cfin_ref,
    *, seq_len, batch, hidden, graph_hidden, n_nodes, econ_dim,
    n_preds, n_states, fused_width,
):
    S, B, H, GH, N, E = seq_len, batch, hidden, graph_hidden, n_nodes, econ_dim
    f32 = jnp.float32

    # ---------------- prologue: all time-invariant work, done once ----------
    # feature projection first layer (NaN -> 0 on the feature path, as in the module);
    # second layer is folded into w_fold (= fp_w2 @ wih0_x) at wrapper time.
    x = x_ref[...]                                                        # (S*B, F), row = t*B + b
    x = jnp.where(jnp.isnan(x), jnp.zeros_like(x), x)
    ph = jnp.maximum(
        jnp.dot(x, fp_w1_ref[...], preferred_element_type=f32) + fp_b1_ref[...], 0.0)
    g0x = jnp.dot(ph, w_fold_ref[...], preferred_element_type=f32)        # (S*B, 4H)

    # econ-embedding gate contribution (bias b_ih+b_hh and fp_b2@wih0_x already folded in)
    econ = econ_ref[...]                                                   # (B, E)
    g0e = jnp.dot(econ, wih0e_ref[...], preferred_element_type=f32) + b0_ref[...]   # (B, 4H)

    # pre-slice per-step layer-0 gate inputs OUTSIDE the serial recurrence
    g0_steps = [g0x[t * B:(t + 1) * B, :] + g0e for t in range(S)]

    # graph key/value projections (keys never change across time)
    keys = keys_ref[...]                                                   # (B*N, K)
    kproj = (jnp.dot(keys, wk_ref[...], preferred_element_type=f32)
             + bk_ref[...]).reshape(B, N, GH)
    vproj = (jnp.dot(keys, wv_ref[...], preferred_element_type=f32)
             + bv_ref[...]).reshape(B, N, GH)
    mask = mask_ref[...]                                                   # (B, N)
    relevant = mask > 0.5
    any_rel = jnp.sum(mask, axis=-1, keepdims=True) > 0.5                  # (B, 1)

    w_h0 = w_h0_stack_ref[...]                                             # (H, 8H) = [wih1 | whh0]
    whh1 = whh1_ref[...]
    b1 = b1_ref[...]

    # PyTorch gate order (i, f, g, o): tanh on columns [2H, 3H), sigmoid elsewhere.
    lane = jax.lax.broadcasted_iota(jnp.int32, (B, 4 * H), 1)
    tanh_lane = (lane >= 2 * H) & (lane < 3 * H)

    def cell(gates, c_prev):
        act = jnp.where(tanh_lane, jnp.tanh(gates), jax.nn.sigmoid(gates))
        i_g = act[:, 0 * H:1 * H]
        f_g = act[:, 1 * H:2 * H]
        g_g = act[:, 2 * H:3 * H]
        o_g = act[:, 3 * H:4 * H]
        c_new = f_g * c_prev + i_g * g_g
        return o_g * jnp.tanh(c_new), c_new

    h0 = jnp.zeros((B, H), f32)
    c0 = jnp.zeros((B, H), f32)
    h1 = jnp.zeros((B, H), f32)
    c1 = jnp.zeros((B, H), f32)
    r0 = jnp.zeros((B, 4 * H), f32)        # h0_{t-1} @ whh0 contribution (zero at t=0)

    # ---------------- recurrence: 2 MXU pushes per step, statically unrolled -
    h1_steps = []
    for t in range(S):
        g0 = g0_steps[t] + r0
        h0, c0 = cell(g0, c0)
        # one 256-wide push: [:, :4H] = this step's layer-1 input contribution,
        #                    [:, 4H:] = next step's layer-0 recurrent contribution.
        stacked = jnp.dot(h0, w_h0, preferred_element_type=f32)            # (B, 8H)
        g1 = (stacked[:, :4 * H]
              + jnp.dot(h1, whh1, preferred_element_type=f32)              # uses h1_{t-1}
              + b1)
        r0 = stacked[:, 4 * H:]
        h1, c1 = cell(g1, c1)                                              # inter-layer dropout = identity (eval)
        h1_steps.append(h1)

    # ---------------- final LSTM states (written once) -----------------------
    hfin_ref[0, :, :] = h0
    hfin_ref[1, :, :] = h1
    cfin_ref[0, :, :] = c0
    cfin_ref[1, :, :] = c1

    # ---------------- graph attention for ALL steps (hoisted out of loop) ----
    hseq = jnp.stack(h1_steps, axis=1)                                     # (B, S, H)
    q = (jnp.dot(hseq.reshape(B * S, H), wq_ref[...], preferred_element_type=f32)
         + bq_ref[...]).reshape(B, S, GH)                                  # one matmul for all steps
    scores = jnp.einsum('bsg,bng->bsn', q, kproj,
                        preferred_element_type=f32) * (float(GH) ** -0.5)  # (B, S, N)
    scores = jnp.where(relevant[:, None, :], scores, -1e30)
    p = jnp.exp(scores - jnp.max(scores, axis=-1, keepdims=True))
    attn = p / jnp.sum(p, axis=-1, keepdims=True)                          # exact softmax (off critical path)
    ctx = jnp.einsum('bsn,bng->bsg', attn, vproj,
                     preferred_element_type=f32)                           # (B, S, GH)
    ctx = jnp.where(any_rel[:, :, None], ctx, jnp.zeros_like(ctx))         # zero if no relevant nodes

    # ---------------- lane-dense fused sequence output, single full store ----
    pad = jnp.zeros((B, S, fused_width - H - GH), f32)
    fused_ref[...] = jnp.concatenate([hseq, ctx, pad], axis=-1)            # (B, S, 128)

    # ---------------- fused epilogue: task heads + state predictor -----------
    ctx_last = ctx[:, S - 1, :]                                            # (B, GH)
    hid = jnp.maximum(
        jnp.dot(h1, w1e_h_ref[...], preferred_element_type=f32)
        + jnp.dot(ctx_last, w1e_c_ref[...], preferred_element_type=f32)
        + jnp.dot(econ, w1e_e_ref[...], preferred_element_type=f32)
        + b1e_ref[...], 0.0)                                               # (B, 2*(H//2)+H)
    outs = jnp.dot(hid, w2e_ref[...], preferred_element_type=f32) + b2e_ref[...]   # (B, n_preds+n_states)
    preds_ref[...] = outs[:, :n_preds]
    state_ref[...] = outs[:, n_preds:n_preds + n_states]


# ----------------------------- parameter init -------------------------------
def init_params(key):
    def nrm(k, shape, scale=0.1):
        return (scale * jax.random.normal(k, shape)).astype(jnp.float32)

    keys = iter(jax.random.split(key, 48))
    p = {}
    # feature_proj: Linear(F, 2H) -> ReLU -> Linear(2H, H)
    p["fp_w1"] = nrm(next(keys), (INPUT_SIZE, 2 * HIDDEN))
    p["fp_b1"] = nrm(next(keys), (1, 2 * HIDDEN))
    p["fp_w2"] = nrm(next(keys), (2 * HIDDEN, HIDDEN))
    p["fp_b2"] = nrm(next(keys), (1, HIDDEN))
    # econ state embedding
    p["econ_emb"] = nrm(next(keys), (NUM_ECON_STATES, ECON_DIM))
    # 2-layer LSTM, weights stored as (in, 4H) for x @ W; bias = b_ih + b_hh folded.
    # Layer-0 input weights split into feature part (H rows) and econ part (8 rows).
    lstm_in0 = HIDDEN + ECON_DIM
    wih0 = nrm(next(keys), (lstm_in0, 4 * HIDDEN))
    p["wih0_x"] = wih0[:HIDDEN, :]          # (H, 4H)
    p["wih0_e"] = wih0[HIDDEN:, :]          # (ECON_DIM, 4H)
    p["whh0"] = nrm(next(keys), (HIDDEN, 4 * HIDDEN))
    p["b0"] = nrm(next(keys), (1, 4 * HIDDEN))
    p["wih1"] = nrm(next(keys), (HIDDEN, 4 * HIDDEN))
    p["whh1"] = nrm(next(keys), (HIDDEN, 4 * HIDDEN))
    p["b1"] = nrm(next(keys), (1, 4 * HIDDEN))
    # graph attention
    p["wq"] = nrm(next(keys), (HIDDEN, GRAPH_HIDDEN))
    p["bq"] = nrm(next(keys), (1, GRAPH_HIDDEN))
    p["wk"] = nrm(next(keys), (GSMD_DIM, GRAPH_HIDDEN))
    p["bk"] = nrm(next(keys), (1, GRAPH_HIDDEN))
    p["wv"] = nrm(next(keys), (GSMD_DIM, GRAPH_HIDDEN))
    p["bv"] = nrm(next(keys), (1, GRAPH_HIDDEN))
    # state predictor
    fused_dim = HIDDEN + GRAPH_HIDDEN
    p["sp_w1"] = nrm(next(keys), (fused_dim, HIDDEN))
    p["sp_b1"] = nrm(next(keys), (1, HIDDEN))
    p["sp_w2"] = nrm(next(keys), (HIDDEN, NUM_ECON_STATES))
    p["sp_b2"] = nrm(next(keys), (1, NUM_ECON_STATES))
    # task heads
    head_in = fused_dim + ECON_DIM
    heads = []
    for size in OUTPUT_SIZES:
        heads.append((
            nrm(next(keys), (head_in, HIDDEN // 2)),
            nrm(next(keys), (1, HIDDEN // 2)),
            nrm(next(keys), (HIDDEN // 2, size)),
            nrm(next(keys), (1, size)),
        ))
    p["heads"] = heads
    return p


# ----------------------------- full forward ---------------------------------
def forward(params, x, econ_idx, node_emb, node_mask):
    B, S, F = x.shape
    N = node_emb.shape[1]
    f32 = jnp.float32
    H, GH, E = HIDDEN, GRAPH_HIDDEN, ECON_DIM
    HH = HIDDEN // 2
    n_preds = sum(OUTPUT_SIZES)
    fused_width = ((H + GH + 127) // 128) * 128     # lane-dense (multiple of 128) fused output

    # ---- wrapper-side layout plumbing (glue) --------------------------------
    x_tm = jnp.transpose(x, (1, 0, 2)).reshape(S * B, F)        # row = t*B + b
    econ_emb = params["econ_emb"][econ_idx]                     # (B, ECON_DIM) embedding gather
    keys_flat = node_emb.reshape(B * N, GSMD_DIM)
    mask_f = node_mask.astype(f32)

    # ---- wrapper-side weight folds / stacks (done once, exact up to f32 reassoc.)
    # fold feature_proj second linear into LSTM layer-0 input weight & bias
    w_fold = params["fp_w2"] @ params["wih0_x"]                              # (2H, 4H)
    b0_fold = params["b0"] + params["fp_b2"] @ params["wih0_x"]              # (1, 4H)
    # 256-wide per-step recurrent RHS: h0_t @ [wih1 | whh0]
    w_h0_stack = jnp.concatenate([params["wih1"], params["whh0"]], axis=1)   # (H, 8H)

    # fused epilogue: column-stack [headA | headB | state-predictor] first layers,
    # block-diagonal second layer.
    (ha_w1, ha_b1, ha_w2, ha_b2), (hb_w1, hb_b1, hb_w2, hb_b2) = params["heads"]
    sp_w1, sp_b1 = params["sp_w1"], params["sp_b1"]
    sp_w2, sp_b2 = params["sp_w2"], params["sp_b2"]
    w1e_h = jnp.concatenate([ha_w1[:H], hb_w1[:H], sp_w1[:H]], axis=1)                       # (H, 2*HH+H)
    w1e_c = jnp.concatenate([ha_w1[H:H + GH], hb_w1[H:H + GH], sp_w1[H:H + GH]], axis=1)     # (GH, ·)
    w1e_e = jnp.concatenate([ha_w1[H + GH:], hb_w1[H + GH:], jnp.zeros((E, H), f32)], axis=1)  # (E, ·)
    b1e = jnp.concatenate([ha_b1, hb_b1, sp_b1], axis=1)                                     # (1, 2*HH+H)
    w2e = jnp.zeros((2 * HH + H, n_preds + NUM_ECON_STATES), f32)
    w2e = w2e.at[0:HH, 0:OUTPUT_SIZES[0]].set(ha_w2)
    w2e = w2e.at[HH:2 * HH, OUTPUT_SIZES[0]:n_preds].set(hb_w2)
    w2e = w2e.at[2 * HH:, n_preds:].set(sp_w2)
    b2e = jnp.concatenate([ha_b2, hb_b2, sp_b2], axis=1)                                     # (1, n_preds+n_states)

    kernel = functools.partial(
        _fused_forward_kernel,
        seq_len=S, batch=B, hidden=H, graph_hidden=GH, n_nodes=N, econ_dim=E,
        n_preds=n_preds, n_states=NUM_ECON_STATES, fused_width=fused_width)

    out_shapes = (
        jax.ShapeDtypeStruct((B, S, fused_width), f32),               # fused [h | ctx | pad], lane-dense
        jax.ShapeDtypeStruct((B, n_preds), f32),                      # all task predictions
        jax.ShapeDtypeStruct((B, NUM_ECON_STATES), f32),              # state logits
        jax.ShapeDtypeStruct((2, B, H), f32),                         # h_fin
        jax.ShapeDtypeStruct((2, B, H), f32),                         # c_fin
    )

    fused_pad, all_preds, state_logits, h_fin, c_fin = pl.pallas_call(
        kernel, out_shape=out_shapes,
    )(
        x_tm, econ_emb, keys_flat, mask_f,
        params["fp_w1"], params["fp_b1"], w_fold, params["wih0_e"], b0_fold,
        w_h0_stack, params["whh1"], params["b1"],
        params["wq"], params["bq"], params["wk"], params["bk"], params["wv"], params["bv"],
        w1e_h, w1e_c, w1e_e, b1e, w2e, b2e,
    )

    fused_seq = fused_pad[:, :, :H + GH]                               # (B, S, H+GH)
    return all_preds, state_logits, fused_seq, (h_fin, c_fin)


# ----------------------------- main ------------------------------------------
if __name__ == "__main__":
    key = jax.random.PRNGKey(0)
    k_p, k_x, k_g = jax.random.split(key, 3)

    params = init_params(k_p)

    x = jax.random.normal(k_x, (BATCH, SEQ, INPUT_SIZE), jnp.float32)
    x = x.at[0, 0, 0].set(jnp.nan)                               # exercise NaN masking
    econ_idx = jnp.array([1, 3], jnp.int32)                      # economic_state per sample
    node_emb = jax.random.normal(k_g, (BATCH, N_NODES, GSMD_DIM), jnp.float32)
    node_mask = jnp.array([[1.0, 1.0, 0.0, 1.0],
                           [1.0, 0.0, 0.0, 0.0]], jnp.float32)   # graph relevance mask

    outs = forward(params, x, econ_idx, node_emb, node_mask)
    jax.block_until_ready(outs)

    all_preds, state_logits, fused_seq, (h_fin, c_fin) = outs
    assert all_preds.shape == (BATCH, sum(OUTPUT_SIZES))
    assert state_logits.shape == (BATCH, NUM_ECON_STATES)
    assert fused_seq.shape == (BATCH, SEQ, HIDDEN + GRAPH_HIDDEN)
    assert h_fin.shape == (2, BATCH, HIDDEN) and c_fin.shape == (2, BATCH, HIDDEN)
    assert not bool(jnp.isnan(all_preds).any())
    assert not bool(jnp.isnan(state_logits).any())
    assert not bool(jnp.isnan(fused_seq).any())
    assert not bool(jnp.isnan(h_fin).any()) and not bool(jnp.isnan(c_fin).any())
    print("KERNEL_OK")
</pallas_src>

<mosaic_0001>
module attributes {stable_mosaic.version = 11 : i64} {
  func.func @_fused_forward_kernel(%arg0: memref<16x16xf32, #tpu.memory_space<vmem>>, %arg1: memref<2x8xf32, #tpu.memory_space<vmem>>, %arg2: memref<8x32xf32, #tpu.memory_space<vmem>>, %arg3: memref<2x4xf32, #tpu.memory_space<vmem>>, %arg4: memref<16x64xf32, #tpu.memory_space<vmem>>, %arg5: memref<1x64xf32, #tpu.memory_space<vmem>>, %arg6: memref<64x128xf32, #tpu.memory_space<vmem>>, %arg7: memref<8x128xf32, #tpu.memory_space<vmem>>, %arg8: memref<1x128xf32, #tpu.memory_space<vmem>>, %arg9: memref<32x256xf32, #tpu.memory_space<vmem>>, %arg10: memref<32x128xf32, #tpu.memory_space<vmem>>, %arg11: memref<1x128xf32, #tpu.memory_space<vmem>>, %arg12: memref<32x64xf32, #tpu.memory_space<vmem>>, %arg13: memref<1x64xf32, #tpu.memory_space<vmem>>, %arg14: memref<32x64xf32, #tpu.memory_space<vmem>>, %arg15: memref<1x64xf32, #tpu.memory_space<vmem>>, %arg16: memref<32x64xf32, #tpu.memory_space<vmem>>, %arg17: memref<1x64xf32, #tpu.memory_space<vmem>>, %arg18: memref<32x64xf32, #tpu.memory_space<vmem>>, %arg19: memref<64x64xf32, #tpu.memory_space<vmem>>, %arg20: memref<8x64xf32, #tpu.memory_space<vmem>>, %arg21: memref<1x64xf32, #tpu.memory_space<vmem>>, %arg22: memref<64x15xf32, #tpu.memory_space<vmem>>, %arg23: memref<1x15xf32, #tpu.memory_space<vmem>>, %arg24: memref<2x8x128xf32, #tpu.memory_space<vmem>>, %arg25: memref<2x10xf32, #tpu.memory_space<vmem>>, %arg26: memref<2x5xf32, #tpu.memory_space<vmem>>, %arg27: memref<2x2x32xf32, #tpu.memory_space<vmem>>, %arg28: memref<2x2x32xf32, #tpu.memory_space<vmem>>) attributes {dimension_semantics = [], scalar_prefetch = 0 : i64, scratch_operands = 0 : i64, tpu.core_type = #tpu.core_type<tc>} {
    %c0 = arith.constant 0 : index
    %c0_0 = arith.constant 0 : index
    %0 = vector.load %arg0[%c0, %c0_0] : memref<16x16xf32, #tpu.memory_space<vmem>>, vector<16x16xf32>
    %1 = arith.cmpf one, %0, %0 : vector<16x16xf32>
    %cst = arith.constant 0.000000e+00 : f32
    %2 = vector.broadcast %cst : f32 to vector<16x16xf32>
    %3 = arith.select %1, %2, %0 : vector<16x16xi1>, vector<16x16xf32>
    %c0_1 = arith.constant 0 : index
    %c0_2 = arith.constant 0 : index
    %4 = vector.load %arg4[%c0_1, %c0_2] : memref<16x64xf32, #tpu.memory_space<vmem>>, vector<16x64xf32>
    %cst_3 = arith.constant dense<0.000000e+00> : vector<16x64xf32>
    %5 = tpu.matmul %3, %4, %cst_3 {dimension_numbers = #tpu.dot_dimension_numbers<[1], [0], [0], [1], [0, 0, 1, 1], [], []>} : vector<16x16xf32>, vector<16x64xf32>, vector<16x64xf32> -> vector<16x64xf32>
    %c0_4 = arith.constant 0 : index
    %c0_5 = arith.constant 0 : index
    %6 = vector.load %arg5[%c0_4, %c0_5] : memref<1x64xf32, #tpu.memory_space<vmem>>, vector<1x64xf32>
    %7 = vector.broadcast %6 : vector<1x64xf32> to vector<16x64xf32>
    %8 = arith.addf %5, %7 : vector<16x64xf32>
    %cst_6 = arith.constant 0.000000e+00 : f32
    %9 = vector.broadcast %cst_6 : f32 to vector<16x64xf32>
    %10 = arith.maximumf %8, %9 : vector<16x64xf32>
    %c0_7 = arith.constant 0 : index
    %c0_8 = arith.constant 0 : index
    %11 = vector.load %arg6[%c0_7, %c0_8] : memref<64x128xf32, #tpu.memory_space<vmem>>, vector<64x128xf32>
    %cst_9 = arith.constant dense<0.000000e+00> : vector<16x128xf32>
    %12 = tpu.matmul %10, %11, %cst_9 {dimension_numbers = #tpu.dot_dimension_numbers<[1], [0], [0], [1], [0, 0, 1, 1], [], []>} : vector<16x64xf32>, vector<64x128xf32>, vector<16x128xf32> -> vector<16x128xf32>
    %c0_10 = arith.constant 0 : index
    %c0_11 = arith.constant 0 : index
    %13 = vector.load %arg1[%c0_10, %c0_11] : memref<2x8xf32, #tpu.memory_space<vmem>>, vector<2x8xf32>
    %c0_12 = arith.constant 0 : index
    %c0_13 = arith.constant 0 : index
    %14 = vector.load %arg7[%c0_12, %c0_13] : memref<8x128xf32, #tpu.memory_space<vmem>>, vector<8x128xf32>
    %cst_14 = arith.constant dense<0.000000e+00> : vector<2x128xf32>
    %15 = tpu.matmul %13, %14, %cst_14 {dimension_numbers = #tpu.dot_dimension_numbers<[1], [0], [0], [1], [0, 0, 1, 1], [], []>} : vector<2x8xf32>, vector<8x128xf32>, vector<2x128xf32> -> vector<2x128xf32>
    %c0_15 = arith.constant 0 : index
    %c0_16 = arith.constant 0 : index
    %16 = vector.load %arg8[%c0_15, %c0_16] : memref<1x128xf32, #tpu.memory_space<vmem>>, vector<1x128xf32>
    %17 = vector.broadcast %16 : vector<1x128xf32> to vector<2x128xf32>
    %18 = arith.addf %15, %17 : vector<2x128xf32>
    %19 = vector.extract_strided_slice %12 {offsets = [0, 0], sizes = [2, 128], strides = [1, 1]} : vector<16x128xf32> to vector<2x128xf32>
    %20 = arith.addf %19, %18 : vector<2x128xf32>
    %21 = vector.extract_strided_slice %12 {offsets = [2, 0], sizes = [2, 128], strides = [1, 1]} : vector<16x128xf32> to vector<2x128xf32>
    %22 = arith.addf %21, %18 : vector<2x128xf32>
    %23 = vector.extract_strided_slice %12 {offsets = [4, 0], sizes = [2, 128], strides = [1, 1]} : vector<16x128xf32> to vector<2x128xf32>
    %24 = arith.addf %23, %18 : vector<2x128xf32>
    %25 = vector.extract_strided_slice %12 {offsets = [6, 0], sizes = [2, 128], strides = [1, 1]} : vector<16x128xf32> to vector<2x128xf32>
    %26 = arith.addf %25, %18 : vector<2x128xf32>
    %27 = vector.extract_strided_slice %12 {offsets = [8, 0], sizes = [2, 128], strides = [1, 1]} : vector<16x128xf32> to vector<2x128xf32>
    %28 = arith.addf %27, %18 : vector<2x128xf32>
    %29 = vector.extract_strided_slice %12 {offsets = [10, 0], sizes = [2, 128], strides = [1, 1]} : vector<16x128xf32> to vector<2x128xf32>
    %30 = arith.addf %29, %18 : vector<2x128xf32>
    %31 = vector.extract_strided_slice %12 {offsets = [12, 0], sizes = [2, 128], strides = [1, 1]} : vector<16x128xf32> to vector<2x128xf32>
    %32 = arith.addf %31, %18 : vector<2x128xf32>
    %33 = vector.extract_strided_slice %12 {offsets = [14, 0], sizes = [2, 128], strides = [1, 1]} : vector<16x128xf32> to vector<2x128xf32>
    %34 = arith.addf %33, %18 : vector<2x128xf32>
    %c0_17 = arith.constant 0 : index
    %c0_18 = arith.constant 0 : index
    %35 = vector.load %arg2[%c0_17, %c0_18] : memref<8x32xf32, #tpu.memory_space<vmem>>, vector<8x32xf32>
    %c0_19 = arith.constant 0 : index
    %c0_20 = arith.constant 0 : index
    %36 = vector.load %arg14[%c0_19, %c0_20] : memref<32x64xf32, #tpu.memory_space<vmem>>, vector<32x64xf32>
    %cst_21 = arith.constant dense<0.000000e+00> : vector<8x64xf32>
    %37 = tpu.matmul %35, %36, %cst_21 {dimension_numbers = #tpu.dot_dimension_numbers<[1], [0], [0], [1], [0, 0, 1, 1], [], []>} : vector<8x32xf32>, vector<32x64xf32>, vector<8x64xf32> -> vector<8x64xf32>
    %c0_22 = arith.constant 0 : index
    %c0_23 = arith.constant 0 : index
    %38 = vector.load %arg15[%c0_22, %c0_23] : memref<1x64xf32, #tpu.memory_space<vmem>>, vector<1x64xf32>
    %39 = vector.broadcast %38 : vector<1x64xf32> to vector<8x64xf32>
    %40 = arith.addf %37, %39 : vector<8x64xf32>
    %41 = vector.shape_cast %40 : vector<8x64xf32> to vector<2x4x64xf32>
    %c0_24 = arith.constant 0 : index
    %c0_25 = arith.constant 0 : index
    %42 = vector.load %arg16[%c0_24, %c0_25] : memref<32x64xf32, #tpu.memory_space<vmem>>, vector<32x64xf32>
    %cst_26 = arith.constant dense<0.000000e+00> : vector<8x64xf32>
    %43 = tpu.matmul %35, %42, %cst_26 {dimension_numbers = #tpu.dot_dimension_numbers<[1], [0], [0], [1], [0, 0, 1, 1], [], []>} : vector<8x32xf32>, vector<32x64xf32>, vector<8x64xf32> -> vector<8x64xf32>
    %c0_27 = arith.constant 0 : index
    %c0_28 = arith.constant 0 : index
    %44 = vector.load %arg17[%c0_27, %c0_28] : memref<1x64xf32, #tpu.memory_space<vmem>>, vector<1x64xf32>
    %45 = vector.broadcast %44 : vector<1x64xf32> to vector<8x64xf32>
    %46 = arith.addf %43, %45 : vector<8x64xf32>
    %47 = vector.shape_cast %46 : vector<8x64xf32> to vector<2x4x64xf32>
    %c0_29 = arith.constant 0 : index
    %c0_30 = arith.constant 0 : index
    %48 = vector.load %arg3[%c0_29, %c0_30] : memref<2x4xf32, #tpu.memory_space<vmem>>, vector<2x4xf32>
    %cst_31 = arith.constant 5.000000e-01 : f32
    %49 = vector.broadcast %cst_31 : f32 to vector<2x4xf32>
    %50 = arith.cmpf ogt, %48, %49 : vector<2x4xf32>
    %cst_32 = arith.constant dense<0.000000e+00> : vector<2xf32>
    %51 = vector.multi_reduction <add>, %48, %cst_32 [1] : vector<2x4xf32> to vector<2xf32>
    %52 = vector.shape_cast %51 : vector<2xf32> to vector<2x1xf32>
    %cst_33 = arith.constant 5.000000e-01 : f32
    %53 = vector.broadcast %cst_33 : f32 to vector<2x1xf32>
    %54 = arith.cmpf ogt, %52, %53 : vector<2x1xf32>
    %c0_34 = arith.constant 0 : index
    %c0_35 = arith.constant 0 : index
    %55 = vector.load %arg9[%c0_34, %c0_35] : memref<32x256xf32, #tpu.memory_space<vmem>>, vector<32x256xf32>
    %c0_36 = arith.constant 0 : index
    %c0_37 = arith.constant 0 : index
    %56 = vector.load %arg10[%c0_36, %c0_37] : memref<32x128xf32, #tpu.memory_space<vmem>>, vector<32x128xf32>
    %c0_38 = arith.constant 0 : index
    %c0_39 = arith.constant 0 : index
    %57 = vector.load %arg11[%c0_38, %c0_39] : memref<1x128xf32, #tpu.memory_space<vmem>>, vector<1x128xf32>
    %58 = tpu.iota {dimensions = array<i32: 1>} : vector<2x128xi32>
    %c64_i32 = arith.constant 64 : i32
    %59 = vector.broadcast %c64_i32 : i32 to vector<2x128xi32>
    %60 = arith.cmpi sge, %58, %59 : vector<2x128xi32>
    %c96_i32 = arith.constant 96 : i32
    %61 = vector.broadcast %c96_i32 : i32 to vector<2x128xi32>
    %62 = arith.cmpi slt, %58, %61 : vector<2x128xi32>
    %63 = arith.andi %60, %62 : vector<2x128xi1>
    %cst_40 = arith.constant 0.000000e+00 : f32
    %64 = vector.broadcast %cst_40 : f32 to vector<2x32xf32>
    %cst_41 = arith.constant 0.000000e+00 : f32
    %65 = vector.broadcast %cst_41 : f32 to vector<2x32xf32>
    %cst_42 = arith.constant 0.000000e+00 : f32
    %66 = vector.broadcast %cst_42 : f32 to vector<2x32xf32>
    %cst_43 = arith.constant 0.000000e+00 : f32
    %67 = vector.broadcast %cst_43 : f32 to vector<2x128xf32>
    %68 = arith.addf %20, %67 : vector<2x128xf32>
    %69 = math.tanh %68 : vector<2x128xf32>
    %70 = arith.negf %68 : vector<2x128xf32>
    %71 = math.exp %70 : vector<2x128xf32>
    %cst_44 = arith.constant 1.000000e+00 : f32
    %72 = vector.broadcast %cst_44 : f32 to vector<2x128xf32>
    %73 = arith.addf %72, %71 : vector<2x128xf32>
    %74 = arith.divf %72, %73 : vector<2x128xf32>
    %75 = arith.select %63, %69, %74 : vector<2x128xi1>, vector<2x128xf32>
    %76 = vector.extract_strided_slice %75 {offsets = [0, 0], sizes = [2, 32], strides = [1, 1]} : vector<2x128xf32> to vector<2x32xf32>
    %77 = vector.extract_strided_slice %75 {offsets = [0, 32], sizes = [2, 32], strides = [1, 1]} : vector<2x128xf32> to vector<2x32xf32>
    %78 = vector.extract_strided_slice %75 {offsets = [0, 64], sizes = [2, 32], strides = [1, 1]} : vector<2x128xf32> to vector<2x32xf32>
    %79 = vector.extract_strided_slice %75 {offsets = [0, 96], sizes = [2, 32], strides = [1, 1]} : vector<2x128xf32> to vector<2x32xf32>
    %80 = arith.mulf %77, %64 : vector<2x32xf32>
    %81 = arith.mulf %76, %78 : vector<2x32xf32>
    %82 = arith.addf %80, %81 : vector<2x32xf32>
    %83 = math.tanh %82 : vector<2x32xf32>
    %84 = arith.mulf %79, %83 : vector<2x32xf32>
    %cst_45 = arith.constant dense<0.000000e+00> : vector<2x256xf32>
    %85 = tpu.matmul %84, %55, %cst_45 {dimension_numbers = #tpu.dot_dimension_numbers<[1], [0], [0], [1], [0, 0, 1, 1], [], []>} : vector<2x32xf32>, vector<32x256xf32>, vector<2x256xf32> -> vector<2x256xf32>
    %86 = vector.extract_strided_slice %85 {offsets = [0, 0], sizes = [2, 128], strides = [1, 1]} : vector<2x256xf32> to vector<2x128xf32>
    %cst_46 = arith.constant dense<0.000000e+00> : vector<2x128xf32>
    %87 = tpu.matmul %65, %56, %cst_46 {dimension_numbers = #tpu.dot_dimension_numbers<[1], [0], [0], [1], [0, 0, 1, 1], [], []>} : vector<2x32xf32>, vector<32x128xf32>, vector<2x128xf32> -> vector<2x128xf32>
    %88 = arith.addf %86, %87 : vector<2x128xf32>
    %89 = vector.broadcast %57 : vector<1x128xf32> to vector<2x128xf32>
    %90 = arith.addf %88, %89 : vector<2x128xf32>
    %91 = vector.extract_strided_slice %85 {offsets = [0, 128], sizes = [2, 128], strides = [1, 1]} : vector<2x256xf32> to vector<2x128xf32>
    %92 = math.tanh %90 : vector<2x128xf32>
    %93 = arith.negf %90 : vector<2x128xf32>
    %94 = math.exp %93 : vector<2x128xf32>
    %cst_47 = arith.constant 1.000000e+00 : f32
    %95 = vector.broadcast %cst_47 : f32 to vector<2x128xf32>
    %96 = arith.addf %95, %94 : vector<2x128xf32>
    %97 = arith.divf %95, %96 : vector<2x128xf32>
    %98 = arith.select %63, %92, %97 : vector<2x128xi1>, vector<2x128xf32>
    %99 = vector.extract_strided_slice %98 {offsets = [0, 0], sizes = [2, 32], strides = [1, 1]} : vector<2x128xf32> to vector<2x32xf32>
    %100 = vector.extract_strided_slice %98 {offsets = [0, 32], sizes = [2, 32], strides = [1, 1]} : vector<2x128xf32> to vector<2x32xf32>
    %101 = vector.extract_strided_slice %98 {offsets = [0, 64], sizes = [2, 32], strides = [1, 1]} : vector<2x128xf32> to vector<2x32xf32>
    %102 = vector.extract_strided_slice %98 {offsets = [0, 96], sizes = [2, 32], strides = [1, 1]} : vector<2x128xf32> to vector<2x32xf32>
    %103 = arith.mulf %100, %66 : vector<2x32xf32>
    %104 = arith.mulf %99, %101 : vector<2x32xf32>
    %105 = arith.addf %103, %104 : vector<2x32xf32>
    %106 = math.tanh %105 : vector<2x32xf32>
    %107 = arith.mulf %102, %106 : vector<2x32xf32>
    %108 = arith.addf %22, %91 : vector<2x128xf32>
    %109 = math.tanh %108 : vector<2x128xf32>
    %110 = arith.negf %108 : vector<2x128xf32>
    %111 = math.exp %110 : vector<2x128xf32>
    %cst_48 = arith.constant 1.000000e+00 : f32
    %112 = vector.broadcast %cst_48 : f32 to vector<2x128xf32>
    %113 = arith.addf %112, %111 : vector<2x128xf32>
    %114 = arith.divf %112, %113 : vector<2x128xf32>
    %115 = arith.select %63, %109, %114 : vector<2x128xi1>, vector<2x128xf32>
    %116 = vector.extract_strided_slice %115 {offsets = [0, 0], sizes = [2, 32], strides = [1, 1]} : vector<2x128xf32> to vector<2x32xf32>
    %117 = vector.extract_strided_slice %115 {offsets = [0, 32], sizes = [2, 32], strides = [1, 1]} : vector<2x128xf32> to vector<2x32xf32>
    %118 = vector.extract_strided_slice %115 {offsets = [0, 64], sizes = [2, 32], strides = [1, 1]} : vector<2x128xf32> to vector<2x32xf32>
    %119 = vector.extract_strided_slice %115 {offsets = [0, 96], sizes = [2, 32], strides = [1, 1]} : vector<2x128xf32> to vector<2x32xf32>
    %120 = arith.mulf %117, %82 : vector<2x32xf32>
    %121 = arith.mulf %116, %118 : vector<2x32xf32>
    %122 = arith.addf %120, %121 : vector<2x32xf32>
    %123 = math.tanh %122 : vector<2x32xf32>
    %124 = arith.mulf %119, %123 : vector<2x32xf32>
    %cst_49 = arith.constant dense<0.000000e+00> : vector<2x256xf32>
    %125 = tpu.matmul %124, %55, %cst_49 {dimension_numbers = #tpu.dot_dimension_numbers<[1], [0], [0], [1], [0, 0, 1, 1], [], []>} : vector<2x32xf32>, vector<32x256xf32>, vector<2x256xf32> -> vector<2x256xf32>
    %126 = vector.extract_strided_slice %125 {offsets = [0, 0], sizes = [2, 128], strides = [1, 1]} : vector<2x256xf32> to vector<2x128xf32>
    %cst_50 = arith.constant dense<0.000000e+00> : vector<2x128xf32>
    %127 = tpu.matmul %107, %56, %cst_50 {dimension_numbers = #tpu.dot_dimension_numbers<[1], [0], [0], [1], [0, 0, 1, 1], [], []>} : vector<2x32xf32>, vector<32x128xf32>, vector<2x128xf32> -> vector<2x128xf32>
    %128 = arith.addf %126, %127 : vector<2x128xf32>
    %129 = vector.broadcast %57 : vector<1x128xf32> to vector<2x128xf32>
    %130 = arith.addf %128, %129 : vector<2x128xf32>
    %131 = vector.extract_strided_slice %125 {offsets = [0, 128], sizes = [2, 128], strides = [1, 1]} : vector<2x256xf32> to vector<2x128xf32>
    %132 = math.tanh %130 : vector<2x128xf32>
    %133 = arith.negf %130 : vector<2x128xf32>
    %134 = math.exp %133 : vector<2x128xf32>
    %cst_51 = arith.constant 1.000000e+00 : f32
    %135 = vector.broadcast %cst_51 : f32 to vector<2x128xf32>
    %136 = arith.addf %135, %134 : vector<2x128xf32>
    %137 = arith.divf %135, %136 : vector<2x128xf32>
    %138 = arith.select %63, %132, %137 : vector<2x128xi1>, vector<2x128xf32>
    %139 = vector.extract_strided_slice %138 {offsets = [0, 0], sizes = [2, 32], strides = [1, 1]} : vector<2x128xf32> to vector<2x32xf32>
    %140 = vector.extract_strided_slice %138 {offsets = [0, 32], sizes = [2, 32], strides = [1, 1]} : vector<2x128xf32> to vector<2x32xf32>
    %141 = vector.extract_strided_slice %138 {offsets = [0, 64], sizes = [2, 32], strides = [1, 1]} : vector<2x128xf32> to vector<2x32xf32>
    %142 = vector.extract_strided_slice %138 {offsets = [0, 96], sizes = [2, 32], strides = [1, 1]} : vector<2x128xf32> to vector<2x32xf32>
    %143 = arith.mulf %140, %105 : vector<2x32xf32>
    %144 = arith.mulf %139, %141 : vector<2x32xf32>
    %145 = arith.addf %143, %144 : vector<2x32xf32>
    %146 = math.tanh %145 : vector<2x32xf32>
    %147 = arith.mulf %142, %146 : vector<2x32xf32>
    %148 = arith.addf %24, %131 : vector<2x128xf32>
    %149 = math.tanh %148 : vector<2x128xf32>
    %150 = arith.negf %148 : vector<2x128xf32>
    %151 = math.exp %150 : vector<2x128xf32>
    %cst_52 = arith.constant 1.000000e+00 : f32
    %152 = vector.broadcast %cst_52 : f32 to vector<2x128xf32>
    %153 = arith.addf %152, %151 : vector<2x128xf32>
    %154 = arith.divf %152, %153 : vector<2x128xf32>
    %155 = arith.select %63, %149, %154 : vector<2x128xi1>, vector<2x128xf32>
    %156 = vector.extract_strided_slice %155 {offsets = [0, 0], sizes = [2, 32], strides = [1, 1]} : vector<2x128xf32> to vector<2x32xf32>
    %157 = vector.extract_strided_slice %155 {offsets = [0, 32], sizes = [2, 32], strides = [1, 1]} : vector<2x128xf32> to vector<2x32xf32>
    %158 = vector.extract_strided_slice %155 {offsets = [0, 64], sizes = [2, 32], strides = [1, 1]} : vector<2x128xf32> to vector<2x32xf32>
    %159 = vector.extract_strided_slice %155 {offsets = [0, 96], sizes = [2, 32], strides = [1, 1]} : vector<2x128xf32> to vector<2x32xf32>
    %160 = arith.mulf %157, %122 : vector<2x32xf32>
    %161 = arith.mulf %156, %158 : vector<2x32xf32>
    %162 = arith.addf %160, %161 : vector<2x32xf32>
    %163 = math.tanh %162 : vector<2x32xf32>
    %164 = arith.mulf %159, %163 : vector<2x32xf32>
    %cst_53 = arith.constant dense<0.000000e+00> : vector<2x256xf32>
    %165 = tpu.matmul %164, %55, %cst_53 {dimension_numbers = #tpu.dot_dimension_numbers<[1], [0], [0], [1], [0, 0, 1, 1], [], []>} : vector<2x32xf32>, vector<32x256xf32>, vector<2x256xf32> -> vector<2x256xf32>
    %166 = vector.extract_strided_slice %165 {offsets = [0, 0], sizes = [2, 128], strides = [1, 1]} : vector<2x256xf32> to vector<2x128xf32>
    %cst_54 = arith.constant dense<0.000000e+00> : vector<2x128xf32>
    %167 = tpu.matmul %147, %56, %cst_54 {dimension_numbers = #tpu.dot_dimension_numbers<[1], [0], [0], [1], [0, 0, 1, 1], [], []>} : vector<2x32xf32>, vector<32x128xf32>, vector<2x128xf32> -> vector<2x128xf32>
    %168 = arith.addf %166, %167 : vector<2x128xf32>
    %169 = vector.broadcast %57 : vector<1x128xf32> to vector<2x128xf32>
    %170 = arith.addf %168, %169 : vector<2x128xf32>
    %171 = vector.extract_strided_slice %165 {offsets = [0, 128], sizes = [2, 128], strides = [1, 1]} : vector<2x256xf32> to vector<2x128xf32>
    %172 = math.tanh %170 : vector<2x128xf32>
    %173 = arith.negf %170 : vector<2x128xf32>
    %174 = math.exp %173 : vector<2x128xf32>
    %cst_55 = arith.constant 1.000000e+00 : f32
    %175 = vector.broadcast %cst_55 : f32 to vector<2x128xf32>
    %176 = arith.addf %175, %174 : vector<2x128xf32>
    %177 = arith.divf %175, %176 : vector<2x128xf32>
    %178 = arith.select %63, %172, %177 : vector<2x128xi1>, vector<2x128xf32>
    %179 = vector.extract_strided_slice %178 {offsets = [0, 0], sizes = [2, 32], strides = [1, 1]} : vector<2x128xf32> to vector<2x32xf32>
    %180 = vector.extract_strided_slice %178 {offsets = [0, 32], sizes = [2, 32], strides = [1, 1]} : vector<2x128xf32> to vector<2x32xf32>
    %181 = vector.extract_strided_slice %178 {offsets = [0, 64], sizes = [2, 32], strides = [1, 1]} : vector<2x128xf32> to vector<2x32xf32>
    %182 = vector.extract_strided_slice %178 {offsets = [0, 96], sizes = [2, 32], strides = [1, 1]} : vector<2x128xf32> to vector<2x32xf32>
    %183 = arith.mulf %180, %145 : vector<2x32xf32>
    %184 = arith.mulf %179, %181 : vector<2x32xf32>
    %185 = arith.addf %183, %184 : vector<2x32xf32>
    %186 = math.tanh %185 : vector<2x32xf32>
    %187 = arith.mulf %182, %186 : vector<2x32xf32>
    %188 = arith.addf %26, %171 : vector<2x128xf32>
    %189 = math.tanh %188 : vector<2x128xf32>
    %190 = arith.negf %188 : vector<2x128xf32>
    %191 = math.exp %190 : vector<2x128xf32>
    %cst_56 = arith.constant 1.000000e+00 : f32
    %192 = vector.broadcast %cst_56 : f32 to vector<2x128xf32>
    %193 = arith.addf %192, %191 : vector<2x128xf32>
    %194 = arith.divf %192, %193 : vector<2x128xf32>
    %195 = arith.select %63, %189, %194 : vector<2x128xi1>, vector<2x128xf32>
    %196 = vector.extract_strided_slice %195 {offsets = [0, 0], sizes = [2, 32], strides = [1, 1]} : vector<2x128xf32> to vector<2x32xf32>
    %197 = vector.extract_strided_slice %195 {offsets = [0, 32], sizes = [2, 32], strides = [1, 1]} : vector<2x128xf32> to vector<2x32xf32>
    %198 = vector.extract_strided_slice %195 {offsets = [0, 64], sizes = [2, 32], strides = [1, 1]} : vector<2x128xf32> to vector<2x32xf32>
    %199 = vector.extract_strided_slice %195 {offsets = [0, 96], sizes = [2, 32], strides = [1, 1]} : vector<2x128xf32> to vector<2x32xf32>
    %200 = arith.mulf %197, %162 : vector<2x32xf32>
    %201 = arith.mulf %196, %198 : vector<2x32xf32>
    %202 = arith.addf %200, %201 : vector<2x32xf32>
    %203 = math.tanh %202 : vector<2x32xf32>
    %204 = arith.mulf %199, %203 : vector<2x32xf32>
    %cst_57 = arith.constant dense<0.000000e+00> : vector<2x256xf32>
    %205 = tpu.matmul %204, %55, %cst_57 {dimension_numbers = #tpu.dot_dimension_numbers<[1], [0], [0], [1], [0, 0, 1, 1], [], []>} : vector<2x32xf32>, vector<32x256xf32>, vector<2x256xf32> -> vector<2x256xf32>
    %206 = vector.extract_strided_slice %205 {offsets = [0, 0], sizes = [2, 128], strides = [1, 1]} : vector<2x256xf32> to vector<2x128xf32>
    %cst_58 = arith.constant dense<0.000000e+00> : vector<2x128xf32>
    %207 = tpu.matmul %187, %56, %cst_58 {dimension_numbers = #tpu.dot_dimension_numbers<[1], [0], [0], [1], [0, 0, 1, 1], [], []>} : vector<2x32xf32>, vector<32x128xf32>, vector<2x128xf32> -> vector<2x128xf32>
    %208 = arith.addf %206, %207 : vector<2x128xf32>
    %209 = vector.broadcast %57 : vector<1x128xf32> to vector<2x128xf32>
    %210 = arith.addf %208, %209 : vector<2x128xf32>
    %211 = vector.extract_strided_slice %205 {offsets = [0, 128], sizes = [2, 128], strides = [1, 1]} : vector<2x256xf32> to vector<2x128xf32>
    %212 = math.tanh %210 : vector<2x128xf32>
    %213 = arith.negf %210 : vector<2x128xf32>
    %214 = math.exp %213 : vector<2x128xf32>
    %cst_59 = arith.constant 1.000000e+00 : f32
    %215 = vector.broadcast %cst_59 : f32 to vector<2x128xf32>
    %216 = arith.addf %215, %214 : vector<2x128xf32>
    %217 = arith.divf %215, %216 : vector<2x128xf32>
    %218 = arith.select %63, %212, %217 : vector<2x128xi1>, vector<2x128xf32>
    %219 = vector.extract_strided_slice %218 {offsets = [0, 0], sizes = [2, 32], strides = [1, 1]} : vector<2x128xf32> to vector<2x32xf32>
    %220 = vector.extract_strided_slice %218 {offsets = [0, 32], sizes = [2, 32], strides = [1, 1]} : vector<2x128xf32> to vector<2x32xf32>
    %221 = vector.extract_strided_slice %218 {offsets = [0, 64], sizes = [2, 32], strides = [1, 1]} : vector<2x128xf32> to vector<2x32xf32>
    %222 = vector.extract_strided_slice %218 {offsets = [0, 96], sizes = [2, 32], strides = [1, 1]} : vector<2x128xf32> to vector<2x32xf32>
    %223 = arith.mulf %220, %185 : vector<2x32xf32>
    %224 = arith.mulf %219, %221 : vector<2x32xf32>
    %225 = arith.addf %223, %224 : vector<2x32xf32>
    %226 = math.tanh %225 : vector<2x32xf32>
    %227 = arith.mulf %222, %226 : vector<2x32xf32>
    %228 = arith.addf %28, %211 : vector<2x128xf32>
    %229 = math.tanh %228 : vector<2x128xf32>
    %230 = arith.negf %228 : vector<2x128xf32>
    %231 = math.exp %230 : vector<2x128xf32>
    %cst_60 = arith.constant 1.000000e+00 : f32
    %232 = vector.broadcast %cst_60 : f32 to vector<2x128xf32>
    %233 = arith.addf %232, %231 : vector<2x128xf32>
    %234 = arith.divf %232, %233 : vector<2x128xf32>
    %235 = arith.select %63, %229, %234 : vector<2x128xi1>, vector<2x128xf32>
    %236 = vector.extract_strided_slice %235 {offsets = [0, 0], sizes = [2, 32], strides = [1, 1]} : vector<2x128xf32> to vector<2x32xf32>
    %237 = vector.extract_strided_slice %235 {offsets = [0, 32], sizes = [2, 32], strides = [1, 1]} : vector<2x128xf32> to vector<2x32xf32>
    %238 = vector.extract_strided_slice %235 {offsets = [0, 64], sizes = [2, 32], strides = [1, 1]} : vector<2x128xf32> to vector<2x32xf32>
    %239 = vector.extract_strided_slice %235 {offsets = [0, 96], sizes = [2, 32], strides = [1, 1]} : vector<2x128xf32> to vector<2x32xf32>
    %240 = arith.mulf %237, %202 : vector<2x32xf32>
    %241 = arith.mulf %236, %238 : vector<2x32xf32>
    %242 = arith.addf %240, %241 : vector<2x32xf32>
    %243 = math.tanh %242 : vector<2x32xf32>
    %244 = arith.mulf %239, %243 : vector<2x32xf32>
    %cst_61 = arith.constant dense<0.000000e+00> : vector<2x256xf32>
    %245 = tpu.matmul %244, %55, %cst_61 {dimension_numbers = #tpu.dot_dimension_numbers<[1], [0], [0], [1], [0, 0, 1, 1], [], []>} : vector<2x32xf32>, vector<32x256xf32>, vector<2x256xf32> -> vector<2x256xf32>
    %246 = vector.extract_strided_slice %245 {offsets = [0, 0], sizes = [2, 128], strides = [1, 1]} : vector<2x256xf32> to vector<2x128xf32>
    %cst_62 = arith.constant dense<0.000000e+00> : vector<2x128xf32>
    %247 = tpu.matmul %227, %56, %cst_62 {dimension_numbers = #tpu.dot_dimension_numbers<[1], [0], [0], [1], [0, 0, 1, 1], [], []>} : vector<2x32xf32>, vector<32x128xf32>, vector<2x128xf32> -> vector<2x128xf32>
    %248 = arith.addf %246, %247 : vector<2x128xf32>
    %249 = vector.broadcast %57 : vector<1x128xf32> to vector<2x128xf32>
    %250 = arith.addf %248, %249 : vector<2x128xf32>
    %251 = vector.extract_strided_slice %245 {offsets = [0, 128], sizes = [2, 128], strides = [1, 1]} : vector<2x256xf32> to vector<2x128xf32>
    %252 = math.tanh %250 : vector<2x128xf32>
    %253 = arith.negf %250 : vector<2x128xf32>
    %254 = math.exp %253 : vector<2x128xf32>
    %cst_63 = arith.constant 1.000000e+00 : f32
    %255 = vector.broadcast %cst_63 : f32 to vector<2x128xf32>
    %256 = arith.addf %255, %254 : vector<2x128xf32>
    %257 = arith.divf %255, %256 : vector<2x128xf32>
    %258 = arith.select %63, %252, %257 : vector<2x128xi1>, vector<2x128xf32>
    %259 = vector.extract_strided_slice %258 {offsets = [0, 0], sizes = [2, 32], strides = [1, 1]} : vector<2x128xf32> to vector<2x32xf32>
    %260 = vector.extract_strided_slice %258 {offsets = [0, 32], sizes = [2, 32], strides = [1, 1]} : vector<2x128xf32> to vector<2x32xf32>
    %261 = vector.extract_strided_slice %258 {offsets = [0, 64], sizes = [2, 32], strides = [1, 1]} : vector<2x128xf32> to vector<2x32xf32>
    %262 = vector.extract_strided_slice %258 {offsets = [0, 96], sizes = [2, 32], strides = [1, 1]} : vector<2x128xf32> to vector<2x32xf32>
    %263 = arith.mulf %260, %225 : vector<2x32xf32>
    %264 = arith.mulf %259, %261 : vector<2x32xf32>
    %265 = arith.addf %263, %264 : vector<2x32xf32>
    %266 = math.tanh %265 : vector<2x32xf32>
    %267 = arith.mulf %262, %266 : vector<2x32xf32>
    %268 = arith.addf %30, %251 : vector<2x128xf32>
    %269 = math.tanh %268 : vector<2x128xf32>
    %270 = arith.negf %268 : vector<2x128xf32>
    %271 = math.exp %270 : vector<2x128xf32>
    %cst_64 = arith.constant 1.000000e+00 : f32
    %272 = vector.broadcast %cst_64 : f32 to vector<2x128xf32>
    %273 = arith.addf %272, %271 : vector<2x128xf32>
    %274 = arith.divf %272, %273 : vector<2x128xf32>
    %275 = arith.select %63, %269, %274 : vector<2x128xi1>, vector<2x128xf32>
    %276 = vector.extract_strided_slice %275 {offsets = [0, 0], sizes = [2, 32], strides = [1, 1]} : vector<2x128xf32> to vector<2x32xf32>
    %277 = vector.extract_strided_slice %275 {offsets = [0, 32], sizes = [2, 32], strides = [1, 1]} : vector<2x128xf32> to vector<2x32xf32>
    %278 = vector.extract_strided_slice %275 {offsets = [0, 64], sizes = [2, 32], strides = [1, 1]} : vector<2x128xf32> to vector<2x32xf32>
    %279 = vector.extract_strided_slice %275 {offsets = [0, 96], sizes = [2, 32], strides = [1, 1]} : vector<2x128xf32> to vector<2x32xf32>
    %280 = arith.mulf %277, %242 : vector<2x32xf32>
    %281 = arith.mulf %276, %278 : vector<2x32xf32>
    %282 = arith.addf %280, %281 : vector<2x32xf32>
    %283 = math.tanh %282 : vector<2x32xf32>
    %284 = arith.mulf %279, %283 : vector<2x32xf32>
    %cst_65 = arith.constant dense<0.000000e+00> : vector<2x256xf32>
    %285 = tpu.matmul %284, %55, %cst_65 {dimension_numbers = #tpu.dot_dimension_numbers<[1], [0], [0], [1], [0, 0, 1, 1], [], []>} : vector<2x32xf32>, vector<32x256xf32>, vector<2x256xf32> -> vector<2x256xf32>
    %286 = vector.extract_strided_slice %285 {offsets = [0, 0], sizes = [2, 128], strides = [1, 1]} : vector<2x256xf32> to vector<2x128xf32>
    %cst_66 = arith.constant dense<0.000000e+00> : vector<2x128xf32>
    %287 = tpu.matmul %267, %56, %cst_66 {dimension_numbers = #tpu.dot_dimension_numbers<[1], [0], [0], [1], [0, 0, 1, 1], [], []>} : vector<2x32xf32>, vector<32x128xf32>, vector<2x128xf32> -> vector<2x128xf32>
    %288 = arith.addf %286, %287 : vector<2x128xf32>
    %289 = vector.broadcast %57 : vector<1x128xf32> to vector<2x128xf32>
    %290 = arith.addf %288, %289 : vector<2x128xf32>
    %291 = vector.extract_strided_slice %285 {offsets = [0, 128], sizes = [2, 128], strides = [1, 1]} : vector<2x256xf32> to vector<2x128xf32>
    %292 = math.tanh %290 : vector<2x128xf32>
    %293 = arith.negf %290 : vector<2x128xf32>
    %294 = math.exp %293 : vector<2x128xf32>
    %cst_67 = arith.constant 1.000000e+00 : f32
    %295 = vector.broadcast %cst_67 : f32 to vector<2x128xf32>
    %296 = arith.addf %295, %294 : vector<2x128xf32>
    %297 = arith.divf %295, %296 : vector<2x128xf32>
    %298 = arith.select %63, %292, %297 : vector<2x128xi1>, vector<2x128xf32>
    %299 = vector.extract_strided_slice %298 {offsets = [0, 0], sizes = [2, 32], strides = [1, 1]} : vector<2x128xf32> to vector<2x32xf32>
    %300 = vector.extract_strided_slice %298 {offsets = [0, 32], sizes = [2, 32], strides = [1, 1]} : vector<2x128xf32> to vector<2x32xf32>
    %301 = vector.extract_strided_slice %298 {offsets = [0, 64], sizes = [2, 32], strides = [1, 1]} : vector<2x128xf32> to vector<2x32xf32>
    %302 = vector.extract_strided_slice %298 {offsets = [0, 96], sizes = [2, 32], strides = [1, 1]} : vector<2x128xf32> to vector<2x32xf32>
    %303 = arith.mulf %300, %265 : vector<2x32xf32>
    %304 = arith.mulf %299, %301 : vector<2x32xf32>
    %305 = arith.addf %303, %304 : vector<2x32xf32>
    %306 = math.tanh %305 : vector<2x32xf32>
    %307 = arith.mulf %302, %306 : vector<2x32xf32>
    %308 = arith.addf %32, %291 : vector<2x128xf32>
    %309 = math.tanh %308 : vector<2x128xf32>
    %310 = arith.negf %308 : vector<2x128xf32>
    %311 = math.exp %310 : vector<2x128xf32>
    %cst_68 = arith.constant 1.000000e+00 : f32
    %312 = vector.broadcast %cst_68 : f32 to vector<2x128xf32>
    %313 = arith.addf %312, %311 : vector<2x128xf32>
    %314 = arith.divf %312, %313 : vector<2x128xf32>
    %315 = arith.select %63, %309, %314 : vector<2x128xi1>, vector<2x128xf32>
    %316 = vector.extract_strided_slice %315 {offsets = [0, 0], sizes = [2, 32], strides = [1, 1]} : vector<2x128xf32> to vector<2x32xf32>
    %317 = vector.extract_strided_slice %315 {offsets = [0, 32], sizes = [2, 32], strides = [1, 1]} : vector<2x128xf32> to vector<2x32xf32>
    %318 = vector.extract_strided_slice %315 {offsets = [0, 64], sizes = [2, 32], strides = [1, 1]} : vector<2x128xf32> to vector<2x32xf32>
    %319 = vector.extract_strided_slice %315 {offsets = [0, 96], sizes = [2, 32], strides = [1, 1]} : vector<2x128xf32> to vector<2x32xf32>
    %320 = arith.mulf %317, %282 : vector<2x32xf32>
    %321 = arith.mulf %316, %318 : vector<2x32xf32>
    %322 = arith.addf %320, %321 : vector<2x32xf32>
    %323 = math.tanh %322 : vector<2x32xf32>
    %324 = arith.mulf %319, %323 : vector<2x32xf32>
    %cst_69 = arith.constant dense<0.000000e+00> : vector<2x256xf32>
    %325 = tpu.matmul %324, %55, %cst_69 {dimension_numbers = #tpu.dot_dimension_numbers<[1], [0], [0], [1], [0, 0, 1, 1], [], []>} : vector<2x32xf32>, vector<32x256xf32>, vector<2x256xf32> -> vector<2x256xf32>
    %326 = vector.extract_strided_slice %325 {offsets = [0, 0], sizes = [2, 128], strides = [1, 1]} : vector<2x256xf32> to vector<2x128xf32>
    %cst_70 = arith.constant dense<0.000000e+00> : vector<2x128xf32>
    %327 = tpu.matmul %307, %56, %cst_70 {dimension_numbers = #tpu.dot_dimension_numbers<[1], [0], [0], [1], [0, 0, 1, 1], [], []>} : vector<2x32xf32>, vector<32x128xf32>, vector<2x128xf32> -> vector<2x128xf32>
    %328 = arith.addf %326, %327 : vector<2x128xf32>
    %329 = vector.broadcast %57 : vector<1x128xf32> to vector<2x128xf32>
    %330 = arith.addf %328, %329 : vector<2x128xf32>
    %331 = vector.extract_strided_slice %325 {offsets = [0, 128], sizes = [2, 128], strides = [1, 1]} : vector<2x256xf32> to vector<2x128xf32>
    %332 = math.tanh %330 : vector<2x128xf32>
    %333 = arith.negf %330 : vector<2x128xf32>
    %334 = math.exp %333 : vector<2x128xf32>
    %cst_71 = arith.constant 1.000000e+00 : f32
    %335 = vector.broadcast %cst_71 : f32 to vector<2x128xf32>
    %336 = arith.addf %335, %334 : vector<2x128xf32>
    %337 = arith.divf %335, %336 : vector<2x128xf32>
    %338 = arith.select %63, %332, %337 : vector<2x128xi1>, vector<2x128xf32>
    %339 = vector.extract_strided_slice %338 {offsets = [0, 0], sizes = [2, 32], strides = [1, 1]} : vector<2x128xf32> to vector<2x32xf32>
    %340 = vector.extract_strided_slice %338 {offsets = [0, 32], sizes = [2, 32], strides = [1, 1]} : vector<2x128xf32> to vector<2x32xf32>
    %341 = vector.extract_strided_slice %338 {offsets = [0, 64], sizes = [2, 32], strides = [1, 1]} : vector<2x128xf32> to vector<2x32xf32>
    %342 = vector.extract_strided_slice %338 {offsets = [0, 96], sizes = [2, 32], strides = [1, 1]} : vector<2x128xf32> to vector<2x32xf32>
    %343 = arith.mulf %340, %305 : vector<2x32xf32>
    %344 = arith.mulf %339, %341 : vector<2x32xf32>
    %345 = arith.addf %343, %344 : vector<2x32xf32>
    %346 = math.tanh %345 : vector<2x32xf32>
    %347 = arith.mulf %342, %346 : vector<2x32xf32>
    %348 = arith.addf %34, %331 : vector<2x128xf32>
    %349 = math.tanh %348 : vector<2x128xf32>
    %350 = arith.negf %348 : vector<2x128xf32>
    %351 = math.exp %350 : vector<2x128xf32>
    %cst_72 = arith.constant 1.000000e+00 : f32
    %352 = vector.broadcast %cst_72 : f32 to vector<2x128xf32>
    %353 = arith.addf %352, %351 : vector<2x128xf32>
    %354 = arith.divf %352, %353 : vector<2x128xf32>
    %355 = arith.select %63, %349, %354 : vector<2x128xi1>, vector<2x128xf32>
    %356 = vector.extract_strided_slice %355 {offsets = [0, 0], sizes = [2, 32], strides = [1, 1]} : vector<2x128xf32> to vector<2x32xf32>
    %357 = vector.extract_strided_slice %355 {offsets = [0, 32], sizes = [2, 32], strides = [1, 1]} : vector<2x128xf32> to vector<2x32xf32>
    %358 = vector.extract_strided_slice %355 {offsets = [0, 64], sizes = [2, 32], strides = [1, 1]} : vector<2x128xf32> to vector<2x32xf32>
    %359 = vector.extract_strided_slice %355 {offsets = [0, 96], sizes = [2, 32], strides = [1, 1]} : vector<2x128xf32> to vector<2x32xf32>
    %360 = arith.mulf %357, %322 : vector<2x32xf32>
    %361 = arith.mulf %356, %358 : vector<2x32xf32>
    %362 = arith.addf %360, %361 : vector<2x32xf32>
    %363 = math.tanh %362 : vector<2x32xf32>
    %364 = arith.mulf %359, %363 : vector<2x32xf32>
    %cst_73 = arith.constant dense<0.000000e+00> : vector<2x256xf32>
    %365 = tpu.matmul %364, %55, %cst_73 {dimension_numbers = #tpu.dot_dimension_numbers<[1], [0], [0], [1], [0, 0, 1, 1], [], []>} : vector<2x32xf32>, vector<32x256xf32>, vector<2x256xf32> -> vector<2x256xf32>
    %366 = vector.extract_strided_slice %365 {offsets = [0, 0], sizes = [2, 128], strides = [1, 1]} : vector<2x256xf32> to vector<2x128xf32>
    %cst_74 = arith.constant dense<0.000000e+00> : vector<2x128xf32>
    %367 = tpu.matmul %347, %56, %cst_74 {dimension_numbers = #tpu.dot_dimension_numbers<[1], [0], [0], [1], [0, 0, 1, 1], [], []>} : vector<2x32xf32>, vector<32x128xf32>, vector<2x128xf32> -> vector<2x128xf32>
    %368 = arith.addf %366, %367 : vector<2x128xf32>
    %369 = vector.broadcast %57 : vector<1x128xf32> to vector<2x128xf32>
    %370 = arith.addf %368, %369 : vector<2x128xf32>
    %371 = math.tanh %370 : vector<2x128xf32>
    %372 = arith.negf %370 : vector<2x128xf32>
    %373 = math.exp %372 : vector<2x128xf32>
    %cst_75 = arith.constant 1.000000e+00 : f32
    %374 = vector.broadcast %cst_75 : f32 to vector<2x128xf32>
    %375 = arith.addf %374, %373 : vector<2x128xf32>
    %376 = arith.divf %374, %375 : vector<2x128xf32>
    %377 = arith.select %63, %371, %376 : vector<2x128xi1>, vector<2x128xf32>
    %378 = vector.extract_strided_slice %377 {offsets = [0, 0], sizes = [2, 32], strides = [1, 1]} : vector<2x128xf32> to vector<2x32xf32>
    %379 = vector.extract_strided_slice %377 {offsets = [0, 32], sizes = [2, 32], strides = [1, 1]} : vector<2x128xf32> to vector<2x32xf32>
    %380 = vector.extract_strided_slice %377 {offsets = [0, 64], sizes = [2, 32], strides = [1, 1]} : vector<2x128xf32> to vector<2x32xf32>
    %381 = vector.extract_strided_slice %377 {offsets = [0, 96], sizes = [2, 32], strides = [1, 1]} : vector<2x128xf32> to vector<2x32xf32>
    %382 = arith.mulf %379, %345 : vector<2x32xf32>
    %383 = arith.mulf %378, %380 : vector<2x32xf32>
    %384 = arith.addf %382, %383 : vector<2x32xf32>
    %385 = math.tanh %384 : vector<2x32xf32>
    %386 = arith.mulf %381, %385 : vector<2x32xf32>
    %c0_76 = arith.constant 0 : index
    %c0_77 = arith.constant 0 : index
    %c0_78 = arith.constant 0 : index
    %387 = vector.load %arg27[%c0_76, %c0_77, %c0_78] : memref<2x2x32xf32, #tpu.memory_space<vmem>>, vector<1x2x32xf32>
    %388 = vector.shape_cast %387 : vector<1x2x32xf32> to vector<2x32xf32>
    %389 = vector.shape_cast %364 : vector<2x32xf32> to vector<1x2x32xf32>
    tpu.vector_store %arg27[%c0_76, %c0_77, %c0_78], %389 {strides = array<i32>} : memref<2x2x32xf32, #tpu.memory_space<vmem>>, vector<1x2x32xf32>,
    %c1 = arith.constant 1 : index
    %c0_79 = arith.constant 0 : index
    %c0_80 = arith.constant 0 : index
    %390 = vector.load %arg27[%c1, %c0_79, %c0_80] : memref<2x2x32xf32, #tpu.memory_space<vmem>>, vector<1x2x32xf32>
    %391 = vector.shape_cast %390 : vector<1x2x32xf32> to vector<2x32xf32>
    %392 = vector.shape_cast %386 : vector<2x32xf32> to vector<1x2x32xf32>
    tpu.vector_store %arg27[%c1, %c0_79, %c0_80], %392 {strides = array<i32>} : memref<2x2x32xf32, #tpu.memory_space<vmem>>, vector<1x2x32xf32>,
    %c0_81 = arith.constant 0 : index
    %c0_82 = arith.constant 0 : index
    %c0_83 = arith.constant 0 : index
    %393 = vector.load %arg28[%c0_81, %c0_82, %c0_83] : memref<2x2x32xf32, #tpu.memory_space<vmem>>, vector<1x2x32xf32>
    %394 = vector.shape_cast %393 : vector<1x2x32xf32> to vector<2x32xf32>
    %395 = vector.shape_cast %362 : vector<2x32xf32> to vector<1x2x32xf32>
    tpu.vector_store %arg28[%c0_81, %c0_82, %c0_83], %395 {strides = array<i32>} : memref<2x2x32xf32, #tpu.memory_space<vmem>>, vector<1x2x32xf32>,
    %c1_84 = arith.constant 1 : index
    %c0_85 = arith.constant 0 : index
    %c0_86 = arith.constant 0 : index
    %396 = vector.load %arg28[%c1_84, %c0_85, %c0_86] : memref<2x2x32xf32, #tpu.memory_space<vmem>>, vector<1x2x32xf32>
    %397 = vector.shape_cast %396 : vector<1x2x32xf32> to vector<2x32xf32>
    %398 = vector.shape_cast %384 : vector<2x32xf32> to vector<1x2x32xf32>
    tpu.vector_store %arg28[%c1_84, %c0_85, %c0_86], %398 {strides = array<i32>} : memref<2x2x32xf32, #tpu.memory_space<vmem>>, vector<1x2x32xf32>,
    %399 = vector.shape_cast %107 : vector<2x32xf32> to vector<2x1x32xf32>
    %400 = vector.shape_cast %147 : vector<2x32xf32> to vector<2x1x32xf32>
    %401 = vector.shape_cast %187 : vector<2x32xf32> to vector<2x1x32xf32>
    %402 = vector.shape_cast %227 : vector<2x32xf32> to vector<2x1x32xf32>
    %403 = vector.shape_cast %267 : vector<2x32xf32> to vector<2x1x32xf32>
    %404 = vector.shape_cast %307 : vector<2x32xf32> to vector<2x1x32xf32>
    %405 = vector.shape_cast %347 : vector<2x32xf32> to vector<2x1x32xf32>
    %406 = vector.shape_cast %386 : vector<2x32xf32> to vector<2x1x32xf32>
    %407 = tpu.concatenate %399, %400, %401, %402, %403, %404, %405, %406 in 1 : vector<2x1x32xf32>, vector<2x1x32xf32>, vector<2x1x32xf32>, vector<2x1x32xf32>, vector<2x1x32xf32>, vector<2x1x32xf32>, vector<2x1x32xf32>, vector<2x1x32xf32> -> vector<2x8x32xf32>
    %408 = vector.shape_cast %407 : vector<2x8x32xf32> to vector<16x32xf32>
    %c0_87 = arith.constant 0 : index
    %c0_88 = arith.constant 0 : index
    %409 = vector.load %arg12[%c0_87, %c0_88] : memref<32x64xf32, #tpu.memory_space<vmem>>, vector<32x64xf32>
    %cst_89 = arith.constant dense<0.000000e+00> : vector<16x64xf32>
    %410 = tpu.matmul %408, %409, %cst_89 {dimension_numbers = #tpu.dot_dimension_numbers<[1], [0], [0], [1], [0, 0, 1, 1], [], []>} : vector<16x32xf32>, vector<32x64xf32>, vector<16x64xf32> -> vector<16x64xf32>
    %c0_90 = arith.constant 0 : index
    %c0_91 = arith.constant 0 : index
    %411 = vector.load %arg13[%c0_90, %c0_91] : memref<1x64xf32, #tpu.memory_space<vmem>>, vector<1x64xf32>
    %412 = vector.broadcast %411 : vector<1x64xf32> to vector<16x64xf32>
    %413 = arith.addf %410, %412 : vector<16x64xf32>
    %414 = vector.shape_cast %413 : vector<16x64xf32> to vector<2x8x64xf32>
    "tpu.trace_start"() <{level = 10 : i32, message = "bsg,bng->bsn"}> : () -> ()
    %cst_92 = arith.constant dense<0.000000e+00> : vector<2x8x4xf32>
    %415 = tpu.matmul %414, %41, %cst_92 {dimension_numbers = #tpu.dot_dimension_numbers<[2], [2], [1], [1], [0, 0, 0, 1, 1, 1], [0], [0]>} : vector<2x8x64xf32>, vector<2x4x64xf32>, vector<2x8x4xf32> -> vector<2x8x4xf32>
    "tpu.trace_stop"() : () -> ()
    %cst_93 = arith.constant 1.250000e-01 : f32
    %416 = vector.broadcast %cst_93 : f32 to vector<2x8x4xf32>
    %417 = arith.mulf %415, %416 : vector<2x8x4xf32>
    %418 = vector.shape_cast %50 : vector<2x4xi1> to vector<2x1x4xi1>
    %cst_94 = arith.constant -1.000000e+30 : f32
    %419 = vector.shape_cast %418 : vector<2x1x4xi1> to vector<2x1x4xi1>
    %420 = vector.broadcast %419 : vector<2x1x4xi1> to vector<2x8x4xi1>
    %421 = vector.broadcast %cst_94 : f32 to vector<2x8x4xf32>
    %422 = arith.select %420, %417, %421 : vector<2x8x4xi1>, vector<2x8x4xf32>
    %cst_95 = arith.constant dense<0xFF800000> : vector<2x8xf32>
    %423 = vector.multi_reduction <maximumf>, %422, %cst_95 [2] : vector<2x8x4xf32> to vector<2x8xf32>
    %424 = vector.shape_cast %423 : vector<2x8xf32> to vector<2x8x1xf32>
    %425 = vector.broadcast %424 : vector<2x8x1xf32> to vector<2x8x4xf32>
    %426 = arith.subf %422, %425 : vector<2x8x4xf32>
    %427 = math.exp %426 : vector<2x8x4xf32>
    %cst_96 = arith.constant dense<0.000000e+00> : vector<2x8xf32>
    %428 = vector.multi_reduction <add>, %427, %cst_96 [2] : vector<2x8x4xf32> to vector<2x8xf32>
    %429 = vector.shape_cast %428 : vector<2x8xf32> to vector<2x8x1xf32>
    %430 = vector.broadcast %429 : vector<2x8x1xf32> to vector<2x8x4xf32>
    %431 = arith.divf %427, %430 : vector<2x8x4xf32>
    "tpu.trace_start"() <{level = 10 : i32, message = "bsn,bng->bsg"}> : () -> ()
    %cst_97 = arith.constant dense<0.000000e+00> : vector<2x8x64xf32>
    %432 = tpu.matmul %431, %47, %cst_97 {dimension_numbers = #tpu.dot_dimension_numbers<[2], [1], [1], [2], [0, 0, 0, 1, 1, 2], [0], [0]>} : vector<2x8x4xf32>, vector<2x4x64xf32>, vector<2x8x64xf32> -> vector<2x8x64xf32>
    "tpu.trace_stop"() : () -> ()
    %433 = vector.shape_cast %54 : vector<2x1xi1> to vector<2x1x1xi1>
    %cst_98 = arith.constant 0.000000e+00 : f32
    %434 = vector.broadcast %cst_98 : f32 to vector<2x8x64xf32>
    %435 = vector.shape_cast %433 : vector<2x1x1xi1> to vector<2x1x1xi1>
    %436 = vector.broadcast %435 : vector<2x1x1xi1> to vector<2x8x64xi1>
    %437 = arith.select %436, %432, %434 : vector<2x8x64xi1>, vector<2x8x64xf32>
    %cst_99 = arith.constant 0.000000e+00 : f32
    %438 = vector.broadcast %cst_99 : f32 to vector<2x8x32xf32>
    %439 = tpu.concatenate %407, %437, %438 in 2 : vector<2x8x32xf32>, vector<2x8x64xf32>, vector<2x8x32xf32> -> vector<2x8x128xf32>
    %c0_100 = arith.constant 0 : index
    %c0_101 = arith.constant 0 : index
    %c0_102 = arith.constant 0 : index
    %440 = vector.load %arg24[%c0_100, %c0_101, %c0_102] : memref<2x8x128xf32, #tpu.memory_space<vmem>>, vector<2x8x128xf32>
    tpu.vector_store %arg24[%c0_100, %c0_101, %c0_102], %439 {strides = array<i32>} : memref<2x8x128xf32, #tpu.memory_space<vmem>>, vector<2x8x128xf32>,
    %441 = vector.extract_strided_slice %437 {offsets = [0, 7, 0], sizes = [2, 1, 64], strides = [1, 1, 1]} : vector<2x8x64xf32> to vector<2x1x64xf32>
    %442 = vector.shape_cast %441 : vector<2x1x64xf32> to vector<2x64xf32>
    %c0_103 = arith.constant 0 : index
    %c0_104 = arith.constant 0 : index
    %443 = vector.load %arg18[%c0_103, %c0_104] : memref<32x64xf32, #tpu.memory_space<vmem>>, vector<32x64xf32>
    %cst_105 = arith.constant dense<0.000000e+00> : vector<2x64xf32>
    %444 = tpu.matmul %386, %443, %cst_105 {dimension_numbers = #tpu.dot_dimension_numbers<[1], [0], [0], [1], [0, 0, 1, 1], [], []>} : vector<2x32xf32>, vector<32x64xf32>, vector<2x64xf32> -> vector<2x64xf32>
    %c0_106 = arith.constant 0 : index
    %c0_107 = arith.constant 0 : index
    %445 = vector.load %arg19[%c0_106, %c0_107] : memref<64x64xf32, #tpu.memory_space<vmem>>, vector<64x64xf32>
    %cst_108 = arith.constant dense<0.000000e+00> : vector<2x64xf32>
    %446 = tpu.matmul %442, %445, %cst_108 {dimension_numbers = #tpu.dot_dimension_numbers<[1], [0], [0], [1], [0, 0, 1, 1], [], []>} : vector<2x64xf32>, vector<64x64xf32>, vector<2x64xf32> -> vector<2x64xf32>
    %447 = arith.addf %444, %446 : vector<2x64xf32>
    %c0_109 = arith.constant 0 : index
    %c0_110 = arith.constant 0 : index
    %448 = vector.load %arg20[%c0_109, %c0_110] : memref<8x64xf32, #tpu.memory_space<vmem>>, vector<8x64xf32>
    %cst_111 = arith.constant dense<0.000000e+00> : vector<2x64xf32>
    %449 = tpu.matmul %13, %448, %cst_111 {dimension_numbers = #tpu.dot_dimension_numbers<[1], [0], [0], [1], [0, 0, 1, 1], [], []>} : vector<2x8xf32>, vector<8x64xf32>, vector<2x64xf32> -> vector<2x64xf32>
    %450 = arith.addf %447, %449 : vector<2x64xf32>
    %c0_112 = arith.constant 0 : index
    %c0_113 = arith.constant 0 : index
    %451 = vector.load %arg21[%c0_112, %c0_113] : memref<1x64xf32, #tpu.memory_space<vmem>>, vector<1x64xf32>
    %452 = vector.broadcast %451 : vector<1x64xf32> to vector<2x64xf32>
    %453 = arith.addf %450, %452 : vector<2x64xf32>
    %cst_114 = arith.constant 0.000000e+00 : f32
    %454 = vector.broadcast %cst_114 : f32 to vector<2x64xf32>
    %455 = arith.maximumf %453, %454 : vector<2x64xf32>
    %c0_115 = arith.constant 0 : index
    %c0_116 = arith.constant 0 : index
    %456 = vector.load %arg22[%c0_115, %c0_116] : memref<64x15xf32, #tpu.memory_space<vmem>>, vector<64x15xf32>
    %cst_117 = arith.constant dense<0.000000e+00> : vector<2x15xf32>
    %457 = tpu.matmul %455, %456, %cst_117 {dimension_numbers = #tpu.dot_dimension_numbers<[1], [0], [0], [1], [0, 0, 1, 1], [], []>} : vector<2x64xf32>, vector<64x15xf32>, vector<2x15xf32> -> vector<2x15xf32>
    %c0_118 = arith.constant 0 : index
    %c0_119 = arith.constant 0 : index
    %458 = vector.load %arg23[%c0_118, %c0_119] : memref<1x15xf32, #tpu.memory_space<vmem>>, vector<1x15xf32>
    %459 = vector.broadcast %458 : vector<1x15xf32> to vector<2x15xf32>
    %460 = arith.addf %457, %459 : vector<2x15xf32>
    %461 = vector.extract_strided_slice %460 {offsets = [0, 0], sizes = [2, 10], strides = [1, 1]} : vector<2x15xf32> to vector<2x10xf32>
    %c0_120 = arith.constant 0 : index
    %c0_121 = arith.constant 0 : index
    %462 = vector.load %arg25[%c0_120, %c0_121] : memref<2x10xf32, #tpu.memory_space<vmem>>, vector<2x10xf32>
    tpu.vector_store %arg25[%c0_120, %c0_121], %461 {strides = array<i32>} : memref<2x10xf32, #tpu.memory_space<vmem>>, vector<2x10xf32>,
    %463 = vector.extract_strided_slice %460 {offsets = [0, 10], sizes = [2, 5], strides = [1, 1]} : vector<2x15xf32> to vector<2x5xf32>
    %c0_122 = arith.constant 0 : index
    %c0_123 = arith.constant 0 : index
    %464 = vector.load %arg26[%c0_122, %c0_123] : memref<2x5xf32, #tpu.memory_space<vmem>>, vector<2x5xf32>
    tpu.vector_store %arg26[%c0_122, %c0_123], %463 {strides = array<i32>} : memref<2x5xf32, #tpu.memory_space<vmem>>, vector<2x5xf32>,
    return
  }
}

</mosaic_0001>

<bundles_post_ra>
// kernel: tpu_custom_call.1
= control target key start
LH: loop header
LB: loop body
LE: loop exit
PB: predicated region body
PF: predicated region fallthrough
CT: control target
= control target key end

     0   :  { %s6073_s0 = inlined_call_operand.hbm [shape: f32[16,16], index: 0, kind: input, shape index: {}]   ;;  %s6074_s1 = inlined_call_operand.hbm [shape: f32[2,8], index: 1, kind: input, shape index: {}]   ;;  %s6075_s2 = inlined_call_operand.hbm [shape: f32[8,32], index: 2, kind: input, shape index: {}]   ;;  %s6076_s3 = inlined_call_operand.hbm [shape: f32[2,4], index: 3, kind: input, shape index: {}]   ;;  %s6077_s4 = inlined_call_operand.hbm [shape: f32[16,64], index: 4, kind: input, shape index: {}]   ;;  %s6078_s5 = inlined_call_operand.hbm [shape: f32[1,64], index: 5, kind: input, shape index: {}]   ;;  %s6079_s6 = inlined_call_operand.vmem [shape: f32[64,128], index: 6, kind: input, shape index: {}]   ;;  %s6080_s7 = inlined_call_operand.hbm [shape: f32[8,128], index: 7, kind: input, shape index: {}]   ;;  %s6081_s8 = inlined_call_operand.hbm [shape: f32[1,128], index: 8, kind: input, shape index: {}]   ;;  %s6082_s9 = inlined_call_operand.hbm [shape: f32[32,256], index: 9, kind: input, shape index: {}]   ;;  %s6083_s10 = inlined_call_operand.hbm [shape: f32[32,128], index: 10, kind: input, shape index: {}]   ;;  %s6084_s11 = inlined_call_operand.hbm [shape: f32[1,128], index: 11, kind: input, shape index: {}]   ;;  %s6085_s12 = inlined_call_operand.hbm [shape: f32[32,64], index: 12, kind: input, shape index: {}]   ;;  %s6086_s13 = inlined_call_operand.hbm [shape: f32[1,64], index: 13, kind: input, shape index: {}]   ;;  %s6087_s14 = inlined_call_operand.hbm [shape: f32[32,64], index: 14, kind: input, shape index: {}]   ;;  %s6088_s15 = inlined_call_operand.hbm [shape: f32[1,64], index: 15, kind: input, shape index: {}]   ;;  %s6089_s16 = inlined_call_operand.hbm [shape: f32[32,64], index: 16, kind: input, shape index: {}]   ;;  %s6090_s17 = inlined_call_operand.hbm [shape: f32[1,64], index: 17, kind: input, shape index: {}]   ;;  %s6091_s18 = inlined_call_operand.hbm [shape: f32[32,64], index: 18, kind: input, shape index: {}]   ;;  %s6092_s19 = inlined_call_operand.vmem [shape: f32[64,64], index: 19, kind: input, shape index: {}]   ;;  %s6093_s20 = inlined_call_operand.vmem [shape: f32[8,64], index: 20, kind: input, shape index: {}]   ;;  %s6094_s21 = inlined_call_operand.vmem [shape: f32[1,64], index: 21, kind: input, shape index: {}]   ;;  %s6095_s22 = inlined_call_operand.vmem [shape: f32[64,15], index: 22, kind: input, shape index: {}]   ;;  %s6096_s23 = inlined_call_operand.vmem [shape: f32[1,15], index: 23, kind: input, shape index: {}]   ;;  %s6097_s24 = inlined_call_operand.hbm [shape: f32[2,8,128], index: 24, kind: output, shape index: {0}]   ;;  %s6098_s25 = inlined_call_operand.hbm [shape: f32[2,10], index: 25, kind: output, shape index: {1}]   ;;  %s6099_s26 = inlined_call_operand.hbm [shape: f32[2,5], index: 26, kind: output, shape index: {2}]   ;;  %s6100_s27 = inlined_call_operand.hbm [shape: f32[2,2,32], index: 27, kind: output, shape index: {3}]   ;;  %s6101_s28 = inlined_call_operand.hbm [shape: f32[2,2,32], index: 28, kind: output, shape index: {4}]  }
   0x1   :  { %6119 = sst [smem:[#allocation51_spill]] %s6073_s0 }
   0x2   :  { %6120 = sst [smem:[#allocation52_spill]] %s6074_s1 }
   0x3   :  { %6121 = sst [smem:[#allocation53_spill]] %s6075_s2 }
   0x4   :  { %6122 = sst [smem:[#allocation54_spill]] %s6076_s3 }
   0x5   :  { %6123 = sst [smem:[#allocation55_spill]] %s6077_s4 }
   0x6   :  { %6124 = sst [smem:[#allocation56_spill]] %s6078_s5 }
   0x7   :  { %6125 = sst [smem:[#allocation57_spill]] %s6079_s6 }
   0x8   :  { %6126 = sst [smem:[#allocation58_spill]] %s6080_s7 }
   0x9   :  { %6127 = sst [smem:[#allocation59_spill]] %s6081_s8 }
   0xa   :  { %6128 = sst [smem:[#allocation60_spill]] %s6082_s9 }
   0xb   :  { %6129 = sst [smem:[#allocation61_spill]] %s6083_s10 }
   0xc   :  { %6130 = sst [smem:[#allocation62_spill]] %s6084_s11 }
   0xd   :  { %6131 = sst [smem:[#allocation63_spill]] %s6085_s12 }
   0xe   :  { %6132 = sst [smem:[#allocation64_spill]] %s6098_s25 }
   0xf   :  { %6133 = sst [smem:[#allocation65_spill]] %s6099_s26 }
  0x10   :  { %34 = vsyncpa [#allocation3], 0 }
  0x11   :  { %35 = vsyncpa [#allocation6], 0 }
  0x12   :  { %36 = vsyncpa [#allocation9], 0 }
  0x13   :  { %37 = vsyncpa [#allocation12], 0 }
  0x14   :  { %38 = vsyncpa [#allocation15], 0 }
  0x15   :  { %39 = vsyncpa [#allocation18], 0 }
  0x16   :  { %40 = vsyncpa [#allocation21], 0 }
  0x17   :  { %41 = vsyncpa [#allocation24], 0 }
  0x18   :  { %42 = vsyncpa [#allocation27], 0 }
  0x19   :  { %43 = vsyncpa [#allocation30], 0 }
  0x1a   :  { %44 = vsyncpa [#allocation4], 0 }
  0x1b   :  { %45 = vsyncpa [#allocation33], 0 }
  0x1c   :  { %46 = vsyncpa [#allocation36], 0  ;;  %s4959_s8 = smov [#allocation5]   ;;  %s4960_s9 = smov [#allocation8]  }
  0x1d   :  { %s65_s5 = sshll.u32 %s4959_s8, 4  ;;  %s85_s30 = sshll.u32 %s4960_s9, 4  ;;  %s66_s5 = int_to_ptr.vmem [resolvable:$true] %s65_s5  ;;  %s86_s30 = int_to_ptr.vmem [resolvable:$true] %s85_s30 }
  0x1e   :  { %s6134_s10 = sld [smem:[#allocation52_spill]] }
  0x24   :  { %s4427_s0 = scalar_lea.hbm %s6134_s10, 32 }
  0x25   :  { %p4428_p0 = scmp.ne.s32.totalorder %s6134_s10, %s4427_s0  ;;  %p4431_p1 = scmp.lt.u32.totalorder %s4427_s0, %s6134_s10 }
  0x27   :  { %p4433_p2 = pnand %p4431_p1, %p4428_p0 }
  0x29   :  { %4436 = shalt.err (!%p4433_p2)
}
  0x2a   :  { %s4437_s12 = scalar_lea.vmem %s66_s5, 32  ;;  %p4442_p4 = scmp.lt.s32.totalorder %s66_s5, %s66_s5 }
  0x2b   :  { %p4438_p3 = scmp.ne.s32.totalorder %s66_s5, %s4437_s12  ;;  %p4443_p5 = scmp.lt.s32.totalorder %s4437_s12, %s4437_s12 }
  0x2d   :  { %p4444_p6 = por %p4443_p5, %p4442_p4 }
  0x2f   :  { %p4445_p7 = pnand %p4444_p6, %p4438_p3 }
  0x31   :  { %4448 = shalt.err (!%p4445_p7)
}
  0x32   :  { %68 = dma.hbm_to_vmem [thread:$0]  %s6134_s10, 32, %s66_s5, [#allocation6]  }
  0x33   :  { %s6135_s3 = sld [smem:[#allocation54_spill]] }
  0x39   :  { %s4449_s6 = scalar_lea.hbm %s6135_s3, 32 }
  0x3a   :  { %p4450_p8 = scmp.ne.s32.totalorder %s6135_s3, %s4449_s6  ;;  %p4453_p9 = scmp.lt.u32.totalorder %s4449_s6, %s6135_s3 }
  0x3c   :  { %p4455_p10 = pnand %p4453_p9, %p4450_p8 }
  0x3e   :  { %4458 = shalt.err (!%p4455_p10)
}
  0x3f   :  { %s4459_s7 = scalar_lea.vmem %s86_s30, 32  ;;  %p4464_p12 = scmp.lt.s32.totalorder %s86_s30, %s86_s30 }
  0x40   :  { %p4460_p11 = scmp.ne.s32.totalorder %s86_s30, %s4459_s7  ;;  %p4465_p13 = scmp.lt.s32.totalorder %s4459_s7, %s4459_s7 }
  0x42   :  { %p4466_p0 = por %p4465_p13, %p4464_p12 }
  0x44   :  { %p4467_p1 = pnand %p4466_p0, %p4460_p11 }
  0x46   :  { %4470 = shalt.err (!%p4467_p1)
}
  0x47   :  { %88 = dma.hbm_to_vmem [thread:$0]  %s6135_s3, 32, %s86_s30, [#allocation9]  }
  0x48   :  { %s4961_s12 = smov [#allocation11]   ;;  %s4962_s4 = smov [#allocation14]  }
  0x49   :  { %s107_s1 = sshll.u32 %s4961_s12, 4  ;;  %s129_s8 = sshll.u32 %s4962_s4, 4  ;;  %s108_s1 = int_to_ptr.vmem [resolvable:$true] %s107_s1  ;;  %s130_s8 = int_to_ptr.vmem [resolvable:$true] %s129_s8 }
  0x4a   :  { %s6136_s11 = sld [smem:[#allocation56_spill]] }
  0x50   :  { %s4471_s29 = scalar_lea.hbm %s6136_s11, 16 }
  0x51   :  { %p4472_p2 = scmp.ne.s32.totalorder %s6136_s11, %s4471_s29  ;;  %p4475_p3 = scmp.lt.u32.totalorder %s4471_s29, %s6136_s11 }
  0x53   :  { %p4477_p4 = pnand %p4475_p3, %p4472_p2 }
  0x55   :  { %4480 = shalt.err (!%p4477_p4)
}
  0x56   :  { %s4481_s30 = scalar_lea.vmem %s108_s1, 16  ;;  %s4485_s3 = scalar_lea.vmem %s108_s1, 32 }
  0x57   :  { %p4482_p5 = scmp.ne.s32.totalorder %s108_s1, %s4481_s30  ;;  %p4486_p6 = scmp.lt.s32.totalorder %s108_s1, %s108_s1 }
  0x58   :  { %p4487_p7 = scmp.lt.s32.totalorder %s4485_s3, %s4481_s30 }
  0x5a   :  { %p4488_p8 = por %p4487_p7, %p4486_p6 }
  0x5c   :  { %p4489_p9 = pnand %p4488_p8, %p4482_p5 }
  0x5e   :  { %4492 = shalt.err (!%p4489_p9)
}
  0x5f   :  { %110 = dma.hbm_to_vmem [thread:$0]  %s6136_s11, 16, %s108_s1, [#allocation12]  }
  0x60   :  { %s6137_s9 = sld [smem:[#allocation59_spill]] }
  0x66   :  { %s4493_s6 = scalar_lea.hbm %s6137_s9, 16 }
  0x67   :  { %p4494_p10 = scmp.ne.s32.totalorder %s6137_s9, %s4493_s6  ;;  %p4497_p11 = scmp.lt.u32.totalorder %s4493_s6, %s6137_s9 }
  0x69   :  { %p4499_p12 = pnand %p4497_p11, %p4494_p10 }
  0x6b   :  { %4502 = shalt.err (!%p4499_p12)
}
  0x6c   :  { %s4503_s7 = scalar_lea.vmem %s130_s8, 16  ;;  %s4507_s30 = scalar_lea.vmem %s130_s8, 32 }
  0x6d   :  { %p4504_p13 = scmp.ne.s32.totalorder %s130_s8, %s4503_s7  ;;  %p4508_p0 = scmp.lt.s32.totalorder %s130_s8, %s130_s8 }
  0x6e   :  { %p4509_p1 = scmp.lt.s32.totalorder %s4507_s30, %s4503_s7 }
  0x70   :  { %p4510_p2 = por %p4509_p1, %p4508_p0 }
  0x72   :  { %p4511_p3 = pnand %p4510_p2, %p4504_p13 }
  0x74   :  { %4514 = shalt.err (!%p4511_p3)
}
  0x75   :  { %132 = dma.hbm_to_vmem [thread:$0]  %s6137_s9, 16, %s130_s8, [#allocation15]  }
  0x76   :  { %s4963_s3 = smov [#allocation17]   ;;  %s4964_s10 = smov [#allocation20]  }
  0x77   :  { %s150_s5 = sshll.u32 %s4963_s3, 4  ;;  %s172_s12 = sshll.u32 %s4964_s10, 4  ;;  %s151_s5 = int_to_ptr.vmem [resolvable:$true] %s150_s5  ;;  %s5189_s12 = int_to_ptr.vmem [resolvable:$true] %s172_s12 }
  0x78   :  { %s6138_s26 = sld [smem:[#allocation61_spill]] }
  0x7e   :  { %s4515_s29 = scalar_lea.hbm %s6138_s26, 512 }
  0x7f   :  { %p4516_p4 = scmp.ne.s32.totalorder %s6138_s26, %s4515_s29  ;;  %p4519_p5 = scmp.lt.u32.totalorder %s4515_s29, %s6138_s26 }
  0x81   :  { %p4521_p6 = pnand %p4519_p5, %p4516_p4 }
  0x83   :  { %4524 = shalt.err (!%p4521_p6)
}
  0x84   :  { %s4525_s8 = scalar_lea.vmem %s151_s5, 512  ;;  %p4530_p8 = scmp.lt.s32.totalorder %s151_s5, %s151_s5 }
  0x85   :  { %p4526_p7 = scmp.ne.s32.totalorder %s151_s5, %s4525_s8  ;;  %p4531_p9 = scmp.lt.s32.totalorder %s4525_s8, %s4525_s8 }
  0x87   :  { %p4532_p10 = por %p4531_p9, %p4530_p8 }
  0x89   :  { %p4533_p11 = pnand %p4532_p10, %p4526_p7 }
  0x8b   :  { %4536 = shalt.err (!%p4533_p11)
}
  0x8c   :  { %s6117_s9 = smov 128   ;;  %s4966_s1 = smov 8  }
  0x8d   :  { %156 = dma.hbm_to_vmem [thread:$0]  %s6138_s26, 512, %s151_s5, [#allocation18], %s6117_s9, %s6117_s9, %s4966_s1  }
  0x8e   :  { %s6139_s6 = sld [smem:[#allocation63_spill]] }
  0x94   :  { %s4537_s29 = scalar_lea.hbm %s6139_s6, 512 }
  0x95   :  { %p4538_p12 = scmp.ne.s32.totalorder %s6139_s6, %s4537_s29  ;;  %p4541_p13 = scmp.lt.u32.totalorder %s4537_s29, %s6139_s6 }
  0x97   :  { %p4543_p0 = pnand %p4541_p13, %p4538_p12 }
  0x99   :  { %4546 = shalt.err (!%p4543_p0)
}
  0x9a   :  { %s4547_s8 = scalar_lea.vmem %s5189_s12, 512  ;;  %p4552_p2 = scmp.lt.s32.totalorder %s5189_s12, %s5189_s12 }
  0x9b   :  { %p4548_p1 = scmp.ne.s32.totalorder %s5189_s12, %s4547_s8  ;;  %p4553_p3 = scmp.lt.s32.totalorder %s4547_s8, %s4547_s8 }
  0x9d   :  { %p4554_p4 = por %p4553_p3, %p4552_p2 }
  0x9f   :  { %p4555_p5 = pnand %p4554_p4, %p4548_p1 }
  0xa1   :  { %4558 = shalt.err (!%p4555_p5)
}
  0xa2   :  { %178 = dma.hbm_to_vmem [thread:$0]  %s6139_s6, 512, %s5189_s12, [#allocation21], %s6117_s9, %s6117_s9, %s4966_s1  }
  0xa3   :  { %s4967_s11 = smov [#allocation23]   ;;  %s4968_s10 = smov [#allocation26]  }
  0xa4   :  { %s194_s3 = sshll.u32 %s4967_s11, 4  ;;  %s216_s4 = sshll.u32 %s4968_s10, 4  ;;  %s195_s3 = int_to_ptr.vmem [resolvable:$true] %s194_s3  ;;  %s5226_s4 = int_to_ptr.vmem [resolvable:$true] %s216_s4 }
  0xa5   :  { %s4559_s2 = scalar_lea.hbm %s6087_s14, 512 }
  0xa6   :  { %p4560_p6 = scmp.ne.s32.totalorder %s6087_s14, %s4559_s2  ;;  %p4563_p7 = scmp.lt.u32.totalorder %s4559_s2, %s6087_s14 }
  0xa8   :  { %p4565_p8 = pnand %p4563_p7, %p4560_p6 }
  0xaa   :  { %4568 = shalt.err (!%p4565_p8)
}
  0xab   :  { %s4569_s12 = scalar_lea.vmem %s195_s3, 512  ;;  %p4574_p10 = scmp.lt.s32.totalorder %s195_s3, %s195_s3 }
  0xac   :  { %p4570_p9 = scmp.ne.s32.totalorder %s195_s3, %s4569_s12  ;;  %p4575_p11 = scmp.lt.s32.totalorder %s4569_s12, %s4569_s12 }
  0xae   :  { %p4576_p12 = por %p4575_p11, %p4574_p10 }
  0xb0   :  { %p4577_p13 = pnand %p4576_p12, %p4570_p9 }
  0xb2   :  { %4580 = shalt.err (!%p4577_p13)
}
  0xb3   :  { %200 = dma.hbm_to_vmem [thread:$0]  %s6087_s14, 512, %s195_s3, [#allocation24], %s6117_s9, %s6117_s9, %s4966_s1  }
  0xb4   :  { %s4581_s25 = scalar_lea.hbm %s6089_s16, 512 }
  0xb5   :  { %p4582_p0 = scmp.ne.s32.totalorder %s6089_s16, %s4581_s25  ;;  %p4585_p1 = scmp.lt.u32.totalorder %s4581_s25, %s6089_s16 }
  0xb7   :  { %p4587_p2 = pnand %p4585_p1, %p4582_p0 }
  0xb9   :  { %4590 = shalt.err (!%p4587_p2)
}
  0xba   :  { %s4591_s7 = scalar_lea.vmem %s5226_s4, 512  ;;  %p4596_p4 = scmp.lt.s32.totalorder %s5226_s4, %s5226_s4 }
  0xbb   :  { %p4592_p3 = scmp.ne.s32.totalorder %s5226_s4, %s4591_s7  ;;  %p4597_p5 = scmp.lt.s32.totalorder %s4591_s7, %s4591_s7 }
  0xbd   :  { %p4598_p6 = por %p4597_p5, %p4596_p4 }
  0xbf   :  { %p4599_p7 = pnand %p4598_p6, %p4592_p3 }
  0xc1   :  { %4602 = shalt.err (!%p4599_p7)
}
  0xc2   :  { %222 = dma.hbm_to_vmem [thread:$0]  %s6089_s16, 512, %s5226_s4, [#allocation27], %s6117_s9, %s6117_s9, %s4966_s1  }
  0xc3   :  { %s4969_s30 = smov [#allocation2]   ;;  %s4970_s12 = smov [#allocation7]  }
  0xc4   :  { %s52_s8 = sshll.u32 %s4969_s30, 4  ;;  %s75_s6 = sshll.u32 %s4970_s12, 4  ;;  %s53_s8 = int_to_ptr.vmem [resolvable:$true] %s52_s8  ;;  %s76_s6 = int_to_ptr.vmem [resolvable:$true] %s75_s6 }
  0xc5   :  { %s6140_s11 = sld [smem:[#allocation51_spill]] }
  0xcb   :  { %s4603_s25 = scalar_lea.hbm %s6140_s11, 256 }
  0xcc   :  { %p4604_p8 = scmp.ne.s32.totalorder %s6140_s11, %s4603_s25  ;;  %p4607_p9 = scmp.lt.u32.totalorder %s4603_s25, %s6140_s11 }
  0xce   :  { %p4609_p10 = pnand %p4607_p9, %p4604_p8 }
  0xd0   :  { %4612 = shalt.err (!%p4609_p10)
}
  0xd1   :  { %s4613_s16 = scalar_lea.vmem %s53_s8, 256  ;;  %p4618_p12 = scmp.lt.s32.totalorder %s53_s8, %s53_s8 }
  0xd2   :  { %p4614_p11 = scmp.ne.s32.totalorder %s53_s8, %s4613_s16  ;;  %p4619_p13 = scmp.lt.s32.totalorder %s4613_s16, %s4613_s16 }
  0xd4   :  { %p4620_p0 = por %p4619_p13, %p4618_p12 }
  0xd6   :  { %p4621_p1 = pnand %p4620_p0, %p4614_p11 }
  0xd8   :  { %4624 = shalt.err (!%p4621_p1)
}
  0xd9   :  { %58 = dma.hbm_to_vmem [thread:$0]  %s6140_s11, 256, %s53_s8, [#allocation3], %s6117_s9, %s6117_s9, %s4966_s1  }
  0xda   :  { %s6141_s30 = sld [smem:[#allocation53_spill]] }
  0xe0   :  { %s4625_s12 = scalar_lea.hbm %s6141_s30, 128 }
  0xe1   :  { %p4626_p2 = scmp.ne.s32.totalorder %s6141_s30, %s4625_s12  ;;  %p4629_p3 = scmp.lt.u32.totalorder %s4625_s12, %s6141_s30 }
  0xe3   :  { %p4631_p4 = pnand %p4629_p3, %p4626_p2 }
  0xe5   :  { %4634 = shalt.err (!%p4631_p4)
}
  0xe6   :  { %s4635_s29 = scalar_lea.vmem %s76_s6, 128  ;;  %p4640_p6 = scmp.lt.s32.totalorder %s76_s6, %s76_s6 }
  0xe7   :  { %p4636_p5 = scmp.ne.s32.totalorder %s76_s6, %s4635_s29  ;;  %p4641_p7 = scmp.lt.s32.totalorder %s4635_s29, %s4635_s29 }
  0xe9   :  { %p4642_p8 = por %p4641_p7, %p4640_p6 }
  0xeb   :  { %p4643_p9 = pnand %p4642_p8, %p4636_p5 }
  0xed   :  { %4646 = shalt.err (!%p4643_p9)
}
  0xee   :  { %78 = dma.hbm_to_vmem [thread:$0]  %s6141_s30, 128, %s76_s6, [#allocation6]  }
  0xef   :  { %s4971_s0 = smov [#allocation10]   ;;  %s4972_s16 = smov [#allocation13]  }
  0xf0   :  { %s94_s2 = sshll.u32 %s4971_s0, 4  ;;  %s119_s4 = sshll.u32 %s4972_s16, 4  ;;  %s95_s2 = int_to_ptr.vmem [resolvable:$true] %s94_s2  ;;  %s120_s4 = int_to_ptr.vmem [resolvable:$true] %s119_s4 }
  0xf1   :  { %s6142_s3 = sld [smem:[#allocation55_spill]] }
  0xf7   :  { %s4647_s12 = scalar_lea.hbm %s6142_s3, 256 }
  0xf8   :  { %p4648_p10 = scmp.ne.s32.totalorder %s6142_s3, %s4647_s12  ;;  %p4651_p11 = scmp.lt.u32.totalorder %s4647_s12, %s6142_s3 }
  0xfa   :  { %p4653_p12 = pnand %p4651_p11, %p4648_p10 }
  0xfc   :  { %4656 = shalt.err (!%p4653_p12)
}
  0xfd   :  { %s4657_s6 = scalar_lea.vmem %s95_s2, 256  ;;  %p4662_p0 = scmp.lt.s32.totalorder %s95_s2, %s95_s2 }
  0xfe   :  { %p4658_p13 = scmp.ne.s32.totalorder %s95_s2, %s4657_s6  ;;  %p4663_p1 = scmp.lt.s32.totalorder %s4657_s6, %s4657_s6 }
 0x100   :  { %p4664_p2 = por %p4663_p1, %p4662_p0 }
 0x102   :  { %p4665_p3 = pnand %p4664_p2, %p4658_p13 }
 0x104   :  { %4668 = shalt.err (!%p4665_p3)
}
 0x105   :  { %100 = dma.hbm_to_vmem [thread:$0]  %s6142_s3, 256, %s95_s2, [#allocation9], %s6117_s9, %s6117_s9, %s4966_s1  }
 0x106   :  { %s6143_s0 = sld [smem:[#allocation58_spill]] }
 0x10c   :  { %s4669_s16 = scalar_lea.hbm %s6143_s0, 128 }
 0x10d   :  { %p4670_p4 = scmp.ne.s32.totalorder %s6143_s0, %s4669_s16  ;;  %p4673_p5 = scmp.lt.u32.totalorder %s4669_s16, %s6143_s0 }
 0x10f   :  { %p4675_p6 = pnand %p4673_p5, %p4670_p4 }
 0x111   :  { %4678 = shalt.err (!%p4675_p6)
}
 0x112   :  { %s4679_s26 = scalar_lea.vmem %s120_s4, 128  ;;  %p4684_p8 = scmp.lt.s32.totalorder %s120_s4, %s120_s4 }
 0x113   :  { %p4680_p7 = scmp.ne.s32.totalorder %s120_s4, %s4679_s26  ;;  %p4685_p9 = scmp.lt.s32.totalorder %s4679_s26, %s4679_s26 }
 0x115   :  { %p4686_p10 = por %p4685_p9, %p4684_p8 }
 0x117   :  { %p4687_p11 = pnand %p4686_p10, %p4680_p7 }
 0x119   :  { %4690 = shalt.err (!%p4687_p11)
}
 0x11a   :  { %122 = dma.hbm_to_vmem [thread:$0]  %s6143_s0, 128, %s120_s4, [#allocation12]  }
 0x11b   :  { %s4973_s25 = smov [#allocation16]   ;;  %s6144_s29 = sld [smem:[#allocation60_spill]] }
 0x11c   :  { %s138_s10 = sshll.u32 %s4973_s25, 4  ;;  %s139_s10 = int_to_ptr.vmem [resolvable:$true] %s138_s10 }
 0x121   :  { %s4691_s8 = scalar_lea.hbm %s6144_s29, 1024 }
 0x122   :  { %p4692_p12 = scmp.ne.s32.totalorder %s6144_s29, %s4691_s8  ;;  %p4695_p13 = scmp.lt.u32.totalorder %s4691_s8, %s6144_s29 }
 0x124   :  { %p4697_p0 = pnand %p4695_p13, %p4692_p12 }
 0x126   :  { %4700 = shalt.err (!%p4697_p0)
}
 0x127   :  { %s4701_s12 = scalar_lea.vmem %s139_s10, 1024  ;;  %p4706_p2 = scmp.lt.s32.totalorder %s139_s10, %s139_s10 }
 0x128   :  { %p4702_p1 = scmp.ne.s32.totalorder %s139_s10, %s4701_s12  ;;  %p4707_p3 = scmp.lt.s32.totalorder %s4701_s12, %s4701_s12 }
 0x12a   :  { %p4708_p4 = por %p4707_p3, %p4706_p2 }
 0x12c   :  { %p4709_p5 = pnand %p4708_p4, %p4702_p1 }
 0x12e   :  { %4712 = shalt.err (!%p4709_p5)
}
 0x12f   :  { %s4974_s4 = smov 256   ;;  %s4975_s0 = smov 16  }
 0x130   :  { %144 = dma.hbm_to_vmem [thread:$0]  %s6144_s29, 1024, %s139_s10, [#allocation15], %s4974_s4, %s4974_s4, %s4975_s0  }
 0x131   :  { %s4976_s2 = smov [#allocation19]   ;;  %s4977_s25 = smov [#allocation22]  }
 0x132   :  { %s163_s3 = sshll.u32 %s4976_s2, 4  ;;  %s185_s6 = sshll.u32 %s4977_s25, 4  ;;  %s164_s3 = int_to_ptr.vmem [resolvable:$true] %s163_s3  ;;  %s186_s6 = int_to_ptr.vmem [resolvable:$true] %s185_s6 }
 0x133   :  { %s6145_s11 = sld [smem:[#allocation62_spill]] }
 0x139   :  { %s4713_s16 = scalar_lea.hbm %s6145_s11, 16 }
 0x13a   :  { %p4714_p6 = scmp.ne.s32.totalorder %s6145_s11, %s4713_s16  ;;  %p4717_p7 = scmp.lt.u32.totalorder %s4713_s16, %s6145_s11 }
 0x13c   :  { %p4719_p8 = pnand %p4717_p7, %p4714_p6 }
 0x13e   :  { %4722 = shalt.err (!%p4719_p8)
}
 0x13f   :  { %s4723_s10 = scalar_lea.vmem %s164_s3, 16  ;;  %s4727_s29 = scalar_lea.vmem %s164_s3, 32 }
 0x140   :  { %p4724_p9 = scmp.ne.s32.totalorder %s164_s3, %s4723_s10  ;;  %p4728_p10 = scmp.lt.s32.totalorder %s164_s3, %s164_s3 }
 0x141   :  { %p4729_p11 = scmp.lt.s32.totalorder %s4727_s29, %s4723_s10 }
 0x143   :  { %p4730_p12 = por %p4729_p11, %p4728_p10 }
 0x145   :  { %p4731_p13 = pnand %p4730_p12, %p4724_p9 }
 0x147   :  { %4734 = shalt.err (!%p4731_p13)
}
 0x148   :  { %166 = dma.hbm_to_vmem [thread:$0]  %s6145_s11, 16, %s164_s3, [#allocation18]  }
 0x149   :  { %s4735_s9 = scalar_lea.hbm %s6086_s13, 16 }
 0x14a   :  { %p4736_p0 = scmp.ne.s32.totalorder %s6086_s13, %s4735_s9  ;;  %p4739_p1 = scmp.lt.u32.totalorder %s4735_s9, %s6086_s13 }
 0x14c   :  { %p4741_p2 = pnand %p4739_p1, %p4736_p0 }
 0x14e   :  { %4744 = shalt.err (!%p4741_p2)
}
 0x14f   :  { %s4745_s16 = scalar_lea.vmem %s186_s6, 16  ;;  %s4749_s7 = scalar_lea.vmem %s186_s6, 32 }
 0x150   :  { %p4746_p3 = scmp.ne.s32.totalorder %s186_s6, %s4745_s16  ;;  %p4750_p4 = scmp.lt.s32.totalorder %s186_s6, %s186_s6 }
 0x151   :  { %p4751_p5 = scmp.lt.s32.totalorder %s4749_s7, %s4745_s16 }
 0x153   :  { %p4752_p6 = por %p4751_p5, %p4750_p4 }
 0x155   :  { %p4753_p7 = pnand %p4752_p6, %p4746_p3 }
 0x157   :  { %4756 = shalt.err (!%p4753_p7)
}
 0x158   :  { %188 = dma.hbm_to_vmem [thread:$0]  %s6086_s13, 16, %s186_s6, [#allocation21]  }
 0x159   :  { %s4978_s14 = smov [#allocation25]   ;;  %s4979_s10 = smov [#allocation28]  }
 0x15a   :  { %s207_s12 = sshll.u32 %s4978_s14, 4  ;;  %s229_s29 = sshll.u32 %s4979_s10, 4  ;;  %s208_s12 = int_to_ptr.vmem [resolvable:$true] %s207_s12  ;;  %s230_s29 = int_to_ptr.vmem [resolvable:$true] %s229_s29 }
 0x15b   :  { %s4757_s5 = scalar_lea.hbm %s6088_s15, 16 }
 0x15c   :  { %p4758_p8 = scmp.ne.s32.totalorder %s6088_s15, %s4757_s5  ;;  %p4761_p9 = scmp.lt.u32.totalorder %s4757_s5, %s6088_s15 }
 0x15e   :  { %p4763_p10 = pnand %p4761_p9, %p4758_p8 }
 0x160   :  { %4766 = shalt.err (!%p4763_p10)
}
 0x161   :  { %s4767_s13 = scalar_lea.vmem %s208_s12, 16  ;;  %s4771_s6 = scalar_lea.vmem %s208_s12, 32 }
 0x162   :  { %p4768_p11 = scmp.ne.s32.totalorder %s208_s12, %s4767_s13  ;;  %p4772_p12 = scmp.lt.s32.totalorder %s208_s12, %s208_s12 }
 0x163   :  { %p4773_p13 = scmp.lt.s32.totalorder %s4771_s6, %s4767_s13 }
 0x165   :  { %p4774_p0 = por %p4773_p13, %p4772_p12 }
 0x167   :  { %p4775_p1 = pnand %p4774_p0, %p4768_p11 }
 0x169   :  { %4778 = shalt.err (!%p4775_p1)
}
 0x16a   :  { %210 = dma.hbm_to_vmem [thread:$0]  %s6088_s15, 16, %s208_s12, [#allocation24]  }
 0x16b   :  { %s4779_s3 = scalar_lea.hbm %s6090_s17, 16 }
 0x16c   :  { %p4780_p2 = scmp.ne.s32.totalorder %s6090_s17, %s4779_s3  ;;  %p4783_p3 = scmp.lt.u32.totalorder %s4779_s3, %s6090_s17 }
 0x16e   :  { %p4785_p4 = pnand %p4783_p3, %p4780_p2 }
 0x170   :  { %4788 = shalt.err (!%p4785_p4)
}
 0x171   :  { %s4789_s0 = scalar_lea.vmem %s230_s29, 16  ;;  %s4793_s5 = scalar_lea.vmem %s230_s29, 32 }
 0x172   :  { %p4790_p5 = scmp.ne.s32.totalorder %s230_s29, %s4789_s0  ;;  %p4794_p6 = scmp.lt.s32.totalorder %s230_s29, %s230_s29 }
 0x173   :  { %p4795_p7 = scmp.lt.s32.totalorder %s4793_s5, %s4789_s0 }
 0x175   :  { %p4796_p8 = por %p4795_p7, %p4794_p6 }
 0x177   :  { %p4797_p9 = pnand %p4796_p8, %p4790_p5 }
 0x179   :  { %4800 = shalt.err (!%p4797_p9)
}
 0x17a   :  { %232 = dma.hbm_to_vmem [thread:$0]  %s6090_s17, 16, %s230_s29, [#allocation27]  }
 0x17b   :  { %s4980_s26 = smov [#allocation29]   ;;  %s4801_s13 = scalar_lea.hbm %s6091_s18, 512 }
 0x17c   :  { %s238_s9 = sshll.u32 %s4980_s26, 4  ;;  %p4802_p10 = scmp.ne.s32.totalorder %s6091_s18, %s4801_s13  ;;  %s239_s9 = int_to_ptr.vmem [resolvable:$true] %s238_s9 }
 0x17d   :  { %p4805_p11 = scmp.lt.u32.totalorder %s4801_s13, %s6091_s18 }
 0x17f   :  { %p4807_p12 = pnand %p4805_p11, %p4802_p10 }
 0x181   :  { %4810 = shalt.err (!%p4807_p12)
}
 0x182   :  { %s4811_s7 = scalar_lea.vmem %s239_s9, 512  ;;  %p4816_p0 = scmp.lt.s32.totalorder %s239_s9, %s239_s9 }
 0x183   :  { %p4812_p13 = scmp.ne.s32.totalorder %s239_s9, %s4811_s7  ;;  %p4817_p1 = scmp.lt.s32.totalorder %s4811_s7, %s4811_s7 }
 0x185   :  { %p4818_p2 = por %p4817_p1, %p4816_p0 }
 0x187   :  { %p4819_p3 = pnand %p4818_p2, %p4812_p13 }
 0x189   :  { %4822 = shalt.err (!%p4819_p3)
}
 0x18a   :  { %s6146_s17 = smov 128  }
 0x18b   :  { %244 = dma.hbm_to_vmem [thread:$0]  %s6091_s18, 512, %s239_s9, [#allocation30], %s6146_s17, %s6146_s17, %s4966_s1  }
 0x18c   :  { %4933 = dma.done.wait [#allocation3], 256  }
 0x18d   :  { %4934 = vsyncadd [#allocation3], 4294967040 }
 0x18e   :  { %4935 = dma.done.wait [#allocation6], 160  }
 0x18f   :  { %4936 = vsyncadd [#allocation6], 4294967136 }
 0x190   :  { %4937 = dma.done.wait [#allocation9], 288  }
 0x191   :  { %4938 = vsyncadd [#allocation9], 4294967008 }
 0x192   :  { %4939 = dma.done.wait [#allocation12], 144  }
 0x193   :  { %4940 = vsyncadd [#allocation12], 4294967152 }
 0x194   :  { %4941 = dma.done.wait [#allocation15], 1040  }
 0x195   :  { %4942 = vsyncadd [#allocation15], 4294966256 }
 0x196   :  { %4943 = dma.done.wait [#allocation18], 528  }
 0x197   :  { %4944 = vsyncadd [#allocation18], 4294966768 }
 0x198   :  { %4945 = dma.done.wait [#allocation21], 528  }
 0x199   :  { %4946 = vsyncadd [#allocation21], 4294966768 }
 0x19a   :  { %4947 = dma.done.wait [#allocation24], 528  }
 0x19b   :  { %4948 = vsyncadd [#allocation24], 4294966768 }
 0x19c   :  { %4949 = dma.done.wait [#allocation27], 528  }
 0x19d   :  { %4950 = vsyncadd [#allocation27], 4294966768 }
 0x19e   :  { %4951 = dma.done.wait [#allocation30], 512  }
 0x19f   :  { %4952 = vsyncadd [#allocation30], 4294966784  ;;  %v315_v0 = vld [vmem:[#allocation10] sm:$0xff]  ;;  %v316_v1 = vld [vmem:[#allocation10 + $0x8] sm:$0xff]  ;;  %vm324_vm0 = vcmask 130048   ;;  %s6147_s14 = sld [smem:[#allocation57_spill]]  ;;  %v787_v44 = vlaneseq }
 0x1a0   :  { %v309_v2 = vld [vmem:[#allocation2] sm:$0xff]  ;;  %v4070_v3 = vpack.c.bf16 %v316_v1, %v315_v0  ;;  %v310_v4 = vld [vmem:[#allocation2 + $0x8] sm:$0xff]  ;;  %v4981_v18 = vmov 0.0   ;;  %vm4982_vm3 = vmmov 0   ;;  %v498_v21 = vld [vmem:[#allocation5] sm:$0x3] }
 0x1a1   :  { %vm311_vm1 = vcmp.ne.f32.partialorder %v309_v2, %v309_v2  ;;  %vm312_vm2 = vcmp.ne.f32.partialorder %v310_v4, %v310_v4  ;;  %v499_v19 = vld [vmem:[#allocation13] sm:$0xff]  ;;  %vm507_vm4 = vcmask 64512   ;;  %v3679_v22 = vld [vmem:[#allocation11] ss:$0 sm:$0xff]  ;;  %vm416_vm5 = vcmask 523264   ;;  %s4983_s16 = smov 64  }
 0x1a2   :  { %v313_v7 = vsel %vm311_vm1, 0.0, %v309_v2  ;;  %4071 = vmatprep.subr.bf16.mxu0 %v4070_v3  ;;  %v314_v14 = vsel %vm312_vm2, 0.0, %v310_v4  ;;  %v3684_v31 = vld [vmem:[#allocation14] ss:$0 sm:$0xff]  ;;  %v788_v46 = vand.u32 127, %v787_v44  ;;  %s4984_s7 = smov 32  }
 0x1a3   :  { %3848 = vmatprep.mubr.msk.f32.mxu0 %vm324_vm0, %v313_v7  ;;  %4073 = vmatpush3.bf16.msra.mxu0 %v4070_v3  ;;  %v597_v56 = vld [vmem:[#allocation23] sm:$0xff]  ;;  %v598_v57 = vld [vmem:[#allocation23 + $0x8] sm:$0xff]  ;;  %v599_v58 = vld [vmem:[#allocation23 + $0x10] sm:$0xff]  ;;  %v4985_v59 = vmov 0.0|0.0   ;;  %vm608_vm9 = vcmask 261120   ;;  %vm2743_vm10 = vcmask 1040384  }
 0x1a4   :  { %3870 = vmatprep.subr.mxu0 %v4981_v18  ;;  %vm789_vm6 = vcmp.ge.s32.totalorder %v788_v46, 64  ;;  %vm790_vm7 = vcmp.lt.s32.totalorder %v788_v46, 96  ;;  %v4091_v60 = vpack.c.bf16 %v598_v57, %v597_v56  ;;  %v600_v61 = vld [vmem:[#allocation23 + $0x18] sm:$0xff]  ;;  %v684_v62 = vld [vmem:[#allocation26] sm:$0xff]  ;;  %v685_v63 = vld [vmem:[#allocation26 + $0x8] sm:$0xff]  ;;  %vm2746_vm11 = vcmask 1041408  }
 0x1a5   :  { %v408_v5 = vld [vmem:[%s6147_s14] sm:$0xff]  ;;  %v409_v6 = vld [vmem:[%s6147_s14 + $0x8] sm:$0xff]  ;;  %v410_v9 = vld [vmem:[%s6147_s14 + $0x10] sm:$0xff]  ;;  %v4094_v0 = vpack.c.bf16 %v600_v61, %v599_v58  ;;  %vm2749_vm12 = vcmask 1042432   ;;  %vm2752_vm13 = vcmask 1043456   ;;  %vm2755_vm14 = vcmask 1044480  }
 0x1a6   :  { %v4074_v8 = vpack.c.bf16 %v409_v6, %v408_v5  ;;  %v411_v10 = vld [vmem:[%s6147_s14 + $0x18] sm:$0xff]  ;;  %v412_v12 = vld [vmem:[%s6147_s14 + $0x20] sm:$0xff]  ;;  %v413_v13 = vld [vmem:[%s6147_s14 + $0x28] sm:$0xff]  ;;  %3849 = vmatmul.mubr.msk.f32.vlgmr.msra.gmra.mrb[0].mxu0 %vm324_vm0, %v314_v14  ;;  %vm2758_vm15 = vcmask 1045504   ;;  %vm2761_vm0 = vcmask 1046528   ;;  %s4988_s29 = smov 96  }
 0x1a7   :  { %v4078_v11 = vpack.c.bf16 %v411_v10, %v410_v9  ;;  %v4082_v15 = vpack.c.bf16 %v413_v13, %v412_v12  ;;  %v414_v16 = vld [vmem:[%s6147_s14 + $0x30] sm:$0xff]  ;;  %v415_v17 = vld [vmem:[%s6147_s14 + $0x38] sm:$0xff]  ;;  %3871 = vmatpush3.msra.mxu0 %v499_v19  ;;  %3872 = vmatprep.mubr.msk.f32.mxu0 %vm4982_vm3, %v4981_v18  ;;  %vm5454_vm8 = vmand %vm789_vm6, %vm790_vm7  ;;  %s4989_s25 = smov [#allocation35]  }
 0x1a8   :  { %4075 = vmatprep.subr.bf16.mxu1 %v4074_v8  ;;  %v4086_v20 = vpack.c.bf16 %v415_v17, %v414_v16  ;;  %4090 = vmatprep.subr.bf16.mxu0 %v4985_v59  ;;  %v775_v1 = vld [vmem:[#allocation16 + $0x8] sm:$0xff]  ;;  %v777_v2 = vld [vmem:[#allocation16 + $0x18] sm:$0xff]  ;;  %v774_v3 = vld [vmem:[#allocation16] sm:$0xff]  ;;  %s3632_s13 = sshll.u32 %s4989_s25, 4  ;;  %s3633_s13 = int_to_ptr.vmem [resolvable:$true] %s3632_s13 }
 0x1a9   :  { %4077 = vmatpush3.bf16.msra.mxu1 %v4074_v8  ;;  %v5472_v4 = vpack.c.bf16 %v777_v2, %v775_v1  ;;  %v776_v5 = vld [vmem:[#allocation16 + $0x10] sm:$0xff]  ;;  %v779_v6 = vld [vmem:[#allocation16 + $0x28] sm:$0xff]  ;;  %v781_v7 = vld [vmem:[#allocation16 + $0x38] sm:$0xff]  ;;  %s4823_s6 = scalar_lea.vmem %s3633_s13, 64  ;;  %p4828_p5 = scmp.lt.s32.totalorder %s3633_s13, %s3633_s13 }
 0x1aa   :  { %4079 = vmatprep.subr.bf16.mxu1 %v4078_v11  ;;  %3873 = vmatmul.mubr.msk.f32.vlgmr.msra.gmra.mrb[2].mxu0 %vm507_vm4, %v498_v21  ;;  %v5474_v8 = vpack.c.bf16 %v776_v5, %v774_v3  ;;  %v5476_v9 = vpack.c.bf16 %v781_v7, %v779_v6  ;;  %v596_v10 = vld [vmem:[#allocation7] sm:$0xff]  ;;  %p4824_p4 = scmp.ne.s32.totalorder %s3633_s13, %s4823_s6  ;;  %p4829_p6 = scmp.lt.s32.totalorder %s4823_s6, %s4823_s6 }
 0x1ab   :  { %3883 = vmatprep.mubr.msk.f32.mxu0 %vm4982_vm3, %v4981_v18  ;;  %4092 = vmatpush3.bf16.msra.mxu0 %v4091_v60  ;;  %v686_v12 = vld [vmem:[#allocation26 + $0x10] sm:$0xff]  ;;  %v687_v13 = vld [vmem:[#allocation26 + $0x18] sm:$0xff] }
 0x1ac   :  { %4093 = vmatprep.subr.bf16.mxu0 %v4985_v59  ;;  %v778_v14 = vld [vmem:[#allocation16 + $0x20] sm:$0xff]  ;;  %v4100_v17 = vpack.c.bf16 %v687_v13, %v686_v12  ;;  %p4830_p7 = por %p4829_p6, %p4828_p5 }
 0x1ad   :  { %4081 = vmatpush3.bf16.msra.mxu1 %v4078_v11  ;;  %v4097_v11 = vpack.c.bf16 %v685_v63, %v684_v62 }
 0x1ae   :  { %4083 = vmatprep.subr.bf16.mxu1 %v4082_v15  ;;  %p4831_p8 = pnand %p4830_p7, %p4824_p4 }
 0x1af   :  { %4095 = vmatpush3.bf16.msra.mxu0 %v4094_v0 }
 0x1b0   :  { %4096 = vmatprep.subr.bf16.mxu0 %v4985_v59 }
 0x1b1   :  { %4085 = vmatpush3.bf16.msra.mxu1 %v4082_v15  ;;  %v780_v15 = vld [vmem:[#allocation16 + $0x30] sm:$0xff] }
 0x1b2   :  { %4087 = vmatprep.subr.bf16.mxu1 %v4086_v20  ;;  %3884 = vmatmul.mubr.msk.f32.vlgmr.msra.gmra.mrb[4].mxu0 %vm608_vm9, %v596_v10  ;;  %v5484_v19 = vpack.c.bf16 %v780_v15, %v778_v14 }
 0x1b3   :  { %4098 = vmatpush3.bf16.msra.mxu0 %v4097_v11  ;;  %3894 = vmatprep.mubr.msk.f32.mxu0 %vm4982_vm3, %v4981_v18 }
 0x1b4   :  { %4099 = vmatprep.subr.bf16.mxu0 %v4985_v59 }
 0x1b5   :  { %4089 = vmatpush3.bf16.msra.mxu1 %v4086_v20 }
 0x1b6   :  { %4117 = vmatprep.subr.bf16.mxu1 %v5472_v4 }
 0x1b7   :  { %4101 = vmatpush3.bf16.msra.mxu0 %v4100_v17 }
 0x1b8   :  { %4103 = vmatprep.subr.bf16.mxu0 %v5472_v4 }
 0x1ba   :  { %3895 = vmatmul.mubr.msk.f32.vlgmr.msra.gmra.mrb[6].mxu0 %vm608_vm9, %v596_v10 }
 0x1bb   :  { %4105 = vmatpush1.bf16.msra.mxu0 %v5474_v8  ;;  %887 = vmatprep.mubr.f32.mxu0 %v4981_v18 }
 0x1bc   :  { %4107 = vmatprep.subr.bf16.mxu0 %v5476_v9 }
 0x1bf   :  { %4109 = vmatpush1.bf16.msra.mxu0 %v5484_v19 }
 0x1c0   :  { %4110 = vmatprep.subr.bf16.mxu0 %v4985_v59 }
 0x279   :  { %v3850_v23 = vpop.f32.mrb[0].mxu0 }
 0x27a   :  { %v403_v24 = vadd.f32 %v3850_v23, %v3679_v22  ;;  %v397_v25 = vpop.f32.mrb[1].mxu0 }
 0x27b   :  { %v398_v26 = vadd.f32 %v3679_v22, %v397_v25 }
 0x27c   :  { %v407_v28 = vmax.f32 %v403_v24, 0.0 }
 0x27d   :  { %v406_v27 = vmax.f32 %v398_v26, 0.0  ;;  %v577_v29 = vpop.f32.mrb[2].mxu0  ;;  %v782_v26 = vld [vmem:[#allocation17] sm:$0xff] }
 0x27e   :  { %v3874_v30 = vpop.f32.mrb[3].mxu0  ;;  %v5427_v32 = vadd.f32 %v3684_v31, %v577_v29  ;;  %v784_v29 = vld [vmem:[#allocation17 + $0x10] sm:$0xff] }
 0x27f   :  { %3867 = vmatprep.mubr.msk.f32.mxu1 %vm416_vm5, %v406_v27  ;;  %v783_v27 = vld [vmem:[#allocation17 + $0x8] sm:$0xff]  ;;  %v785_v30 = vld [vmem:[#allocation17 + $0x18] sm:$0xff] }
 0x280   :  { %3868 = vmatmul.mubr.msk.f32.vlgmr.msra.gmra.mrb[0].mxu1 %vm416_vm5, %v407_v28  ;;  %v583_v33 = vrot.slane %v5427_v32, 6  ;;  %v586_v34 = vrot.slane %v5427_v32, 4  ;;  %v589_v35 = vrot.slane %v5427_v32, 2  ;;  %v5504_v28 = vpack.c.bf16 %v783_v27, %v782_v26 }
 0x281   :  { %1102 = vmatprep.mubr.f32.mxu1 %v4981_v18  ;;  %4119 = vmatpush1.bf16.msra.mxu1 %v5474_v8 }
 0x282   :  { %4121 = vmatprep.subr.bf16.mxu1 %v5476_v9 }
 0x285   :  { %4123 = vmatpush1.bf16.msra.mxu1 %v5484_v19  ;;  %v5500_v22 = vpop.f32.mrb[4].mxu0 }
 0x286   :  { %4131 = vmatprep.subr.bf16.mxu1 %v5472_v4  ;;  %v3885_v23 = vpop.f32.mrb[5].mxu0 }
 0x28d   :  { %v5502_v24 = vpop.f32.mrb[6].mxu0 }
 0x28e   :  { %v3896_v25 = vpop.f32.mrb[7].mxu0 }
 0x353   :  { %v5432_v36 = vpop.f32.mrb[0].mxu1 }
 0x354   :  { %v5434_v37 = vpop.f32.mrb[1].mxu1  ;;  %v5439_v38 = vadd.f32 %v5432_v36, %v583_v33  ;;  %v5444_v39 = vadd.f32 %v5432_v36, %v586_v34  ;;  %v5449_v40 = vadd.f32 %v5432_v36, %v589_v35 }
 0x355   :  { %v581_v41 = vadd.f32 %v5427_v32, %v5434_v37 }
 0x357   :  { %v3690_v42 = vmul.f32 -1.442695, %v581_v41 }
 0x359   :  { %4289 = vpow2.f32 %v3690_v42 }
 0x35a   :  { %4291 = vtanh.f32 %v581_v41  ;;  %v5508_v41 = vpack.c.bf16 %v785_v30, %v784_v29 }
 0x363   :  { %v4290_v43 = vpop.eup %4289 }
 0x364   :  { %v797_v45 = vadd.f32 1.0, %v4290_v43  ;;  %v4292_v48 = vpop.eup %4291 }
 0x366   :  { %4293 = vrcp.f32 %v797_v45  ;;  %v585_v45 = vadd.f32 %v583_v33, %v5434_v37 }
 0x370   :  { %v4294_v49 = vpop.eup %4293 }
 0x371   :  { %v5460_v50 = vsel %vm5454_vm8, %v4292_v48, %v4294_v49 }
 0x372   :  { %803 = vrot.lane.b32.xlu0 %v5460_v50, %s4983_s16  ;;  %v801_v53 = vmul.f32 0.0, %v5460_v50 }
 0x3e4   :  { %v804_v51 = vpop.permute.xlu0 %803 }
 0x3e5   :  { %v806_v52 = vmul.f32 %v804_v51, %v5460_v50 }
 0x3e7   :  { %808 = vrot.lane.b32.xlu0 %v806_v52, %s4984_s7 }
 0x459   :  { %v809_v54 = vpop.permute.xlu0 %808 }
 0x45a   :  { %v5467_v55 = vadd.f32 %v809_v54, %v801_v53 }
 0x45c   :  { %4295 = vtanh.f32 %v5467_v55  ;;  %v1013_v10 = vrot.slane %v5467_v55, 6 }
 0x466   :  { %v4296_v16 = vpop.eup %4295 }
 0x467   :  { %814 = vrot.lane.b32.xlu1 %v4296_v16, %s4983_s16 }
 0x4d9   :  { %v815_v20 = vpop.permute.xlu1 %814 }
 0x4da   :  { %v817_v21 = vmul.f32 %v815_v20, %v5460_v50  ;;  %v5525_v50 = vld [vmem:[#allocation19] ss:$0 sm:$0xff] }
 0x4dc   :  { %819 = vrot.lane.b32.xlu1 %v817_v21, %s4984_s7 }
 0x54e   :  { %v820_v31 = vpop.permute.xlu1 %819 }
 0x54f   :  { %3691 = vmatmul.mubr.msk.f32.vlgmr.msra.gmra.mrb[8].mxu0 %vm608_vm9, %v820_v31 }
 0x550   :  { %4112 = vmatpush3.bf16.msra.mxu0 %v5504_v28  ;;  %3905 = vmatprep.mubr.msk.f32.mxu0 %vm4982_vm3, %v4981_v18 }
 0x551   :  { %4113 = vmatprep.subr.bf16.mxu0 %v4985_v59 }
 0x554   :  { %4115 = vmatpush3.bf16.msra.mxu0 %v5508_v41 }
 0x555   :  { %4124 = vmatprep.subr.bf16.mxu0 %v4985_v59 }
 0x557   :  { %3906 = vmatmul.mubr.f32.vlgmr.msra.gmra.mrb[10].mxu0 %v4981_v18 }
 0x558   :  { %4126 = vmatpush3.bf16.msra.mxu0 %v5504_v28  ;;  %3916 = vmatprep.mubr.msk.f32.mxu0 %vm4982_vm3, %v4981_v18 }
 0x559   :  { %4127 = vmatprep.subr.bf16.mxu0 %v4985_v59 }
 0x55c   :  { %4129 = vmatpush3.bf16.msra.mxu0 %v5508_v41 }
 0x55d   :  { %4138 = vmatprep.subr.bf16.mxu0 %v4985_v59 }
 0x622   :  { %v889_v42 = vpop.f32.mrb[8].mxu0 }
 0x623   :  { %v891_v43 = vpop.f32.mrb[9].mxu0 }
 0x624   :  { %v1001_v46 = vrot.slane %v891_v43, 6 }
 0x626   :  { %v1003_v48 = vadd.f32 %v1001_v46, %v585_v45 }
 0x628   :  { %v3694_v49 = vmul.f32 -1.442695, %v1003_v48 }
 0x62a   :  { %4297 = vpow2.f32 %v3694_v49  ;;  %v963_v51 = vpop.f32.mrb[10].mxu0 }
 0x62b   :  { %v967_v52 = vadd.f32 %v963_v51, %v889_v42  ;;  %v3907_v53 = vpop.f32.mrb[11].mxu0  ;;  %v588_v42 = vadd.f32 %v586_v34, %v5434_v37 }
 0x62d   :  { %v974_v54 = vadd.f32 %v5525_v50, %v967_v52 }
 0x62f   :  { %v3693_v56 = vmul.f32 -1.442695, %v974_v54 }
 0x631   :  { %4299 = vpow2.f32 %v3693_v56 }
 0x632   :  { %4301 = vtanh.f32 %v1003_v48 }
 0x634   :  { %v4298_v57 = vpop.eup %4297 }
 0x635   :  { %v1008_v58 = vadd.f32 1.0, %v4298_v57 }
 0x637   :  { %4303 = vrcp.f32 %v1008_v58 }
 0x638   :  { %4305 = vtanh.f32 %v974_v54 }
 0x63b   :  { %v4300_v60 = vpop.eup %4299 }
 0x63c   :  { %v979_v61 = vadd.f32 1.0, %v4300_v60  ;;  %v4302_v33 = vpop.eup %4301 }
 0x63e   :  { %4307 = vrcp.f32 %v979_v61 }
 0x641   :  { %v4304_v62 = vpop.eup %4303 }
 0x642   :  { %v1011_v63 = vsel %vm5454_vm8, %v4302_v33, %v4304_v62  ;;  %v4306_v0 = vpop.eup %4305 }
 0x643   :  { %1017 = vrot.lane.b32.xlu0 %v1011_v63, %s4983_s16  ;;  %v1015_v11 = vmul.f32 %v1013_v10, %v1011_v63 }
 0x648   :  { %v4308_v1 = vpop.eup %4307 }
 0x649   :  { %v982_v2 = vsel %vm5454_vm8, %v4306_v0, %v4308_v1 }
 0x64a   :  { %985 = vrot.lane.b32.xlu1 %v982_v2, %s4983_s16  ;;  %v983_v14 = vmul.f32 0.0, %v982_v2 }
 0x6b5   :  { %v1018_v3 = vpop.permute.xlu0 %1017 }
 0x6b6   :  { %v1020_v5 = vmul.f32 %v1018_v3, %v1011_v63 }
 0x6b8   :  { %1022 = vrot.lane.b32.xlu0 %v1020_v5, %s4984_s7 }
 0x6bc   :  { %v986_v6 = vpop.permute.xlu1 %985 }
 0x6bd   :  { %v988_v7 = vmul.f32 %v986_v6, %v982_v2 }
 0x6bf   :  { %990 = vrot.lane.b32.xlu1 %v988_v7, %s4984_s7 }
 0x72a   :  { %v1023_v12 = vpop.permute.xlu0 %1022 }
 0x72b   :  { %v5537_v13 = vadd.f32 %v1023_v12, %v1015_v11 }
 0x72d   :  { %4309 = vtanh.f32 %v5537_v13  ;;  %v1224_v5 = vrot.slane %v5537_v13, 6  ;;  %v4986_v13 = vmov 1966171168  }
 0x731   :  { %v991_v15 = vpop.permute.xlu1 %990 }
 0x732   :  { %v5540_v16 = vadd.f32 %v991_v15, %v983_v14 }
 0x734   :  { %4311 = vtanh.f32 %v5540_v16 }
 0x737   :  { %v4310_v17 = vpop.eup %4309 }
 0x738   :  { %1028 = vrot.lane.b32.xlu0 %v4310_v17, %s4983_s16 }
 0x73e   :  { %v4312_v20 = vpop.eup %4311 }
 0x73f   :  { %996 = vrot.lane.b32.xlu1 %v4312_v20, %s4983_s16  ;;  %v2496_v20 = vunpack.c.l.s4 %v4986_v13 }
 0x7aa   :  { %v1029_v21 = vpop.permute.xlu0 %1028 }
 0x7ab   :  { %v1031_v55 = vmul.f32 %v1029_v21, %v1011_v63  ;;  %v2497_v21 = vunpack.c.0.s8 %v2496_v20 }
 0x7ad   :  { %v1033_v23 = vrot.slane %v1031_v55, 2  ;;  %v5586_v55 = vshrl.u32 %v787_v44, 7 }
 0x7af   :  { %1034 = vrot.lane.b32.xlu0 %v1033_v23, %s4984_s7 }
 0x7b1   :  { %v997_v25 = vpop.permute.xlu1 %996 }
 0x7b2   :  { %v5546_v26 = vmul.f32 %v997_v25, %v982_v2 }
 0x7b4   :  { %1110 = vrot.lane.b32.xlu1 %v5546_v26, %s4984_s7 }
 0x821   :  { %v1035_v27 = vpop.permute.xlu0 %1034 }
 0x822   :  { %3695 = vmatmul.mubr.msk.f32.vlgmr.msra.gmra.mrb[2].mxu1 %vm608_vm9, %v1035_v27 }
 0x823   :  { %4133 = vmatpush1.bf16.msra.mxu1 %v5474_v8  ;;  %1313 = vmatprep.mubr.f32.mxu1 %v4981_v18 }
 0x824   :  { %4135 = vmatprep.subr.bf16.mxu1 %v5476_v9 }
 0x826   :  { %v1111_v29 = vpop.permute.xlu1 %1110 }
 0x827   :  { %3917 = vmatmul.mubr.msk.f32.vlgmr.msra.gmra.mrb[12].mxu0 %vm608_vm9, %v1111_v29  ;;  %4137 = vmatpush1.bf16.msra.mxu1 %v5484_v19 }
 0x828   :  { %4140 = vmatpush3.bf16.msra.mxu0 %v5504_v28  ;;  %3927 = vmatprep.mubr.msk.f32.mxu0 %vm4982_vm3, %v4981_v18 }
 0x829   :  { %4141 = vmatprep.subr.bf16.mxu0 %v4985_v59  ;;  %4145 = vmatprep.subr.bf16.mxu1 %v5472_v4 }
 0x82c   :  { %4143 = vmatpush3.bf16.msra.mxu0 %v5508_v41 }
 0x82d   :  { %4152 = vmatprep.subr.bf16.mxu0 %v4985_v59 }
 0x8f5   :  { %v1104_v30 = vpop.f32.mrb[2].mxu1 }
 0x8f6   :  { %v1106_v31 = vpop.f32.mrb[3].mxu1 }
 0x8f7   :  { %v1212_v43 = vrot.slane %v1106_v31, 4 }
 0x8f9   :  { %v1214_v45 = vadd.f32 %v1212_v43, %v588_v42  ;;  %v5595_v42 = vsub.s32 0, %v5586_v55 }
 0x8fa   :  { %v1180_v46 = vpop.f32.mrb[12].mxu0 }
 0x8fb   :  { %v3698_v48 = vmul.f32 -1.442695, %v1214_v45  ;;  %v1184_v49 = vadd.f32 %v1180_v46, %v1104_v30  ;;  %v3918_v51 = vpop.f32.mrb[13].mxu0 }
 0x8fd   :  { %4313 = vpow2.f32 %v3698_v48  ;;  %v1185_v52 = vadd.f32 %v5525_v50, %v1184_v49 }
 0x8ff   :  { %v3697_v53 = vmul.f32 -1.442695, %v1185_v52 }
 0x901   :  { %4315 = vpow2.f32 %v3697_v53 }
 0x902   :  { %4317 = vtanh.f32 %v1214_v45 }
 0x907   :  { %v4314_v54 = vpop.eup %4313 }
 0x908   :  { %v1219_v56 = vadd.f32 1.0, %v4314_v54 }
 0x90a   :  { %4319 = vrcp.f32 %v1219_v56 }
 0x90b   :  { %v4316_v57 = vpop.eup %4315  ;;  %4321 = vtanh.f32 %v1185_v52 }
 0x90c   :  { %v1190_v58 = vadd.f32 1.0, %v4316_v57  ;;  %v4318_v34 = vpop.eup %4317 }
 0x90e   :  { %4323 = vrcp.f32 %v1190_v58 }
 0x914   :  { %v4320_v60 = vpop.eup %4319 }
 0x915   :  { %v1222_v61 = vsel %vm5454_vm8, %v4318_v34, %v4320_v60  ;;  %v4322_v33 = vpop.eup %4321  ;;  %v591_v60 = vadd.f32 %v589_v35, %v5434_v37 }
 0x916   :  { %1228 = vrot.lane.b32.xlu0 %v1222_v61, %s4983_s16  ;;  %v1226_v6 = vmul.f32 %v1224_v5, %v1222_v61 }
 0x918   :  { %v4324_v62 = vpop.eup %4323 }
 0x919   :  { %v1193_v63 = vsel %vm5454_vm8, %v4322_v33, %v4324_v62 }
 0x91a   :  { %1196 = vrot.lane.b32.xlu1 %v1193_v63, %s4983_s16  ;;  %v1194_v11 = vmul.f32 %v1193_v63, %v5540_v16  ;;  %v5589_v16 = vsub.s32 %v2497_v21, %v5586_v55 }
 0x91c   :  { %v2501_v30 = vrot.slane %v5546_v26, %v5589_v16 }
 0x91e   :  { %v2502_v44 = vcombine.high %v2501_v30, %v2501_v30  ;;  %v2509_v48 = vrot.slane %v2501_v30, %v5589_v16 }
 0x920   :  { %v2516_v51 = vrot.slane %v2502_v44, %v5589_v16 }
 0x988   :  { %v1229_v0 = vpop.permute.xlu0 %1228 }
 0x989   :  { %v1231_v1 = vmul.f32 %v1229_v0, %v1222_v61 }
 0x98b   :  { %1233 = vrot.lane.b32.xlu0 %v1231_v1, %s4984_s7 }
 0x98c   :  { %v1197_v2 = vpop.permute.xlu1 %1196 }
 0x98d   :  { %v1199_v3 = vmul.f32 %v1197_v2, %v1193_v63 }
 0x98f   :  { %1201 = vrot.lane.b32.xlu1 %v1199_v3, %s4984_s7 }
 0x9fd   :  { %v1234_v7 = vpop.permute.xlu0 %1233 }
 0x9fe   :  { %v5576_v10 = vadd.f32 %v1234_v7, %v1226_v6 }
 0xa00   :  { %4325 = vtanh.f32 %v5576_v10 }
 0xa01   :  { %v1202_v12 = vpop.permute.xlu1 %1201 }
 0xa02   :  { %v5580_v14 = vadd.f32 %v1202_v12, %v1194_v11 }
 0xa04   :  { %4327 = vtanh.f32 %v5580_v14 }
 0xa0a   :  { %v4326_v15 = vpop.eup %4325 }
 0xa0b   :  { %1239 = vrot.lane.b32.xlu0 %v4326_v15, %s4983_s16 }
 0xa0e   :  { %v4328_v17 = vpop.eup %4327 }
 0xa0f   :  { %1207 = vrot.lane.b32.xlu1 %v4328_v17, %s4983_s16 }
 0xa7d   :  { %v1240_v23 = vpop.permute.xlu0 %1239 }
 0xa7e   :  { %v1242_v25 = vmul.f32 %v1240_v23, %v1222_v61 }
 0xa80   :  { %v1244_v27 = vrot.slane %v1242_v25, 4 }
 0xa81   :  { %v1208_v29 = vpop.permute.xlu1 %1207 }
 0xa82   :  { %v1210_v31 = vmul.f32 %v1208_v29, %v1193_v63  ;;  %1245 = vrot.lane.b32.xlu0 %v1244_v27, %s4984_s7  ;;  %v1435_v27 = vrot.slane %v5576_v10, 6 }
 0xa84   :  { %v2525_v43 = vrot.slane %v1210_v31, %v5589_v16  ;;  %1321 = vrot.lane.b32.xlu1 %v1210_v31, %s4984_s7 }
 0xa86   :  { %v2526_v45 = vcombine.high %v2525_v43, %v2525_v43  ;;  %v2533_v46 = vrot.slane %v2525_v43, %v5589_v16 }
 0xa88   :  { %v2540_v49 = vrot.slane %v2526_v45, %v5589_v16  ;;  %v2676_v26 = vrot.slane %v2533_v46, %v5595_v42 }
 0xa8a   :  { %v2680_v52 = vrot.slane %v2540_v49, %v5595_v42  ;;  %v5605_v53 = vsel %vm2743_vm10, %v2509_v48, %v2676_v26 }
 0xa8c   :  { %v5607_v54 = vsel %vm2743_vm10, %v2516_v51, %v2680_v52 }
 0xaf4   :  { %v1246_v56 = vpop.permute.xlu0 %1245 }
 0xaf5   :  { %3699 = vmatmul.mubr.msk.f32.vlgmr.msra.gmra.mrb[4].mxu1 %vm608_vm9, %v1246_v56 }
 0xaf6   :  { %v1322_v57 = vpop.permute.xlu1 %1321  ;;  %4147 = vmatpush1.bf16.msra.mxu1 %v5474_v8  ;;  %1524 = vmatprep.mubr.f32.mxu1 %v4981_v18 }
 0xaf7   :  { %3928 = vmatmul.mubr.msk.f32.vlgmr.msra.gmra.mrb[14].mxu0 %vm608_vm9, %v1322_v57  ;;  %4149 = vmatprep.subr.bf16.mxu1 %v5476_v9 }
 0xaf8   :  { %4154 = vmatpush3.bf16.msra.mxu0 %v5504_v28  ;;  %3938 = vmatprep.mubr.msk.f32.mxu0 %vm4982_vm3, %v4981_v18 }
 0xaf9   :  { %4155 = vmatprep.subr.bf16.mxu0 %v4985_v59 }
 0xafa   :  { %4151 = vmatpush1.bf16.msra.mxu1 %v5484_v19 }
 0xafb   :  { %4159 = vmatprep.subr.bf16.mxu1 %v5472_v4 }
 0xafc   :  { %4157 = vmatpush3.bf16.msra.mxu0 %v5508_v41 }
 0xafd   :  { %4166 = vmatprep.subr.bf16.mxu0 %v4985_v59 }
 0xbc8   :  { %v1315_v58 = vpop.f32.mrb[4].mxu1 }
 0xbc9   :  { %v1317_v34 = vpop.f32.mrb[5].mxu1 }
 0xbca   :  { %v1423_v61 = vrot.slane %v1317_v34, 2  ;;  %v1391_v33 = vpop.f32.mrb[14].mxu0 }
 0xbcb   :  { %v1395_v62 = vadd.f32 %v1391_v33, %v1315_v58  ;;  %v3929_v63 = vpop.f32.mrb[15].mxu0 }
 0xbcc   :  { %v1425_v0 = vadd.f32 %v1423_v61, %v591_v60 }
 0xbcd   :  { %v1396_v1 = vadd.f32 %v5525_v50, %v1395_v62 }
 0xbce   :  { %v3702_v2 = vmul.f32 -1.442695, %v1425_v0 }
 0xbcf   :  { %v3701_v3 = vmul.f32 -1.442695, %v1396_v1 }
 0xbd0   :  { %4329 = vpow2.f32 %v3702_v2 }
 0xbd1   :  { %4331 = vpow2.f32 %v3701_v3 }
 0xbd2   :  { %4333 = vtanh.f32 %v1425_v0 }
 0xbd3   :  { %4335 = vtanh.f32 %v1396_v1  ;;  %v592_v1 = vadd.f32 %v5432_v36, %v5427_v32 }
 0xbda   :  { %v4330_v5 = vpop.eup %4329 }
 0xbdb   :  { %v4332_v6 = vpop.eup %4331  ;;  %v1430_v7 = vadd.f32 1.0, %v4330_v5 }
 0xbdc   :  { %v1401_v11 = vadd.f32 1.0, %v4332_v6  ;;  %v4334_v35 = vpop.eup %4333 }
 0xbdd   :  { %4337 = vrcp.f32 %v1430_v7  ;;  %v4336_v37 = vpop.eup %4335 }
 0xbde   :  { %4339 = vrcp.f32 %v1401_v11 }
 0xbe7   :  { %v4338_v12 = vpop.eup %4337 }
 0xbe8   :  { %v4340_v15 = vpop.eup %4339  ;;  %v1433_v17 = vsel %vm5454_vm8, %v4334_v35, %v4338_v12 }
 0xbe9   :  { %1439 = vrot.lane.b32.xlu0 %v1433_v17, %s4983_s16  ;;  %v1404_v13 = vsel %vm5454_vm8, %v4336_v37, %v4340_v15  ;;  %v1437_v29 = vmul.f32 %v1435_v27, %v1433_v17 }
 0xbea   :  { %1407 = vrot.lane.b32.xlu1 %v1404_v13, %s4983_s16  ;;  %v1405_v31 = vmul.f32 %v1404_v13, %v5580_v14 }
 0xc5b   :  { %v1440_v20 = vpop.permute.xlu0 %1439 }
 0xc5c   :  { %v1442_v21 = vmul.f32 %v1440_v20, %v1433_v17  ;;  %v1408_v23 = vpop.permute.xlu1 %1407 }
 0xc5d   :  { %v1410_v25 = vmul.f32 %v1408_v23, %v1404_v13 }
 0xc5e   :  { %1444 = vrot.lane.b32.xlu0 %v1442_v21, %s4984_s7 }
 0xc5f   :  { %1412 = vrot.lane.b32.xlu1 %v1410_v25, %s4984_s7 }
 0xcd0   :  { %v1445_v30 = vpop.permute.xlu0 %1444 }
 0xcd1   :  { %v5636_v43 = vadd.f32 %v1445_v30, %v1437_v29  ;;  %v1413_v44 = vpop.permute.xlu1 %1412 }
 0xcd2   :  { %v5638_v45 = vadd.f32 %v1413_v44, %v1405_v31 }
 0xcd3   :  { %4341 = vtanh.f32 %v5636_v43  ;;  %v1643_v30 = vrot.slane %v5636_v43, 6 }
 0xcd4   :  { %4343 = vtanh.f32 %v5638_v45 }
 0xcdd   :  { %v4342_v46 = vpop.eup %4341 }
 0xcde   :  { %v4344_v48 = vpop.eup %4343  ;;  %1450 = vrot.lane.b32.xlu0 %v4342_v46, %s4983_s16 }
 0xcdf   :  { %1418 = vrot.lane.b32.xlu1 %v4344_v48, %s4983_s16 }
 0xd50   :  { %v1451_v10 = vpop.permute.xlu0 %1450 }
 0xd51   :  { %v1453_v49 = vmul.f32 %v1451_v10, %v1433_v17  ;;  %v1419_v26 = vpop.permute.xlu1 %1418 }
 0xd52   :  { %v1421_v51 = vmul.f32 %v1419_v26, %v1404_v13 }
 0xd53   :  { %v1455_v14 = vrot.slane %v1453_v49, 6 }
 0xd54   :  { %v2547_v52 = vrot.slane %v1421_v51, %v5589_v16  ;;  %1532 = vrot.lane.b32.xlu1 %v1421_v51, %s4984_s7 }
 0xd55   :  { %1456 = vrot.lane.b32.xlu0 %v1455_v14, %s4984_s7 }
 0xd56   :  { %v2548_v56 = vcombine.high %v2547_v52, %v2547_v52  ;;  %v2555_v57 = vrot.slane %v2547_v52, %v5589_v16 }
 0xd58   :  { %v2562_v58 = vrot.slane %v2548_v56, %v5589_v16  ;;  %v2686_v34 = vrot.slane %v2555_v57, %v5595_v42 }
 0xd5a   :  { %v2690_v60 = vrot.slane %v2562_v58, %v5595_v42  ;;  %v5652_v61 = vsel %vm2746_vm11, %v5605_v53, %v2686_v34 }
 0xd5c   :  { %v5655_v33 = vsel %vm2746_vm11, %v5607_v54, %v2690_v60  ;;  %vm769_vm11 = vcmask 25600  }
 0xdc6   :  { %v1533_v62 = vpop.permute.xlu1 %1532 }
 0xdc7   :  { %3939 = vmatmul.mubr.msk.f32.vlgmr.msra.gmra.mrb[16].mxu0 %vm608_vm9, %v1533_v62  ;;  %v1457_v63 = vpop.permute.xlu0 %1456 }
 0xdc8   :  { %3703 = vmatmul.mubr.msk.f32.vlgmr.msra.gmra.mrb[6].mxu1 %vm608_vm9, %v1457_v63  ;;  %4168 = vmatpush3.bf16.msra.mxu0 %v5504_v28 }
 0xdc9   :  { %4161 = vmatpush1.bf16.msra.mxu1 %v5474_v8  ;;  %4169 = vmatprep.subr.bf16.mxu0 %v4985_v59 }
 0xdca   :  { %4163 = vmatprep.subr.bf16.mxu1 %v5476_v9  ;;  %1731 = vmatprep.mubr.f32.mxu1 %v4981_v18 }
 0xdcb   :  { %3949 = vmatprep.mubr.msk.f32.mxu0 %vm4982_vm3, %v4981_v18 }
 0xdcc   :  { %4171 = vmatpush3.bf16.msra.mxu0 %v5508_v41 }
 0xdcd   :  { %4165 = vmatpush1.bf16.msra.mxu1 %v5484_v19  ;;  %4180 = vmatprep.subr.bf16.mxu0 %v4985_v59 }
 0xdce   :  { %4173 = vmatprep.subr.bf16.mxu1 %v5472_v4 }
 0xe9a   :  { %v1602_v53 = vpop.f32.mrb[16].mxu0 }
 0xe9b   :  { %v3940_v54 = vpop.f32.mrb[17].mxu0  ;;  %v1526_v0 = vpop.f32.mrb[6].mxu1 }
 0xe9c   :  { %v1606_v2 = vadd.f32 %v1602_v53, %v1526_v0  ;;  %v1528_v3 = vpop.f32.mrb[7].mxu1 }
 0xe9d   :  { %v1633_v5 = vadd.f32 %v1528_v3, %v592_v1 }
 0xe9e   :  { %v1607_v6 = vadd.f32 %v5525_v50, %v1606_v2 }
 0xe9f   :  { %v3706_v7 = vmul.f32 -1.442695, %v1633_v5 }
 0xea0   :  { %v3705_v11 = vmul.f32 -1.442695, %v1607_v6 }
 0xea1   :  { %4345 = vpow2.f32 %v3706_v7 }
 0xea2   :  { %4347 = vpow2.f32 %v3705_v11 }
 0xea3   :  { %4349 = vtanh.f32 %v1633_v5 }
 0xea4   :  { %4351 = vtanh.f32 %v1607_v6 }
 0xeab   :  { %v4346_v35 = vpop.eup %4345 }
 0xeac   :  { %v4348_v37 = vpop.eup %4347  ;;  %v1638_v12 = vadd.f32 1.0, %v4346_v35 }
 0xead   :  { %v1612_v15 = vadd.f32 1.0, %v4348_v37  ;;  %v4350_v17 = vpop.eup %4349 }
 0xeae   :  { %4353 = vrcp.f32 %v1638_v12  ;;  %v4352_v13 = vpop.eup %4351 }
 0xeaf   :  { %4355 = vrcp.f32 %v1612_v15 }
 0xeb8   :  { %v4354_v32 = vpop.eup %4353 }
 0xeb9   :  { %v4356_v36 = vpop.eup %4355  ;;  %v1641_v20 = vsel %vm5454_vm8, %v4350_v17, %v4354_v32 }
 0xeba   :  { %1647 = vrot.lane.b32.xlu0 %v1641_v20, %s4983_s16  ;;  %v1615_v21 = vsel %vm5454_vm8, %v4352_v13, %v4356_v36  ;;  %v1645_v31 = vmul.f32 %v1643_v30, %v1641_v20 }
 0xebb   :  { %1618 = vrot.lane.b32.xlu1 %v1615_v21, %s4983_s16  ;;  %v1616_v46 = vmul.f32 %v1615_v21, %v5638_v45 }
 0xf2c   :  { %v1648_v23 = vpop.permute.xlu0 %1647 }
 0xf2d   :  { %v1650_v25 = vmul.f32 %v1648_v23, %v1641_v20  ;;  %v1619_v27 = vpop.permute.xlu1 %1618 }
 0xf2e   :  { %v1621_v29 = vmul.f32 %v1619_v27, %v1615_v21 }
 0xf2f   :  { %1652 = vrot.lane.b32.xlu0 %v1650_v25, %s4984_s7 }
 0xf30   :  { %1623 = vrot.lane.b32.xlu1 %v1621_v29, %s4984_s7 }
 0xfa1   :  { %v1653_v44 = vpop.permute.xlu0 %1652 }
 0xfa2   :  { %v5683_v48 = vadd.f32 %v1653_v44, %v1645_v31  ;;  %v1624_v10 = vpop.permute.xlu1 %1623 }
 0xfa3   :  { %v5685_v49 = vadd.f32 %v1624_v10, %v1616_v46 }
 0xfa4   :  { %4357 = vtanh.f32 %v5683_v48  ;;  %v1853_v30 = vrot.slane %v5683_v48, 6 }
 0xfa5   :  { %4359 = vtanh.f32 %v5685_v49 }
 0xfae   :  { %v4358_v26 = vpop.eup %4357 }
 0xfaf   :  { %v4360_v51 = vpop.eup %4359  ;;  %1658 = vrot.lane.b32.xlu0 %v4358_v26, %s4983_s16 }
 0xfb0   :  { %1629 = vrot.lane.b32.xlu1 %v4360_v51, %s4983_s16 }
0x1021   :  { %v1659_v43 = vpop.permute.xlu0 %1658 }
0x1022   :  { %v1661_v14 = vmul.f32 %v1659_v43, %v1641_v20  ;;  %v1630_v52 = vpop.permute.xlu1 %1629 }
0x1023   :  { %v1632_v56 = vmul.f32 %v1630_v52, %v1615_v21 }
0x1024   :  { %1663 = vrot.lane.b32.xlu0 %v1661_v14, %s4984_s7 }
0x1025   :  { %v2569_v45 = vrot.slane %v1632_v56, %v5589_v16  ;;  %1739 = vrot.lane.b32.xlu1 %v1632_v56, %s4984_s7 }
0x1027   :  { %v2570_v57 = vcombine.high %v2569_v45, %v2569_v45  ;;  %v2577_v58 = vrot.slane %v2569_v45, %v5589_v16 }
0x1029   :  { %v2584_v34 = vrot.slane %v2570_v57, %v5589_v16  ;;  %v2696_v60 = vrot.slane %v2577_v58, %v5595_v42 }
0x102b   :  { %v2700_v62 = vrot.slane %v2584_v34, %v5595_v42  ;;  %v5699_v63 = vsel %vm2749_vm12, %v5652_v61, %v2696_v60 }
0x102d   :  { %v5702_v53 = vsel %vm2749_vm12, %v5655_v33, %v2700_v62  ;;  %vm2482_vm12 = vcmask 254976  }
0x1096   :  { %v1664_v54 = vpop.permute.xlu0 %1663 }
0x1097   :  { %3707 = vmatmul.mubr.msk.f32.vlgmr.msra.gmra.mrb[8].mxu1 %vm608_vm9, %v1664_v54  ;;  %v1740_v0 = vpop.permute.xlu1 %1739 }
0x1098   :  { %3950 = vmatmul.mubr.msk.f32.vlgmr.msra.gmra.mrb[18].mxu0 %vm608_vm9, %v1740_v0  ;;  %4175 = vmatpush1.bf16.msra.mxu1 %v5474_v8 }
0x1099   :  { %4182 = vmatpush3.bf16.msra.mxu0 %v5504_v28  ;;  %4177 = vmatprep.subr.bf16.mxu1 %v5476_v9 }
0x109a   :  { %4183 = vmatprep.subr.bf16.mxu0 %v4985_v59  ;;  %3960 = vmatprep.mubr.msk.f32.mxu0 %vm4982_vm3, %v4981_v18 }
0x109b   :  { %1942 = vmatprep.mubr.f32.mxu1 %v4981_v18 }
0x109c   :  { %4179 = vmatpush1.bf16.msra.mxu1 %v5484_v19 }
0x109d   :  { %4185 = vmatpush3.bf16.msra.mxu0 %v5508_v41  ;;  %4187 = vmatprep.subr.bf16.mxu1 %v5472_v4 }
0x109e   :  { %4194 = vmatprep.subr.bf16.mxu0 %v4985_v59 }
0x116a   :  { %v1733_v61 = vpop.f32.mrb[8].mxu1 }
0x116b   :  { %v1735_v33 = vpop.f32.mrb[9].mxu1  ;;  %v1809_v1 = vpop.f32.mrb[18].mxu0 }
0x116c   :  { %v1841_v2 = vrot.slane %v1735_v33, 6  ;;  %v1813_v3 = vadd.f32 %v1809_v1, %v1733_v61  ;;  %v3951_v5 = vpop.f32.mrb[19].mxu0 }
0x116e   :  { %v1843_v6 = vadd.f32 %v1841_v2, %v5439_v38  ;;  %v1814_v7 = vadd.f32 %v5525_v50, %v1813_v3 }
0x1170   :  { %v3710_v11 = vmul.f32 -1.442695, %v1843_v6  ;;  %v3709_v35 = vmul.f32 -1.442695, %v1814_v7 }
0x1172   :  { %4361 = vpow2.f32 %v3710_v11 }
0x1173   :  { %4363 = vpow2.f32 %v3709_v35 }
0x1174   :  { %4365 = vtanh.f32 %v1843_v6 }
0x1175   :  { %4367 = vtanh.f32 %v1814_v7 }
0x117c   :  { %v4362_v37 = vpop.eup %4361 }
0x117d   :  { %v4364_v12 = vpop.eup %4363  ;;  %v1848_v15 = vadd.f32 1.0, %v4362_v37 }
0x117e   :  { %v1819_v17 = vadd.f32 1.0, %v4364_v12  ;;  %v4366_v13 = vpop.eup %4365 }
0x117f   :  { %4369 = vrcp.f32 %v1848_v15  ;;  %v4368_v32 = vpop.eup %4367 }
0x1180   :  { %4371 = vrcp.f32 %v1819_v17 }
0x1189   :  { %v4370_v36 = vpop.eup %4369 }
0x118a   :  { %v4372_v20 = vpop.eup %4371  ;;  %v1851_v38 = vsel %vm5454_vm8, %v4366_v13, %v4370_v36 }
0x118b   :  { %1857 = vrot.lane.b32.xlu0 %v1851_v38, %s4983_s16  ;;  %v1822_v21 = vsel %vm5454_vm8, %v4368_v32, %v4372_v20  ;;  %v1855_v31 = vmul.f32 %v1853_v30, %v1851_v38 }
0x118c   :  { %1825 = vrot.lane.b32.xlu1 %v1822_v21, %s4983_s16  ;;  %v1823_v46 = vmul.f32 %v1822_v21, %v5685_v49 }
0x11fd   :  { %v1858_v23 = vpop.permute.xlu0 %1857 }
0x11fe   :  { %v1860_v25 = vmul.f32 %v1858_v23, %v1851_v38  ;;  %v1826_v27 = vpop.permute.xlu1 %1825 }
0x11ff   :  { %v1828_v29 = vmul.f32 %v1826_v27, %v1822_v21 }
0x1200   :  { %1862 = vrot.lane.b32.xlu0 %v1860_v25, %s4984_s7 }
0x1201   :  { %1830 = vrot.lane.b32.xlu1 %v1828_v29, %s4984_s7 }
0x1272   :  { %v1863_v44 = vpop.permute.xlu0 %1862 }
0x1273   :  { %v5729_v10 = vadd.f32 %v1863_v44, %v1855_v31  ;;  %v1831_v26 = vpop.permute.xlu1 %1830 }
0x1274   :  { %v5731_v51 = vadd.f32 %v1831_v26, %v1823_v46 }
0x1275   :  { %4373 = vtanh.f32 %v5729_v10  ;;  %v2064_v29 = vrot.slane %v5729_v10, 6 }
0x1276   :  { %4375 = vtanh.f32 %v5731_v51 }
0x127f   :  { %v4374_v43 = vpop.eup %4373 }
0x1280   :  { %v4376_v14 = vpop.eup %4375  ;;  %1868 = vrot.lane.b32.xlu0 %v4374_v43, %s4983_s16 }
0x1281   :  { %1836 = vrot.lane.b32.xlu1 %v4376_v14, %s4983_s16 }
0x12f2   :  { %v1869_v48 = vpop.permute.xlu0 %1868 }
0x12f3   :  { %v1871_v52 = vmul.f32 %v1869_v48, %v1851_v38  ;;  %v1837_v56 = vpop.permute.xlu1 %1836 }
0x12f4   :  { %v1839_v45 = vmul.f32 %v1837_v56, %v1822_v21 }
0x12f5   :  { %v1873_v49 = vrot.slane %v1871_v52, 2 }
0x12f6   :  { %v2591_v57 = vrot.slane %v1839_v45, %v5589_v16  ;;  %1950 = vrot.lane.b32.xlu1 %v1839_v45, %s4984_s7 }
0x12f7   :  { %1874 = vrot.lane.b32.xlu0 %v1873_v49, %s4984_s7 }
0x12f8   :  { %v2592_v58 = vcombine.high %v2591_v57, %v2591_v57  ;;  %v2599_v34 = vrot.slane %v2591_v57, %v5589_v16 }
0x12fa   :  { %v2606_v60 = vrot.slane %v2592_v58, %v5589_v16  ;;  %v2706_v62 = vrot.slane %v2599_v34, %v5595_v42 }
0x12fc   :  { %v2710_v54 = vrot.slane %v2606_v60, %v5595_v42  ;;  %v5746_v0 = vsel %vm2752_vm13, %v5699_v63, %v2706_v62 }
0x12fe   :  { %v5750_v61 = vsel %vm2752_vm13, %v5702_v53, %v2710_v54 }
0x1368   :  { %v1951_v33 = vpop.permute.xlu1 %1950 }
0x1369   :  { %3961 = vmatmul.mubr.msk.f32.vlgmr.msra.gmra.mrb[20].mxu0 %vm608_vm9, %v1951_v33  ;;  %v1875_v1 = vpop.permute.xlu0 %1874 }
0x136a   :  { %3711 = vmatmul.mubr.msk.f32.vlgmr.msra.gmra.mrb[10].mxu1 %vm608_vm9, %v1875_v1  ;;  %4196 = vmatpush3.bf16.msra.mxu0 %v5504_v28 }
0x136b   :  { %4189 = vmatpush1.bf16.msra.mxu1 %v5474_v8  ;;  %4197 = vmatprep.subr.bf16.mxu0 %v4985_v59 }
0x136c   :  { %4191 = vmatprep.subr.bf16.mxu1 %v5476_v9  ;;  %3971 = vmatprep.mubr.msk.f32.mxu0 %vm4982_vm3, %v4981_v18 }
0x136d   :  { %2153 = vmatprep.mubr.f32.mxu1 %v4981_v18 }
0x136e   :  { %4199 = vmatpush3.bf16.msra.mxu0 %v5508_v41 }
0x136f   :  { %4193 = vmatpush1.bf16.msra.mxu1 %v5484_v19  ;;  %4208 = vmatprep.subr.bf16.mxu0 %v4985_v59 }
0x1370   :  { %4201 = vmatprep.subr.bf16.mxu1 %v5472_v4 }
0x143c   :  { %v2020_v63 = vpop.f32.mrb[20].mxu0 }
0x143d   :  { %v3962_v53 = vpop.f32.mrb[21].mxu0  ;;  %v1944_v2 = vpop.f32.mrb[10].mxu1 }
0x143e   :  { %v2024_v3 = vadd.f32 %v2020_v63, %v1944_v2  ;;  %v1946_v5 = vpop.f32.mrb[11].mxu1 }
0x143f   :  { %v2052_v6 = vrot.slane %v1946_v5, 4 }
0x1440   :  { %v2025_v7 = vadd.f32 %v5525_v50, %v2024_v3 }
0x1441   :  { %v2054_v11 = vadd.f32 %v2052_v6, %v5444_v39 }
0x1442   :  { %v3713_v35 = vmul.f32 -1.442695, %v2025_v7 }
0x1443   :  { %v3714_v37 = vmul.f32 -1.442695, %v2054_v11 }
0x1444   :  { %4377 = vpow2.f32 %v3713_v35 }
0x1445   :  { %4379 = vpow2.f32 %v3714_v37 }
0x1446   :  { %4381 = vtanh.f32 %v2025_v7 }
0x1447   :  { %4383 = vtanh.f32 %v2054_v11 }
0x144e   :  { %v4378_v12 = vpop.eup %4377 }
0x144f   :  { %v4380_v15 = vpop.eup %4379  ;;  %v2030_v17 = vadd.f32 1.0, %v4378_v12 }
0x1450   :  { %v2059_v4 = vadd.f32 1.0, %v4380_v15  ;;  %v4382_v13 = vpop.eup %4381 }
0x1451   :  { %4385 = vrcp.f32 %v2030_v17  ;;  %v4384_v32 = vpop.eup %4383 }
0x1452   :  { %4387 = vrcp.f32 %v2059_v4 }
0x145b   :  { %v4386_v36 = vpop.eup %4385 }
0x145c   :  { %v4388_v20 = vpop.eup %4387  ;;  %v2033_v38 = vsel %vm5454_vm8, %v4382_v13, %v4386_v36 }
0x145d   :  { %2036 = vrot.lane.b32.xlu1 %v2033_v38, %s4983_s16  ;;  %v2062_v39 = vsel %vm5454_vm8, %v4384_v32, %v4388_v20  ;;  %v2034_v30 = vmul.f32 %v2033_v38, %v5731_v51 }
0x145e   :  { %2068 = vrot.lane.b32.xlu0 %v2062_v39, %s4983_s16  ;;  %v2066_v44 = vmul.f32 %v2064_v29, %v2062_v39 }
0x14cf   :  { %v2037_v21 = vpop.permute.xlu1 %2036 }
0x14d0   :  { %v2039_v23 = vmul.f32 %v2037_v21, %v2033_v38  ;;  %v2069_v25 = vpop.permute.xlu0 %2068 }
0x14d1   :  { %v2071_v27 = vmul.f32 %v2069_v25, %v2062_v39 }
0x14d2   :  { %2041 = vrot.lane.b32.xlu1 %v2039_v23, %s4984_s7 }
0x14d3   :  { %2073 = vrot.lane.b32.xlu0 %v2071_v27, %s4984_s7 }
0x1544   :  { %v2042_v31 = vpop.permute.xlu1 %2041 }
0x1545   :  { %v5777_v46 = vadd.f32 %v2042_v31, %v2034_v30  ;;  %v2074_v26 = vpop.permute.xlu0 %2073 }
0x1546   :  { %v5779_v43 = vadd.f32 %v2074_v26, %v2066_v44 }
0x1547   :  { %4389 = vtanh.f32 %v5777_v46 }
0x1548   :  { %4391 = vtanh.f32 %v5779_v43  ;;  %v2275_v36 = vrot.slane %v5779_v43, 6 }
0x1551   :  { %v4390_v14 = vpop.eup %4389 }
0x1552   :  { %v4392_v48 = vpop.eup %4391  ;;  %2047 = vrot.lane.b32.xlu1 %v4390_v14, %s4983_s16 }
0x1553   :  { %2079 = vrot.lane.b32.xlu0 %v4392_v48, %s4983_s16 }
0x15c4   :  { %v2048_v10 = vpop.permute.xlu1 %2047 }
0x15c5   :  { %v2050_v52 = vmul.f32 %v2048_v10, %v2033_v38  ;;  %v2080_v51 = vpop.permute.xlu0 %2079 }
0x15c6   :  { %v2082_v56 = vmul.f32 %v2080_v51, %v2062_v39 }
0x15c7   :  { %v2613_v45 = vrot.slane %v2050_v52, %v5589_v16  ;;  %2161 = vrot.lane.b32.xlu1 %v2050_v52, %s4984_s7 }
0x15c8   :  { %v2084_v49 = vrot.slane %v2082_v56, 4 }
0x15c9   :  { %v2614_v57 = vcombine.high %v2613_v45, %v2613_v45  ;;  %v2621_v58 = vrot.slane %v2613_v45, %v5589_v16 }
0x15ca   :  { %2085 = vrot.lane.b32.xlu0 %v2084_v49, %s4984_s7  ;;  %v3686_v49 = vld [vmem:[#allocation25] ss:$0 sm:$0xff] }
0x15cb   :  { %v2628_v34 = vrot.slane %v2614_v57, %v5589_v16  ;;  %v2716_v60 = vrot.slane %v2621_v58, %v5595_v42  ;;  %v5840_v57 = vadd.f32 %v3686_v49, %v5500_v22 }
0x15cd   :  { %v2720_v62 = vrot.slane %v2628_v34, %v5595_v42  ;;  %v5793_v54 = vsel %vm2755_vm14, %v5746_v0, %v2716_v60 }
0x15cf   :  { %v5796_v33 = vsel %vm2755_vm14, %v5750_v61, %v2720_v62 }
0x1639   :  { %v2162_v1 = vpop.permute.xlu1 %2161 }
0x163a   :  { %3972 = vmatmul.mubr.msk.f32.vlgmr.msra.gmra.mrb[22].mxu0 %vm608_vm9, %v2162_v1  ;;  %v4425_v1 = vld [vmem:[#allocation19] ss:$0 sm:$0xff] }
0x163b   :  { %4210 = vmatpush3.bf16.msra.mxu0 %v5504_v28  ;;  %3982 = vmatprep.mubr.msk.f32.mxu0 %vm4982_vm3, %v4981_v18 }
0x163c   :  { %v2086_v63 = vpop.permute.xlu0 %2085  ;;  %4211 = vmatprep.subr.bf16.mxu0 %v4985_v59 }
0x163d   :  { %3715 = vmatmul.mubr.msk.f32.vlgmr.msra.gmra.mrb[12].mxu1 %vm608_vm9, %v2086_v63 }
0x163e   :  { %4203 = vmatpush1.bf16.msra.mxu1 %v5474_v8  ;;  %2364 = vmatprep.mubr.f32.mxu1 %v4981_v18 }
0x163f   :  { %4213 = vmatpush3.bf16.msra.mxu0 %v5508_v41  ;;  %4205 = vmatprep.subr.bf16.mxu1 %v5476_v9 }
0x1640   :  { %3996 = vmatprep.subr.mxu0 %v4981_v18 }
0x1642   :  { %4207 = vmatpush1.bf16.msra.mxu1 %v5484_v19 }
0x170d   :  { %v2231_v28 = vpop.f32.mrb[22].mxu0 }
0x170e   :  { %v3973_v0 = vpop.f32.mrb[23].mxu0 }
0x1710   :  { %v2155_v61 = vpop.f32.mrb[12].mxu1 }
0x1711   :  { %v2235_v53 = vadd.f32 %v2231_v28, %v2155_v61  ;;  %v2157_v2 = vpop.f32.mrb[13].mxu1 }
0x1712   :  { %v2263_v3 = vrot.slane %v2157_v2, 2 }
0x1713   :  { %v2236_v5 = vadd.f32 %v5525_v50, %v2235_v53 }
0x1714   :  { %v2265_v8 = vadd.f32 %v2263_v3, %v5449_v40 }
0x1715   :  { %v3717_v6 = vmul.f32 -1.442695, %v2236_v5 }
0x1716   :  { %v3718_v7 = vmul.f32 -1.442695, %v2265_v8 }
0x1717   :  { %4393 = vpow2.f32 %v3717_v6 }
0x1718   :  { %4395 = vpow2.f32 %v3718_v7 }
0x1719   :  { %4397 = vtanh.f32 %v2236_v5 }
0x171a   :  { %4399 = vtanh.f32 %v2265_v8 }
0x1721   :  { %v4394_v41 = vpop.eup %4393 }
0x1722   :  { %v4396_v9 = vpop.eup %4395  ;;  %v2241_v11 = vadd.f32 1.0, %v4394_v41 }
0x1723   :  { %v2270_v19 = vadd.f32 1.0, %v4396_v9  ;;  %v4398_v35 = vpop.eup %4397  ;;  %v2764_v9 = vld [vmem:[#allocation20] sm:$0xff] }
0x1724   :  { %4401 = vrcp.f32 %v2241_v11  ;;  %v4400_v37 = vpop.eup %4399  ;;  %v2765_v11 = vld [vmem:[#allocation20 + $0x8] sm:$0xff] }
0x1725   :  { %4403 = vrcp.f32 %v2270_v19  ;;  %v2766_v19 = vld [vmem:[#allocation20 + $0x10] sm:$0xff] }
0x172e   :  { %v4402_v12 = vpop.eup %4401 }
0x172f   :  { %v4404_v15 = vpop.eup %4403  ;;  %v2244_v50 = vsel %vm5454_vm8, %v4398_v35, %v4402_v12  ;;  %v2767_v12 = vld [vmem:[#allocation20 + $0x18] sm:$0xff] }
0x1730   :  { %2247 = vrot.lane.b32.xlu1 %v2244_v50, %s4983_s16  ;;  %v2273_v40 = vsel %vm5454_vm8, %v4400_v37, %v4404_v15  ;;  %v2245_v20 = vmul.f32 %v2244_v50, %v5777_v46  ;;  %v4214_v37 = vpack.c.bf16 %v2765_v11, %v2764_v9  ;;  %v4218_v47 = vpack.c.bf16 %v2767_v12, %v2766_v19 }
0x1731   :  { %2279 = vrot.lane.b32.xlu0 %v2273_v40, %s4983_s16  ;;  %v2277_v39 = vmul.f32 %v2275_v36, %v2273_v40 }
0x1732   :  { %4215 = vmatprep.subr.bf16.mxu1 %v4214_v37 }
0x17a2   :  { %v2248_v17 = vpop.permute.xlu1 %2247 }
0x17a3   :  { %v2250_v4 = vmul.f32 %v2248_v17, %v2244_v50  ;;  %v2280_v13 = vpop.permute.xlu0 %2279 }
0x17a4   :  { %v2282_v32 = vmul.f32 %v2280_v13, %v2273_v40 }
0x17a5   :  { %2252 = vrot.lane.b32.xlu1 %v2250_v4, %s4984_s7 }
0x17a6   :  { %2284 = vrot.lane.b32.xlu0 %v2282_v32, %s4984_s7 }
0x1817   :  { %v2253_v38 = vpop.permute.xlu1 %2252 }
0x1818   :  { %v2255_v21 = vadd.f32 %v2253_v38, %v2245_v20  ;;  %v2285_v23 = vpop.permute.xlu0 %2284 }
0x1819   :  { %v5822_v25 = vadd.f32 %v2285_v23, %v2277_v39 }
0x181a   :  { %4405 = vtanh.f32 %v2255_v21 }
0x181b   :  { %4407 = vtanh.f32 %v5822_v25 }
0x1824   :  { %v4406_v27 = vpop.eup %4405 }
0x1825   :  { %v4408_v29 = vpop.eup %4407  ;;  %2258 = vrot.lane.b32.xlu1 %v4406_v27, %s4983_s16  ;;  %v3688_v27 = vld [vmem:[#allocation28] ss:$0 sm:$0xff] }
0x1826   :  { %2290 = vrot.lane.b32.xlu0 %v4408_v29, %s4983_s16  ;;  %v762_v29 = vadd.f32 %v3688_v27, %v5502_v24  ;;  %v767_v24 = vld [vmem:[#allocation8] sm:$0x3] }
0x1827   :  { %vm768_vm1 = vcmp.gt.f32.partialorder %v767_v24, 0.5  ;;  %v770_v19 = vsel %vm769_vm11, %v767_v24, 0.0  ;;  %v3268_v24 = vld [vmem:[%s6092_s19 + $0x30] sm:$0xff] }
0x1897   :  { %v2259_v30 = vpop.permute.xlu1 %2258 }
0x1898   :  { %v2261_v31 = vmul.f32 %v2259_v30, %v2244_v50  ;;  %v2291_v44 = vpop.permute.xlu0 %2290  ;;  %v3722_v30 = vld [vmem:[#allocation22] ss:$0 sm:$0xff] }
0x1899   :  { %v5827_v26 = vmul.f32 %v2291_v44, %v2273_v40 }
0x189a   :  { %v2635_v46 = vrot.slane %v2261_v31, %v5589_v16  ;;  %2371 = vrot.lane.b32.xlu1 %v2261_v31, %s4984_s7 }
0x189b   :  { %v2295_v43 = vrot.slane %v5827_v26, 6 }
0x189c   :  { %v2636_v14 = vcombine.high %v2635_v46, %v2635_v46  ;;  %v2643_v48 = vrot.slane %v2635_v46, %v5589_v16 }
0x189d   :  { %2296 = vrot.lane.b32.xlu0 %v2295_v43, %s4984_s7  ;;  %v766_v43 = vcombine.high %v762_v29, %v762_v29 }
0x189e   :  { %v2650_v10 = vrot.slane %v2636_v14, %v5589_v16  ;;  %v2726_v52 = vrot.slane %v2643_v48, %v5595_v42  ;;  %v4987_v48 = vmov 0  }
0x18a0   :  { %v2759_v51 = vsel %vm2758_vm15, %v5793_v54, %v2726_v52  ;;  %v2730_v56 = vrot.slane %v2650_v10, %v5595_v42  ;;  %v3012_v10 = vsel %vm768_vm1, 1, %v4987_v48 }
0x18a1   :  { %v3019_v52 = vrot.slane %v3012_v10, %v5589_v16  ;;  %v3269_v10 = vld [vmem:[%s6092_s19 + $0x38] sm:$0xff] }
0x18a2   :  { %v2760_v45 = vsel %vm2758_vm15, %v5796_v33, %v2730_v56  ;;  %vm3272_vm15 = vcmask 1041409  }
0x190c   :  { %v2372_v58 = vpop.permute.xlu1 %2371 }
0x190d   :  { %3983 = vmatmul.mubr.msk.f32.vlgmr.msra.gmra.mrb[24].mxu0 %vm608_vm9, %v2372_v58 }
0x190e   :  { %3997 = vmatpush3.xpose.msk.msra.mxu0 %vm416_vm5, %v5840_v57  ;;  %3998 = vmatprep.mubr.msk.f32.mxu0 %vm4982_vm3, %v4981_v18 }
0x190f   :  { %v2297_v34 = vpop.permute.xlu0 %2296  ;;  %4006 = vmatprep.subr.mxu0 %v4981_v18 }
0x1910   :  { %3719 = vmatmul.mubr.msk.f32.vlgmr.msra.gmra.mrb[14].mxu1 %vm608_vm9, %v2297_v34 }
0x1911   :  { %4217 = vmatpush3.bf16.msra.mxu1 %v4214_v37 }
0x1912   :  { %4219 = vmatprep.subr.bf16.mxu1 %v4218_v47 }
0x1915   :  { %4221 = vmatpush3.bf16.msra.mxu1 %v4218_v47 }
0x1916   :  { %4001 = vmatprep.subr.mxu1 %v4981_v18 }
0x19e0   :  { %v2441_v60 = vpop.f32.mrb[24].mxu0 }
0x19e1   :  { %v3984_v62 = vpop.f32.mrb[25].mxu0 }
0x19e3   :  { %v2366_v54 = vpop.f32.mrb[14].mxu1 }
0x19e4   :  { %v2445_v33 = vadd.f32 %v2441_v60, %v2366_v54  ;;  %v2368_v22 = vpop.f32.mrb[15].mxu1 }
0x19e6   :  { %v2446_v63 = vadd.f32 %v4425_v1, %v2445_v33 }
0x19e8   :  { %v3721_v28 = vmul.f32 -1.442695, %v2446_v63 }
0x19ea   :  { %4409 = vpow2.f32 %v3721_v28 }
0x19eb   :  { %4411 = vtanh.f32 %v2446_v63 }
0x19f4   :  { %v4410_v0 = vpop.eup %4409 }
0x19f5   :  { %v2451_v61 = vadd.f32 1.0, %v4410_v0  ;;  %v4412_v53 = vpop.eup %4411 }
0x19f7   :  { %4413 = vrcp.f32 %v2451_v61 }
0x1a01   :  { %v4414_v2 = vpop.eup %4413 }
0x1a02   :  { %v2454_v3 = vsel %vm5454_vm8, %v4412_v53, %v4414_v2  ;;  %vm3051_vm8 = vcmask 31744  }
0x1a03   :  { %2457 = vrot.lane.b32.xlu0 %v2454_v3, %s4983_s16  ;;  %v2455_v6 = vmul.f32 %v2454_v3, %v2255_v21  ;;  %v683_v21 = vcombine.high %v5840_v57, %v5840_v57 }
0x1a75   :  { %v2458_v5 = vpop.permute.xlu0 %2457 }
0x1a76   :  { %v2460_v8 = vmul.f32 %v2458_v5, %v2454_v3 }
0x1a78   :  { %2462 = vrot.lane.b32.xlu1 %v2460_v8, %s4984_s7 }
0x1aea   :  { %v2463_v7 = vpop.permute.xlu1 %2462 }
0x1aeb   :  { %v5853_v41 = vadd.f32 %v2463_v7, %v2455_v6 }
0x1aed   :  { %4415 = vtanh.f32 %v5853_v41 }
0x1af7   :  { %v4416_v35 = vpop.eup %4415 }
0x1af8   :  { %2468 = vrot.lane.b32.xlu0 %v4416_v35, %s4983_s16 }
0x1b6a   :  { %v2469_v15 = vpop.permute.xlu0 %2468 }
0x1b6b   :  { %v5858_v50 = vmul.f32 %v2469_v15, %v2454_v3 }
0x1b6d   :  { %v2657_v40 = vrot.slane %v5858_v50, %v5589_v16 }
0x1b6f   :  { %v2658_v17 = vcombine.high %v2657_v40, %v2657_v40  ;;  %v2665_v4 = vrot.slane %v2657_v40, %v5589_v16  ;;  %v3258_v40 = vld [vmem:[#allocation29] sm:$0xff] }
0x1b71   :  { %v2672_v13 = vrot.slane %v2658_v17, %v5589_v16  ;;  %v2736_v32 = vrot.slane %v2665_v4, %v5595_v42 }
0x1b73   :  { %v2762_v36 = vsel %vm2761_vm0, %v2759_v51, %v2736_v32  ;;  %v2740_v20 = vrot.slane %v2672_v13, %v5595_v42  ;;  %v3020_v51 = vcombine.high %v3019_v52, %v3019_v52 }
0x1b74   :  { %2777 = vrot.lane.b32.xlu1 %v2762_v36, %s4984_s7 }
0x1b75   :  { %v2763_v38 = vsel %vm2761_vm0, %v2760_v45, %v2740_v20  ;;  %v3034_v56 = vrot.slane %v3020_v51, %v5589_v16  ;;  %v3027_v45 = vrot.slane %v3019_v52, %v5589_v16  ;;  %v3260_v20 = vld [vmem:[#allocation29 + $0x10] sm:$0xff]  ;;  %v4232_v52 = vpack.c.bf16 %v3269_v10, %v3268_v24  ;;  %v3418_v51 = vld [vmem:[%s6093_s20] sm:$0xff] }
0x1b76   :  { %2779 = vrot.lane.b32.xlu0 %v2763_v38, %s4984_s7  ;;  %v3261_v38 = vld [vmem:[#allocation29 + $0x18] sm:$0xff]  ;;  %vm3253_vm0 = vcmask 785408  }
0x1b77   :  { %vm3036_vm2 = vcmp.ne.s32.totalorder %v3034_v56, 0  ;;  %vm3035_vm6 = vcmp.ne.s32.totalorder %v3027_v45, 0  ;;  %v4426_v56 = vld [vmem:[#allocation5] sm:$0x3]  ;;  %v3231_v45 = vsub.s32 1, %v5586_v55 }
0x1b78   :  { %v3038_v49 = vsel %vm3036_vm2, 1, %v4987_v48  ;;  %v3037_v57 = vsel %vm3035_vm6, 1, %v4987_v48 }
0x1b79   :  { %v3046_v58 = vrot.slane %v3038_v49, %v5595_v42  ;;  %v3042_v34 = vrot.slane %v3037_v57, %v5595_v42  ;;  %v3499_v57 = vld [vmem:[%s6095_s22] sm:$0xff] }
0x1b7b   :  { %vm3048_vm7 = vcmp.eq.s32.totalorder %v3046_v58, 1  ;;  %vm3047_vm10 = vcmp.eq.s32.totalorder %v3042_v34, 1  ;;  %v3500_v58 = vld [vmem:[%s6095_s22 + $0x8] sm:$0xff]  ;;  %v3501_v34 = vld [vmem:[%s6095_s22 + $0x10] sm:$0xff] }
0x1be6   :  { %v5868_v39 = vpop.permute.xlu1 %2777 }
0x1be7   :  { %3993 = vmatprep.mubr.msk.f32.mxu1 %vm608_vm9, %v5868_v39 }
0x1be8   :  { %v5874_v23 = vpop.permute.xlu0 %2779 }
0x1be9   :  { %3994 = vmatmul.mubr.msk.f32.vlgmr.msra.gmra.mrb[16].mxu1 %vm608_vm9, %v5874_v23 }
0x1bea   :  { %4002 = vmatpush3.xpose.msk.msra.mxu1 %vm416_vm5, %v683_v21  ;;  %4003 = vmatprep.mubr.msk.f32.mxu1 %vm4982_vm3, %v4981_v18 }
0x1beb   :  { %4011 = vmatprep.subr.mxu1 %v4981_v18 }
0x1cbc   :  { %v3995_v31 = vpop.f32.mrb[16].mxu1 }
0x1cbd   :  { %v2857_v44 = vadd.f32 %v3995_v31, %v3722_v30  ;;  %v2851_v46 = vpop.f32.mrb[17].mxu1  ;;  %v4238_v31 = vpack.c.bf16 %v3261_v38, %v3260_v20 }
0x1cbe   :  { %v2852_v14 = vadd.f32 %v3722_v30, %v2851_v46  ;;  %v3265_v30 = vld [vmem:[%s6092_s19 + $0x18] sm:$0xff]  ;;  %v3266_v46 = vld [vmem:[%s6092_s19 + $0x20] sm:$0xff] }
0x1cbf   :  { %4004 = vmatmul.mubr.msk.f32.vlgmr.msra.gmra.mrb[18].mxu1 %vm416_vm5, %v2857_v44 }
0x1cc0   :  { %4012 = vmatpush3.msk.msra.mxu1 %vm2752_vm13, %v766_v43  ;;  %3999 = vmatmul.mubr.msk.f32.vlgmr.msra.gmra.mrb[26].mxu0 %vm416_vm5, %v2852_v14  ;;  %v3267_v43 = vld [vmem:[%s6092_s19 + $0x28] sm:$0xff] }
0x1cc1   :  { %4007 = vmatpush3.msk.msra.mxu0 %vm2752_vm13, %v762_v29  ;;  %4013 = vmatprep.mubr.msk.f32.mxu1 %vm4982_vm3, %v4981_v18  ;;  %vm2475_vm13 = vcmask 261126   ;;  %v3264_v29 = vld [vmem:[%s6092_s19 + $0x10] sm:$0xff]  ;;  %v4229_v14 = vpack.c.bf16 %v3267_v43, %v3266_v46 }
0x1cc2   :  { %4234 = vmatprep.subr.bf16.mxu1 %v4985_v59  ;;  %4008 = vmatprep.mubr.msk.f32.mxu0 %vm4982_vm3, %v4981_v18  ;;  %v4226_v44 = vpack.c.bf16 %v3265_v30, %v3264_v29 }
0x1cc3   :  { %4222 = vmatprep.subr.bf16.mxu0 %v4985_v59 }
0x1d92   :  { %v3006_v60 = vpop.f32.mrb[18].mxu1 }
0x1d93   :  { %v3011_v62 = vmul.f32 0.125, %v3006_v60  ;;  %v2931_v54 = vpop.f32.mrb[26].mxu0  ;;  %v4005_v33 = vpop.f32.mrb[19].mxu1 }
0x1d94   :  { %v3010_v22 = vmul.f32 0.125, %v2931_v54  ;;  %v4000_v1 = vpop.f32.mrb[27].mxu0 }
0x1d95   :  { %v3050_v16 = vsel %vm3048_vm7, %v3011_v62, -1e+30  ;;  %v4241_v62 = vpack.c.bf16 %v3500_v58, %v3499_v57 }
0x1d96   :  { %v3055_v63 = vsel %vm3051_vm8, %v3050_v16, -inf  ;;  %v3049_v28 = vsel %vm3047_vm10, %v3010_v22, -1e+30 }
0x1d97   :  { %3056 = vmax.xlane.f32.xlu0 %v3055_v63  ;;  %v3052_v0 = vsel %vm3051_vm8, %v3049_v28, -inf }
0x1d98   :  { %3053 = vmax.xlane.f32.xlu1 %v3052_v0 }
0x1e24   :  { %v3057_v61 = vpop.xlane.xlu0 %3056 }
0x1e25   :  { %v3059_v53 = vsub.f32 %v3050_v16, %v3057_v61  ;;  %v3054_v2 = vpop.xlane.xlu1 %3053 }
0x1e26   :  { %v3058_v3 = vsub.f32 %v3049_v28, %v3054_v2  ;;  %v3503_v2 = vld [vmem:[%s6095_s22 + $0x20] sm:$0xff] }
0x1e27   :  { %v3062_v5 = vmul.f32 1.442695, %v3059_v53 }
0x1e28   :  { %v3060_v8 = vmul.f32 1.442695, %v3058_v3  ;;  %v3504_v3 = vld [vmem:[%s6095_s22 + $0x28] sm:$0xff] }
0x1e29   :  { %4417 = vpow2.f32 %v3062_v5 }
0x1e2a   :  { %4419 = vpow2.f32 %v3060_v8  ;;  %v4247_v8 = vpack.c.bf16 %v3504_v3, %v3503_v2 }
0x1e33   :  { %v4418_v6 = vpop.eup %4417 }
0x1e34   :  { %v4420_v7 = vpop.eup %4419  ;;  %v3067_v9 = vsel %vm3051_vm8, %v4418_v6, 0.0 }
0x1e35   :  { %3068 = vadd.xlane.f32.xlu1 %v3067_v9  ;;  %v3064_v11 = vsel %vm3051_vm8, %v4420_v7, 0.0 }
0x1e36   :  { %3065 = vadd.xlane.f32.xlu0 %v3064_v11 }
0x1e3a   :  { %771 = vadd.xlane.f32.xlu0 %v770_v19 }
0x1e46   :  { %2478 = vrot.lane.b32.xlu1 %v5858_v50, %s4984_s7  ;;  %v3259_v50 = vld [vmem:[#allocation29 + $0x8] sm:$0xff] }
0x1e47   :  { %v4235_v13 = vpack.c.bf16 %v3259_v50, %v3258_v40 }
0x1e4a   :  { %2472 = vrot.lane.b32.xlu1 %v5827_v26, %s4984_s7  ;;  %v3263_v26 = vld [vmem:[%s6092_s19 + $0x8] sm:$0xff] }
0x1e50   :  { %2485 = vrot.lane.b32.xlu0 %v5822_v25, %s4988_s29  ;;  %v3262_v25 = vld [vmem:[%s6092_s19] sm:$0xff] }
0x1e51   :  { %v4223_v27 = vpack.c.bf16 %v3263_v26, %v3262_v25 }
0x1ec2   :  { %v3069_v35 = vpop.xlane.xlu1 %3068 }
0x1ec3   :  { %4421 = vrcp.f32 %v3069_v35  ;;  %v3066_v37 = vpop.xlane.xlu0 %3065 }
0x1ec4   :  { %4423 = vrcp.f32 %v3066_v37 }
0x1ec6   :  { %v2479_v12 = vpop.permute.xlu1 %2478 }
0x1ec7   :  { %2483 = vst.msk [vmem:[#allocation35 + $0x2] sm:$0x3] %vm2482_vm12, %v2479_v12  ;;  %v772_v47 = vpop.xlane.xlu0 %771 }
0x1ec8   :  { %vm773_vm14 = vcmp.gt.f32.partialorder %v772_v47, 0.5 }
0x1ec9   :  { %v3224_v49 = vsel %vm773_vm14, 1, %v4987_v48 }
0x1eca   :  { %v2473_v15 = vpop.permute.xlu1 %2472  ;;  %v3232_v60 = vrot.slane %v3224_v49, %v3231_v45  ;;  %v3228_v55 = vrot.slane %v3224_v49, %v5595_v42 }
0x1ecb   :  { %2476 = vst.msk [vmem:[#allocation35 - $0x6] sm:$0xc0] %vm2475_vm13, %v2473_v15  ;;  %v2486_v17 = vpop.permute.xlu0 %2485 }
0x1ecc   :  { %2488 = vst.msk [vmem:[#allocation37 - $0x6] sm:$0xc0] %vm2475_vm13, %v2486_v17  ;;  %v3736_v17 = vld [vmem:[%s6094_s21] ss:$0 sm:$0xff] }
0x1ecd   :  { %v4422_v4 = vpop.eup %4421 }
0x1ece   :  { %v4424_v32 = vpop.eup %4423  ;;  %v3073_v36 = vmul.f32 %v4422_v4, %v4418_v6 }
0x1ecf   :  { %v3071_v21 = vmul.f32 %v4424_v32, %v4420_v7  ;;  %v3506_v7 = vld [vmem:[%s6095_s22 + $0x38] sm:$0xff] }
0x1ed0   :  { %4014 = vmatmul.mubr.msk.f32.vlgmr.msra.gmra.mrb[20].mxu1 %vm3051_vm8, %v3073_v36 }
0x1ed1   :  { %4236 = vmatpush3.bf16.msra.mxu1 %v4235_v13  ;;  %4009 = vmatmul.mubr.msk.f32.vlgmr.msra.gmra.mrb[28].mxu0 %vm3051_vm8, %v3071_v21 }
0x1ed2   :  { %4237 = vmatprep.subr.bf16.mxu1 %v4985_v59  ;;  %4043 = vmatprep.mubr.msk.f32.mxu1 %vm4982_vm3, %v4981_v18 }
0x1ed3   :  { %4224 = vmatpush3.bf16.msra.mxu0 %v4223_v27  ;;  %4032 = vmatprep.mubr.msk.f32.mxu0 %vm4982_vm3, %v4981_v18 }
0x1ed4   :  { %4225 = vmatprep.subr.bf16.mxu0 %v4985_v59 }
0x1ed5   :  { %4239 = vmatpush3.bf16.msra.mxu1 %v4238_v31 }
0x1ed6   :  { %4046 = vmatprep.subr.mxu1 %v4981_v18 }
0x1ed7   :  { %4227 = vmatpush3.bf16.msra.mxu0 %v4226_v44 }
0x1ed8   :  { %4044 = vmatmul.mubr.msk.f32.vlgmr.msra.gmra.mrb[22].mxu1 %vm608_vm9, %v2479_v12  ;;  %4228 = vmatprep.subr.bf16.mxu0 %v4985_v59 }
0x1ed9   :  { %4048 = vmatprep.mubr.msk.f32.mxu1 %vm4982_vm3, %v4981_v18  ;;  %4047 = vmatpush3.msra.mxu1 %v3418_v51 }
0x1eda   :  { %4240 = vmatprep.subr.bf16.mxu1 %v4985_v59 }
0x1edb   :  { %4230 = vmatpush3.bf16.msra.mxu0 %v4229_v14 }
0x1edc   :  { %4231 = vmatprep.subr.bf16.mxu0 %v4985_v59  ;;  %4049 = vmatmul.mubr.msk.f32.vlgmr.msra.gmra.mrb[24].mxu1 %vm507_vm4, %v4426_v56  ;;  %vm3233_vm4 = vcmp.ne.s32.totalorder %v3228_v55, 0 }
0x1edd   :  { %4067 = vmatprep.mubr.msk.f32.mxu1 %vm4982_vm3, %v4981_v18  ;;  %v3502_v18 = vld [vmem:[%s6095_s22 + $0x18] sm:$0xff]  ;;  %4242 = vmatpush3.bf16.msra.mxu1 %v4241_v62  ;;  %vm3234_vm3 = vcmp.ne.s32.totalorder %v3232_v60, 0 }
0x1ede   :  { %v4244_v48 = vpack.c.bf16 %v3502_v18, %v3501_v34  ;;  %4243 = vmatprep.subr.bf16.mxu1 %v4985_v59 }
0x1edf   :  { %4233 = vmatpush3.bf16.msra.mxu0 %v4232_v52 }
0x1ee1   :  { %4245 = vmatpush3.bf16.msra.mxu1 %v4244_v48 }
0x1ee2   :  { %4246 = vmatprep.subr.bf16.mxu1 %v4985_v59 }
0x1ee5   :  { %4248 = vmatpush3.bf16.msra.mxu1 %v4247_v8 }
0x1ee6   :  { %4249 = vmatprep.subr.bf16.mxu1 %v4985_v59 }
0x1fa3   :  { %v3220_v54 = vpop.f32.mrb[20].mxu1 }
0x1fa4   :  { %v3240_v33 = vsel %vm3234_vm3, %v3220_v54, 0.0  ;;  %v3145_v22 = vpop.f32.mrb[28].mxu0  ;;  %v4015_v1 = vpop.f32.mrb[21].mxu1 }
0x1fa5   :  { %v3271_v16 = vrot.slane %v3240_v33, 6  ;;  %v3239_v63 = vsel %vm3233_vm4, %v3145_v22, 0.0  ;;  %3247 = vrot.lane.b32.xlu1 %v3240_v33, %s4984_s7  ;;  %v4010_v28 = vpop.f32.mrb[29].mxu0 }
0x1fa6   :  { %v3270_v42 = vrot.slane %v3239_v63, 7  ;;  %3245 = vrot.lane.b32.xlu0 %v3239_v63, %s4984_s7 }
0x1fa8   :  { %v3273_v0 = vsel %vm3272_vm15, %v3271_v16, %v3270_v42 }
0x1fa9   :  { %2490 = vrot.lane.b32.xlu1 %v5853_v41, %s4988_s29  ;;  %4033 = vmatmul.mubr.msk.f32.vlgmr.msra.gmra.mrb[30].mxu0 %vm416_vm5, %v3273_v0  ;;  %v3505_v41 = vld [vmem:[%s6095_s22 + $0x30] sm:$0xff] }
0x1faa   :  { %v4250_v9 = vpack.c.bf16 %v3506_v7, %v3505_v41 }
0x1fab   :  { %v3414_v61 = vpop.f32.mrb[22].mxu1 }
0x1fac   :  { %v4045_v53 = vpop.f32.mrb[23].mxu1  ;;  %4251 = vmatpush3.bf16.msra.mxu1 %v4250_v9 }
0x1faf   :  { %v3485_v5 = vpop.f32.mrb[24].mxu1 }
0x1fb0   :  { %v4050_v6 = vpop.f32.mrb[25].mxu1 }
0x2017   :  { %v3248_v11 = vpop.permute.xlu1 %3247 }
0x2018   :  { %v3252_v19 = vsel %vm608_vm9, %v5874_v23, %v3248_v11  ;;  %v3246_v35 = vpop.permute.xlu0 %3245 }
0x2019   :  { %v3255_v37 = vsel %vm3253_vm0, %v3252_v19, 0.0  ;;  %v3251_v59 = vsel %vm608_vm9, %v5868_v39, %v3246_v35 }
0x201a   :  { %3257 = vst [vmem:[#allocation31 + $0x8] sm:$0xff] %v3255_v37  ;;  %v3254_v12 = vsel %vm3253_vm0, %v3251_v59, 0.0 }
0x201b   :  { %3256 = vst [vmem:[#allocation31] sm:$0xff] %v3254_v12  ;;  %v2491_v47 = vpop.permute.xlu1 %2490 }
0x201c   :  { %2494 = vst.msk [vmem:[#allocation37 + $0x2] sm:$0x3] %vm2482_vm12, %v2491_v47 }
0x207c   :  { %v3342_v15 = vpop.f32.mrb[30].mxu0 }
0x207d   :  { %v3415_v40 = vadd.f32 %v3414_v61, %v3342_v15  ;;  %v4034_v50 = vpop.f32.mrb[31].mxu0 }
0x207f   :  { %v3489_v25 = vadd.f32 %v3485_v5, %v3415_v40 }
0x2081   :  { %v3497_v23 = vadd.f32 %v3736_v17, %v3489_v25 }
0x2083   :  { %v3498_v26 = vmax.f32 %v3497_v23, 0.0 }
0x2085   :  { %4068 = vmatmul.mubr.msk.f32.vlgmr.msra.gmra.mrb[26].mxu1 %vm416_vm5, %v3498_v26 }
0x2086   :  { %4834 = shalt.err (!%p4831_p8)
}
0x2087   :  { %s4835_s19 = scalar_lea.hbm %s6100_s27, 64 }
0x2088   :  { %p4836_p9 = scmp.ne.s32.totalorder %s6100_s27, %s4835_s19  ;;  %p4839_p10 = scmp.lt.u32.totalorder %s4835_s19, %s6100_s27 }
0x208a   :  { %p4841_p11 = pnand %p4839_p10, %p4836_p9 }
0x208c   :  { %4844 = shalt.err (!%p4841_p11)
}
0x208d   :  { %s4990_s18 = smov 2   ;;  %s4991_s10 = smov [#allocation31]  }
0x208e   :  { %3638 = dma.vmem_to_hbm [thread:$0]  %s3633_s13, 64, %s6100_s27, [#allocation36], %s4984_s7, %s4984_s7, %s4990_s18  }
0x208f   :  { %s3600_s4 = sshll.u32 %s4991_s10, 4  ;;  %s3601_s4 = int_to_ptr.vmem [resolvable:$true] %s3600_s4 }
0x2090   :  { %s4845_s0 = scalar_lea.vmem %s3601_s4, 256  ;;  %p4850_p13 = scmp.lt.s32.totalorder %s3601_s4, %s3601_s4 }
0x2091   :  { %p4846_p12 = scmp.ne.s32.totalorder %s3601_s4, %s4845_s0  ;;  %p4851_p0 = scmp.lt.s32.totalorder %s4845_s0, %s4845_s0 }
0x2093   :  { %p4852_p1 = por %p4851_p0, %p4850_p13 }
0x2095   :  { %p4853_p2 = pnand %p4852_p1, %p4846_p12 }
0x2097   :  { %4856 = shalt.err (!%p4853_p2)
}
0x2098   :  { %s4857_s12 = scalar_lea.hbm %s6097_s24, 256 }
0x2099   :  { %p4858_p3 = scmp.ne.s32.totalorder %s6097_s24, %s4857_s12  ;;  %p4861_p4 = scmp.lt.u32.totalorder %s4857_s12, %s6097_s24 }
0x209b   :  { %p4863_p5 = pnand %p4861_p4, %p4858_p3 }
0x209d   :  { %4866 = shalt.err (!%p4863_p5)
}
0x209e   :  { %3606 = dma.vmem_to_hbm [thread:$0]  %s3601_s4, 256, %s6097_s24, [#allocation4], %s6146_s17, %s6146_s17, %s4966_s1  }
0x209f   :  { %s4992_s25 = smov [#allocation37]   ;;  %v3737_v39 = vld [vmem:[%s6096_s23] ss:$0 sm:$0xff]  ;;  %s4993_s8 = smov [#allocation32]  }
0x20a0   :  { %s3644_s13 = sshll.u32 %s4992_s25, 4  ;;  %s3613_s19 = sshll.u32 %s4993_s8, 4  ;;  %s3645_s13 = int_to_ptr.vmem [resolvable:$true] %s3644_s13  ;;  %s3614_s19 = int_to_ptr.vmem [resolvable:$true] %s3613_s19 }
0x20a1   :  { %s4867_s21 = scalar_lea.vmem %s3645_s13, 64  ;;  %p4872_p7 = scmp.lt.s32.totalorder %s3645_s13, %s3645_s13 }
0x20a2   :  { %p4868_p6 = scmp.ne.s32.totalorder %s3645_s13, %s4867_s21  ;;  %p4873_p8 = scmp.lt.s32.totalorder %s4867_s21, %s4867_s21 }
0x20a4   :  { %p4874_p9 = por %p4873_p8, %p4872_p7 }
0x20a6   :  { %p4875_p10 = pnand %p4874_p9, %p4868_p6 }
0x20a8   :  { %4878 = shalt.err (!%p4875_p10)
}
0x20a9   :  { %s4879_s24 = scalar_lea.hbm %s6101_s28, 64 }
0x20aa   :  { %p4880_p11 = scmp.ne.s32.totalorder %s6101_s28, %s4879_s24  ;;  %p4883_p12 = scmp.lt.u32.totalorder %s4879_s24, %s6101_s28 }
0x20ac   :  { %p4885_p13 = pnand %p4883_p12, %p4880_p11 }
0x20ae   :  { %4888 = shalt.err (!%p4885_p13)
}
0x20af   :  { %3650 = dma.vmem_to_hbm [thread:$0]  %s3645_s13, 64, %s6101_s28, [#allocation36], %s4984_s7, %s4984_s7, %s4990_s18   ;;  %vm3587_vm5 = vcmask 74752  }
0x20b0   :  { %s4994_s10 = smov 118   ;;  %s4889_s4 = scalar_lea.vmem %s3614_s19, 32 }
0x20b1   :  { %p4890_p0 = scmp.ne.s32.totalorder %s3614_s19, %s4889_s4  ;;  %p4894_p1 = scmp.lt.s32.totalorder %s3614_s19, %s3614_s19 }
0x20b2   :  { %p4895_p2 = scmp.lt.s32.totalorder %s4889_s4, %s4889_s4 }
0x20b4   :  { %p4896_p3 = por %p4895_p2, %p4894_p1 }
0x20b6   :  { %p4897_p4 = pnand %p4896_p3, %p4890_p0 }
0x2158   :  { %v3583_v4 = vpop.f32.mrb[26].mxu1 }
0x2159   :  { %v3584_v13 = vadd.f32 %v3737_v39, %v3583_v4  ;;  %v4069_v32 = vpop.f32.mrb[27].mxu1 }
0x215b   :  { %3590 = vrot.lane.b32.xlu0 %v3584_v13, %s4994_s10  ;;  %3588 = vst.msk [vmem:[#allocation32] sm:$0x3] %vm3587_vm5, %v3584_v13 }
0x215c   :  { %4900 = shalt.err (!%p4897_p4)
}
0x215d   :  { %s6150_s15 = sld [smem:[#allocation64_spill]] }
0x2163   :  { %s4901_s12 = scalar_lea.hbm %s6150_s15, 32 }
0x2164   :  { %p4902_p5 = scmp.ne.s32.totalorder %s6150_s15, %s4901_s12  ;;  %p4905_p6 = scmp.lt.u32.totalorder %s4901_s12, %s6150_s15 }
0x2166   :  { %p4907_p7 = pnand %p4905_p6, %p4902_p5 }
0x2168   :  { %4910 = shalt.err (!%p4907_p7)
}
0x2169   :  { %3616 = dma.vmem_to_hbm [thread:$0]  %s3614_s19, 32, %s6150_s15, [#allocation33]   ;;  %vm3593_vm9 = vcmask 33792  }
0x216a   :  { %s4995_s27 = smov [#allocation34]  }
0x216b   :  { %s3623_s22 = sshll.u32 %s4995_s27, 4  ;;  %s3624_s22 = int_to_ptr.vmem [resolvable:$true] %s3623_s22 }
0x216c   :  { %s4911_s2 = scalar_lea.vmem %s3624_s22, 32  ;;  %p4916_p9 = scmp.lt.s32.totalorder %s3624_s22, %s3624_s22 }
0x216d   :  { %p4912_p8 = scmp.ne.s32.totalorder %s3624_s22, %s4911_s2  ;;  %p4917_p10 = scmp.lt.s32.totalorder %s4911_s2, %s4911_s2 }
0x216f   :  { %p4918_p11 = por %p4917_p10, %p4916_p9 }
0x2171   :  { %p4919_p12 = pnand %p4918_p11, %p4912_p8 }
0x21cd   :  { %v3591_v36 = vpop.permute.xlu0 %3590 }
0x21ce   :  { %3594 = vst.msk [vmem:[#allocation34] sm:$0x3] %vm3593_vm9, %v3591_v36 }
0x21cf   :  { %4922 = shalt.err (!%p4919_p12)
}
0x21d0   :  { %s6151_s6 = sld [smem:[#allocation65_spill]] }
0x21d6   :  { %s4923_s30 = scalar_lea.hbm %s6151_s6, 32 }
0x21d7   :  { %p4924_p13 = scmp.ne.s32.totalorder %s6151_s6, %s4923_s30  ;;  %p4927_p0 = scmp.lt.u32.totalorder %s4923_s30, %s6151_s6 }
0x21d9   :  { %p4929_p1 = pnand %p4927_p0, %p4924_p13 }
0x21db   :  { %4932 = shalt.err (!%p4929_p1)
}
0x21dc   :  { %3626 = dma.vmem_to_hbm [thread:$0]  %s3624_s22, 32, %s6151_s6, [#allocation33]  }
0x21dd   :  { %4953 = dma.done.wait [#allocation4], 256  }
0x21de   :  { %4954 = vsyncadd [#allocation4], 4294967040 }
0x21df   :  { %4955 = dma.done.wait [#allocation33], 64  }
0x21e0   :  { %4956 = vsyncadd [#allocation33], 4294967232 }
0x21e1   :  { %4957 = dma.done.wait [#allocation36], 128  }
0x21e2   :  { %4958 = vsyncadd [#allocation36], 4294967168 }
0x21e3   :  { %3666 = vsyncpa [#allocation3], 1 }
0x21e4   :  { %3667 = vsyncpa [#allocation6], 1 }
0x21e5   :  { %3668 = vsyncpa [#allocation9], 1 }
0x21e6   :  { %3669 = vsyncpa [#allocation12], 1 }
0x21e7   :  { %3670 = vsyncpa [#allocation15], 1 }
0x21e8   :  { %3671 = vsyncpa [#allocation18], 1 }
0x21e9   :  { %3672 = vsyncpa [#allocation21], 1 }
0x21ea   :  { %3673 = vsyncpa [#allocation24], 1 }
0x21eb   :  { %3674 = vsyncpa [#allocation27], 1 }
0x21ec   :  { %3675 = vsyncpa [#allocation30], 1 }
0x21ed   :  { %3676 = vsyncpa [#allocation4], 1 }
0x21ee   :  { %3677 = vsyncpa [#allocation33], 1 }
0x21ef   :  { %3678 = vsyncpa [#allocation36], 1 }

</bundles_post_ra>
